<compile_context>
chip_gen: v6e
topology: v6e:2x2x1
jax: 0.10.0
libtpu: 0.0.40
codegen_flags: <defaults>
</compile_context>

<pallas_src>
import functools

import numpy as np
import jax
import jax.numpy as jnp
from jax.experimental import pallas as pl
from jax.experimental.pallas import tpu as pltpu

SHARE_PLANES = 8
RADIX = 2
KSIZE = 3
NTAP = KSIZE * KSIZE
BN_EPS = 1e-5
GN_EPS = 1e-5


# ----------------------- constant 0/1 helper matrices -----------------------

def _shift_matrices(H, W):
    """P[t] @ x_flat == x shifted by (kh-1, kw-1) with zero padding (t = kh*3+kw)."""
    HW = H * W
    P = np.zeros((NTAP, HW, HW), np.float32)
    for kh in range(KSIZE):
        for kw in range(KSIZE):
            t = kh * KSIZE + kw
            for h in range(H):
                hh = h + kh - 1
                if not (0 <= hh < H):
                    continue
                for w in range(W):
                    ww = w + kw - 1
                    if 0 <= ww < W:
                        P[t, h * W + w, hh * W + ww] = 1.0
    return P


def _group_matrices(Cw):
    """Group indicators for GroupNorm over k-major channels (group = channel % Cw)."""
    C = NTAP * Cw
    M = np.zeros((C, Cw), np.float32)
    for c in range(C):
        M[c, c % Cw] = 1.0
    return M, np.ascontiguousarray(M.T)


def _expand_matrix(Cw, D):
    """wgn(k-major, Cw per tap) @ E -> per-tap full-D weights (tile semantics c % Cw)."""
    E = np.zeros((NTAP * Cw, NTAP * D), np.float32)
    for t in range(NTAP):
        for c in range(D):
            E[t * Cw + (c % Cw), t * D + c] = 1.0
    return E


# ------------------------------ Pallas kernels ------------------------------

def _trans_kernel(x_ref, p_ref, w1_ref, wkey_ref, we1h_ref, we1k_ref, we2_ref, wv_ref,
                  mg_ref, mgt_ref, e_ref, affd_ref, affm_ref, affe_ref,
                  xcot_ref, kk_ref, gap_ref, *, HW, D):
    affd = affd_ref[...]                      # (8, D) folded-BN affines
    c1_s, c1_b = affd[0], affd[1]
    k_s, k_b = affd[2], affd[3]
    v_s, v_b = affd[4], affd[5]
    cot_s, cot_b = affd[6], affd[7]
    affm = affm_ref[...]                      # (2, mid)
    e1_s, e1_b = affm[0], affm[1]
    affe = affe_ref[...]                      # (3, 9*Cw)
    e2_b, gn_g, gn_b = affe[0], affe[1], affe[2]

    x2 = x_ref[0]                             # (HW, D)

    # conv1 (1x1) + BN + ReLU
    h2 = jnp.maximum(
        jnp.dot(x2, w1_ref[...], preferred_element_type=jnp.float32) * c1_s + c1_b, 0.0)

    # key_embed: depthwise 3x3 (zero pad) + BN + ReLU; shifts as matmuls with P[t]
    wkey = wkey_ref[...]                      # (9, D)
    kacc = jnp.zeros((HW, D), jnp.float32)
    for t in range(NTAP):
        hs = jnp.dot(p_ref[t], h2, preferred_element_type=jnp.float32)
        kacc = kacc + hs * wkey[t]
    kk2 = jnp.maximum(kacc * k_s + k_b, 0.0)

    # embed: 1x1 on cat(h, k) as two dots (no concat), BN + ReLU, then 1x1 (+bias)
    e1 = jnp.maximum(
        (jnp.dot(h2, we1h_ref[...], preferred_element_type=jnp.float32)
         + jnp.dot(kk2, we1k_ref[...], preferred_element_type=jnp.float32)) * e1_s + e1_b,
        0.0)
    e2 = jnp.dot(e1, we2_ref[...], preferred_element_type=jnp.float32) + e2_b   # (HW, 9*Cw)

    # GroupNorm (num_groups = Cw, 9 channels/group, k-major layout) -- no reshapes,
    # group statistics via constant indicator matmuls.
    mg = mg_ref[...]                          # (9*Cw, Cw)
    mgt = mgt_ref[...]                        # (Cw, 9*Cw)
    inv_cnt = 1.0 / float(HW * NTAP)
    mean_g = jnp.dot(jnp.sum(e2, axis=0, keepdims=True), mg,
                     preferred_element_type=jnp.float32) * inv_cnt              # (1, Cw)
    mean_c = jnp.dot(mean_g, mgt, preferred_element_type=jnp.float32)           # (1, 9*Cw)
    dev = e2 - mean_c
    var_g = jnp.dot(jnp.sum(dev * dev, axis=0, keepdims=True), mg,
                    preferred_element_type=jnp.float32) * inv_cnt
    var_c = jnp.dot(var_g, mgt, preferred_element_type=jnp.float32)
    wgn = dev * jax.lax.rsqrt(var_c + GN_EPS) * gn_g + gn_b                     # (HW, 9*Cw)

    # expand tap weights to full channels once (wa[:, t*D + c] = wgn[:, t*Cw + c % Cw])
    wa = jnp.dot(wgn, e_ref[...], preferred_element_type=jnp.float32)           # (HW, 9*D)

    # value path: conv1x1 + BN
    v2 = jnp.dot(h2, wv_ref[...], preferred_element_type=jnp.float32) * v_s + v_b

    # CoT local aggregation (zero pad) + BN + swish
    acc = jnp.zeros((HW, D), jnp.float32)
    for t in range(NTAP):
        vs = jnp.dot(p_ref[t], v2, preferred_element_type=jnp.float32)
        acc = acc + vs * wa[:, t * D:(t + 1) * D]
    z = acc * cot_s + cot_b
    xc2 = z * jax.nn.sigmoid(z)

    xcot_ref[0] = xc2
    kk_ref[0] = kk2
    # global average pool of (x_cot + k) for the SE branch, fused here (no HBM re-read)
    gap_ref[0] = jnp.sum(xc2 + kk2, axis=0, keepdims=True) * (1.0 / HW)


def _finalize_kernel(xc_ref, kk_ref, gap_ref, sc_ref, wse1_ref, affa_ref,
                     wse2_ref, bse2_ref, w3_ref, aff3_ref, o_ref, *, D):
    # SE attention (radix softmax, r-major permuted weights) + weighted combine +
    # conv3 (1x1) + BN + residual + ReLU, all fused per batch element.
    affa = affa_ref[...]                      # (2, A)
    g = gap_ref[0]                            # (1, D)
    hid = jnp.maximum(
        jnp.dot(g, wse1_ref[...], preferred_element_type=jnp.float32) * affa[0] + affa[1],
        0.0)                                  # (1, A)
    logits = jnp.dot(hid, wse2_ref[...], preferred_element_type=jnp.float32) + bse2_ref[...]
    l0 = logits[:, :D]                        # radix 0 (x_cot branch)
    l1 = logits[:, D:]                        # radix 1 (k branch)
    m = jnp.maximum(l0, l1)
    e0 = jnp.exp(l0 - m)
    e1 = jnp.exp(l1 - m)
    inv = 1.0 / (e0 + e1)
    a0 = e0 * inv
    a1 = e1 * inv                             # (1, D) each

    t = xc_ref[0] * a0 + kk_ref[0] * a1       # radix-weighted combine, (HW, D)
    aff3 = aff3_ref[...]                      # (2, D)
    y = (jnp.dot(t, w3_ref[...], preferred_element_type=jnp.float32) * aff3[0] + aff3[1]
         + sc_ref[0])
    o_ref[0] = jnp.maximum(y, 0.0)


# -------------------------------- parameters --------------------------------

def fold_bn(p, prefix, conv_bias=None, eps=BN_EPS):
    scale = p[prefix + "_g"] / jnp.sqrt(p[prefix + "_v"] + eps)
    shift = p[prefix + "_b"] - p[prefix + "_m"] * scale
    if conv_bias is not None:
        shift = shift + conv_bias * scale
    return scale, shift


def init_params(key, D):
    attn_chs = max(D * RADIX // 4, 32)
    mid = D // 2
    emb_out = KSIZE * KSIZE * D // SHARE_PLANES
    keys = iter(jax.random.split(key, 64))

    def conv(cin, cout):
        return jax.random.normal(next(keys), (cin, cout), jnp.float32) / jnp.sqrt(float(cin))

    p = {}

    def bn(c, prefix):
        p[prefix + "_g"] = 1.0 + 0.1 * jax.random.normal(next(keys), (c,), jnp.float32)
        p[prefix + "_b"] = 0.1 * jax.random.normal(next(keys), (c,), jnp.float32)
        p[prefix + "_m"] = 0.1 * jax.random.normal(next(keys), (c,), jnp.float32)
        p[prefix + "_v"] = 0.5 + 0.5 * jnp.abs(jax.random.normal(next(keys), (c,), jnp.float32))

    p["conv1_w"] = conv(D, D); bn(D, "conv1_bn")
    p["key_w"] = jax.random.normal(next(keys), (NTAP, D), jnp.float32) / 3.0; bn(D, "key_bn")
    p["emb1_w"] = conv(2 * D, mid); bn(mid, "emb1_bn")
    p["emb2_w"] = conv(mid, emb_out)
    p["emb2_b"] = 0.1 * jax.random.normal(next(keys), (emb_out,), jnp.float32)
    p["gn_g"] = 1.0 + 0.1 * jax.random.normal(next(keys), (emb_out,), jnp.float32)
    p["gn_b"] = 0.1 * jax.random.normal(next(keys), (emb_out,), jnp.float32)
    p["conv1x1_w"] = conv(D, D); bn(D, "conv1x1_bn")
    bn(D, "cot_bn")
    p["se1_w"] = conv(D, attn_chs)
    p["se1_b"] = 0.1 * jax.random.normal(next(keys), (attn_chs,), jnp.float32)
    bn(attn_chs, "se1_bn")
    p["se2_w"] = conv(attn_chs, RADIX * D)
    p["se2_b"] = 0.1 * jax.random.normal(next(keys), (RADIX * D,), jnp.float32)
    p["conv3_w"] = conv(D, D); bn(D, "conv3_bn")
    return p


# ---------------------------------- forward ----------------------------------

def _kmajor(vec, Cw):
    # channel (cw*9 + k)  ->  (k*Cw + cw)
    return vec.reshape(Cw, NTAP).T.reshape(-1)


def cot_bottleneck_forward(params, x_nchw):
    B, D, H, W = x_nchw.shape
    HW = H * W
    Cw = D // SHARE_PLANES
    mid = D // 2
    A = max(D * RADIX // 4, 32)
    CE = NTAP * Cw                      # embed output channels

    x_flat = jnp.transpose(x_nchw, (0, 2, 3, 1)).reshape(B, HW, D).astype(jnp.float32)

    # ---- fold BatchNorms, pre-permute weight matrices (host side, weights only) ----
    c1_s, c1_b = fold_bn(params, "conv1_bn")
    k_s, k_b = fold_bn(params, "key_bn")
    e1_s, e1_b = fold_bn(params, "emb1_bn")
    v_s, v_b = fold_bn(params, "conv1x1_bn")
    cot_s, cot_b = fold_bn(params, "cot_bn")
    se1_s, se1_b = fold_bn(params, "se1_bn", conv_bias=params["se1_b"])
    c3_s, c3_b = fold_bn(params, "conv3_bn")

    affd = jnp.stack([c1_s, c1_b, k_s, k_b, v_s, v_b, cot_s, cot_b], axis=0)    # (8, D)
    affm = jnp.stack([e1_s, e1_b], axis=0)                                      # (2, mid)
    affe = jnp.stack([_kmajor(params["emb2_b"], Cw),
                      _kmajor(params["gn_g"], Cw),
                      _kmajor(params["gn_b"], Cw)], axis=0)                     # (3, CE)
    affa = jnp.stack([se1_s, se1_b], axis=0)                                    # (2, A)
    aff3 = jnp.stack([c3_s, c3_b], axis=0)                                      # (2, D)

    emb1_wh = params["emb1_w"][:D]                    # (D, mid) -- h half of cat(h, k)
    emb1_wk = params["emb1_w"][D:]                    # (D, mid) -- k half
    emb2_w = params["emb2_w"].reshape(mid, Cw, NTAP).transpose(0, 2, 1).reshape(mid, CE)
    se2_w = params["se2_w"].reshape(A, D, RADIX).transpose(0, 2, 1).reshape(A, RADIX * D)
    se2_b = params["se2_b"].reshape(D, RADIX).T.reshape(1, RADIX * D)

    # compile-time constant 0/1 matrices (shift / group-indicator / share-expansion)
    P = jnp.asarray(_shift_matrices(H, W))
    Mg_np, MgT_np = _group_matrices(Cw)
    Mg, MgT = jnp.asarray(Mg_np), jnp.asarray(MgT_np)
    E = jnp.asarray(_expand_matrix(Cw, D))

    par = pltpu.CompilerParams(dimension_semantics=("parallel",))

    def full2(shape):
        return pl.BlockSpec(shape, lambda b: (0, 0))

    xcot, kk, gap = pl.pallas_call(
        functools.partial(_trans_kernel, HW=HW, D=D),
        out_shape=(jax.ShapeDtypeStruct((B, HW, D), jnp.float32),
                   jax.ShapeDtypeStruct((B, HW, D), jnp.float32),
                   jax.ShapeDtypeStruct((B, 1, D), jnp.float32)),
        grid=(B,),
        in_specs=[
            pl.BlockSpec((1, HW, D), lambda b: (b, 0, 0)),          # x
            pl.BlockSpec((NTAP, HW, HW), lambda b: (0, 0, 0)),      # shift matrices
            full2((D, D)),                                          # conv1_w
            full2((NTAP, D)),                                       # key depthwise weights
            full2((D, mid)),                                        # emb1 (h half)
            full2((D, mid)),                                        # emb1 (k half)
            full2((mid, CE)),                                       # emb2 (k-major)
            full2((D, D)),                                          # conv1x1_w
            full2((CE, Cw)),                                        # group indicator
            full2((Cw, CE)),                                        # group indicator^T
            full2((CE, NTAP * D)),                                  # share expansion
            full2((8, D)),                                          # folded BN affines (D)
            full2((2, mid)),                                        # folded BN affines (mid)
            full2((3, CE)),                                         # emb2 bias + GN affine
        ],
        out_specs=(pl.BlockSpec((1, HW, D), lambda b: (b, 0, 0)),
                   pl.BlockSpec((1, HW, D), lambda b: (b, 0, 0)),
                   pl.BlockSpec((1, 1, D), lambda b: (b, 0, 0))),
        compiler_params=par,
    )(x_flat, P, params["conv1_w"], params["key_w"], emb1_wh, emb1_wk, emb2_w,
      params["conv1x1_w"], Mg, MgT, E, affd, affm, affe)

    y = pl.pallas_call(
        functools.partial(_finalize_kernel, D=D),
        out_shape=jax.ShapeDtypeStruct((B, HW, D), jnp.float32),
        grid=(B,),
        in_specs=[
            pl.BlockSpec((1, HW, D), lambda b: (b, 0, 0)),          # x_cot
            pl.BlockSpec((1, HW, D), lambda b: (b, 0, 0)),          # k
            pl.BlockSpec((1, 1, D), lambda b: (b, 0, 0)),           # gap
            pl.BlockSpec((1, HW, D), lambda b: (b, 0, 0)),          # shortcut
            full2((D, A)),                                          # se1_w
            full2((2, A)),                                          # se1 folded BN (+bias)
            full2((A, RADIX * D)),                                  # se2_w (radix-major)
            full2((1, RADIX * D)),                                  # se2 bias (radix-major)
            full2((D, D)),                                          # conv3_w
            full2((2, D)),                                          # conv3 folded BN
        ],
        out_specs=pl.BlockSpec((1, HW, D), lambda b: (b, 0, 0)),
        compiler_params=par,
    )(xcot, kk, gap, x_flat, params["se1_w"], affa, se2_w, se2_b,
      params["conv3_w"], aff3)

    return y.reshape(B, H, W, D).transpose(0, 3, 1, 2)


# ------------------------------------ main ------------------------------------

if __name__ == "__main__":
    B, D, H, W = 2, 32, 8, 8          # in_chs = out_chs = bottleneck_chs = 32
    key = jax.random.PRNGKey(0)
    kx, kp = jax.random.split(key)
    x = jax.random.normal(kx, (B, D, H, W), jnp.float32)
    params = init_params(kp, D)

    fwd = jax.jit(cot_bottleneck_forward)
    y = fwd(params, x)
    jax.block_until_ready(y)

    assert y.shape == (B, D, H, W)
    assert bool(jnp.all(jnp.isfinite(y)))
    print("KERNEL_OK")
</pallas_src>

<mosaic_0001>
module attributes {stable_mosaic.version = 11 : i64} {
  func.func @_finalize_kernel(%arg0: i32, %arg1: memref<1x64x32xf32, #tpu.memory_space<vmem>>, %arg2: memref<1x64x32xf32, #tpu.memory_space<vmem>>, %arg3: memref<1x1x32xf32, #tpu.memory_space<vmem>>, %arg4: memref<1x64x32xf32, #tpu.memory_space<vmem>>, %arg5: memref<32x32xf32, #tpu.memory_space<vmem>>, %arg6: memref<2x32xf32, #tpu.memory_space<vmem>>, %arg7: memref<32x64xf32, #tpu.memory_space<vmem>>, %arg8: memref<1x64xf32, #tpu.memory_space<vmem>>, %arg9: memref<32x32xf32, #tpu.memory_space<vmem>>, %arg10: memref<2x32xf32, #tpu.memory_space<vmem>>, %arg11: memref<1x64x32xf32, #tpu.memory_space<vmem>>) attributes {dimension_semantics = [#tpu.dimension_semantics<parallel>], iteration_bounds = array<i64: 2>, scalar_prefetch = 0 : i64, scratch_operands = 0 : i64, tpu.core_type = #tpu.core_type<tc>, window_params = [{transform_indices = @transform_0, window_bounds = array<i64: 1, 64, 32>}, {transform_indices = @transform_1, window_bounds = array<i64: 1, 64, 32>}, {transform_indices = @transform_2, window_bounds = array<i64: 1, 1, 32>}, {transform_indices = @transform_3, window_bounds = array<i64: 1, 64, 32>}, {pipeline_mode = #tpu.pipeline_mode<synchronous>, transform_indices = @transform_4, window_bounds = array<i64: 32, 32>}, {pipeline_mode = #tpu.pipeline_mode<synchronous>, transform_indices = @transform_5, window_bounds = array<i64: 2, 32>}, {pipeline_mode = #tpu.pipeline_mode<synchronous>, transform_indices = @transform_6, window_bounds = array<i64: 32, 64>}, {pipeline_mode = #tpu.pipeline_mode<synchronous>, transform_indices = @transform_7, window_bounds = array<i64: 1, 64>}, {pipeline_mode = #tpu.pipeline_mode<synchronous>, transform_indices = @transform_8, window_bounds = array<i64: 32, 32>}, {pipeline_mode = #tpu.pipeline_mode<synchronous>, transform_indices = @transform_9, window_bounds = array<i64: 2, 32>}, {transform_indices = @transform_10, window_bounds = array<i64: 1, 64, 32>}]} {
    %c0 = arith.constant 0 : index
    %c0_0 = arith.constant 0 : index
    %0 = vector.load %arg6[%c0, %c0_0] : memref<2x32xf32, #tpu.memory_space<vmem>>, vector<2x32xf32>
    %c0_1 = arith.constant 0 : index
    %c0_2 = arith.constant 0 : index
    %c0_3 = arith.constant 0 : index
    %1 = vector.load %arg3[%c0_1, %c0_2, %c0_3] : memref<1x1x32xf32, #tpu.memory_space<vmem>>, vector<1x1x32xf32>
    %2 = vector.shape_cast %1 : vector<1x1x32xf32> to vector<1x32xf32>
    %c0_4 = arith.constant 0 : index
    %c0_5 = arith.constant 0 : index
    %3 = vector.load %arg5[%c0_4, %c0_5] : memref<32x32xf32, #tpu.memory_space<vmem>>, vector<32x32xf32>
    %cst = arith.constant dense<0.000000e+00> : vector<1x32xf32>
    %4 = tpu.matmul %2, %3, %cst {dimension_numbers = #tpu.dot_dimension_numbers<[1], [0], [0], [1], [0, 0, 1, 1], [], []>} : vector<1x32xf32>, vector<32x32xf32>, vector<1x32xf32> -> vector<1x32xf32>
    %5 = vector.extract_strided_slice %0 {offsets = [0, 0], sizes = [1, 32], strides = [1, 1]} : vector<2x32xf32> to vector<1x32xf32>
    %6 = vector.shape_cast %5 : vector<1x32xf32> to vector<32xf32>
    %7 = vector.shape_cast %6 : vector<32xf32> to vector<1x32xf32>
    %8 = arith.mulf %4, %7 : vector<1x32xf32>
    %9 = vector.extract_strided_slice %0 {offsets = [1, 0], sizes = [1, 32], strides = [1, 1]} : vector<2x32xf32> to vector<1x32xf32>
    %10 = vector.shape_cast %9 : vector<1x32xf32> to vector<32xf32>
    %11 = vector.shape_cast %10 : vector<32xf32> to vector<1x32xf32>
    %12 = arith.addf %8, %11 : vector<1x32xf32>
    %cst_6 = arith.constant 0.000000e+00 : f32
    %13 = vector.broadcast %cst_6 : f32 to vector<1x32xf32>
    %14 = arith.maximumf %12, %13 : vector<1x32xf32>
    %c0_7 = arith.constant 0 : index
    %c0_8 = arith.constant 0 : index
    %15 = vector.load %arg7[%c0_7, %c0_8] : memref<32x64xf32, #tpu.memory_space<vmem>>, vector<32x64xf32>
    %cst_9 = arith.constant dense<0.000000e+00> : vector<1x64xf32>
    %16 = tpu.matmul %14, %15, %cst_9 {dimension_numbers = #tpu.dot_dimension_numbers<[1], [0], [0], [1], [0, 0, 1, 1], [], []>} : vector<1x32xf32>, vector<32x64xf32>, vector<1x64xf32> -> vector<1x64xf32>
    %c0_10 = arith.constant 0 : index
    %c0_11 = arith.constant 0 : index
    %17 = vector.load %arg8[%c0_10, %c0_11] : memref<1x64xf32, #tpu.memory_space<vmem>>, vector<1x64xf32>
    %18 = arith.addf %16, %17 : vector<1x64xf32>
    %19 = vector.extract_strided_slice %18 {offsets = [0, 0], sizes = [1, 32], strides = [1, 1]} : vector<1x64xf32> to vector<1x32xf32>
    %20 = vector.extract_strided_slice %18 {offsets = [0, 32], sizes = [1, 32], strides = [1, 1]} : vector<1x64xf32> to vector<1x32xf32>
    %21 = arith.maximumf %19, %20 : vector<1x32xf32>
    %22 = arith.subf %19, %21 : vector<1x32xf32>
    %23 = math.exp %22 : vector<1x32xf32>
    %24 = arith.subf %20, %21 : vector<1x32xf32>
    %25 = math.exp %24 : vector<1x32xf32>
    %26 = arith.addf %23, %25 : vector<1x32xf32>
    %cst_12 = arith.constant 1.000000e+00 : f32
    %27 = vector.broadcast %cst_12 : f32 to vector<1x32xf32>
    %28 = arith.divf %27, %26 : vector<1x32xf32>
    %29 = arith.mulf %23, %28 : vector<1x32xf32>
    %30 = arith.mulf %25, %28 : vector<1x32xf32>
    %c0_13 = arith.constant 0 : index
    %c0_14 = arith.constant 0 : index
    %c0_15 = arith.constant 0 : index
    %31 = vector.load %arg1[%c0_13, %c0_14, %c0_15] : memref<1x64x32xf32, #tpu.memory_space<vmem>>, vector<1x64x32xf32>
    %32 = vector.shape_cast %31 : vector<1x64x32xf32> to vector<64x32xf32>
    %33 = vector.broadcast %29 : vector<1x32xf32> to vector<64x32xf32>
    %34 = arith.mulf %32, %33 : vector<64x32xf32>
    %c0_16 = arith.constant 0 : index
    %c0_17 = arith.constant 0 : index
    %c0_18 = arith.constant 0 : index
    %35 = vector.load %arg2[%c0_16, %c0_17, %c0_18] : memref<1x64x32xf32, #tpu.memory_space<vmem>>, vector<1x64x32xf32>
    %36 = vector.shape_cast %35 : vector<1x64x32xf32> to vector<64x32xf32>
    %37 = vector.broadcast %30 : vector<1x32xf32> to vector<64x32xf32>
    %38 = arith.mulf %36, %37 : vector<64x32xf32>
    %39 = arith.addf %34, %38 : vector<64x32xf32>
    %c0_19 = arith.constant 0 : index
    %c0_20 = arith.constant 0 : index
    %40 = vector.load %arg10[%c0_19, %c0_20] : memref<2x32xf32, #tpu.memory_space<vmem>>, vector<2x32xf32>
    %c0_21 = arith.constant 0 : index
    %c0_22 = arith.constant 0 : index
    %41 = vector.load %arg9[%c0_21, %c0_22] : memref<32x32xf32, #tpu.memory_space<vmem>>, vector<32x32xf32>
    %cst_23 = arith.constant dense<0.000000e+00> : vector<64x32xf32>
    %42 = tpu.matmul %39, %41, %cst_23 {dimension_numbers = #tpu.dot_dimension_numbers<[1], [0], [0], [1], [0, 0, 1, 1], [], []>} : vector<64x32xf32>, vector<32x32xf32>, vector<64x32xf32> -> vector<64x32xf32>
    %43 = vector.extract_strided_slice %40 {offsets = [0, 0], sizes = [1, 32], strides = [1, 1]} : vector<2x32xf32> to vector<1x32xf32>
    %44 = vector.shape_cast %43 : vector<1x32xf32> to vector<32xf32>
    %45 = vector.shape_cast %44 : vector<32xf32> to vector<1x32xf32>
    %46 = vector.broadcast %45 : vector<1x32xf32> to vector<64x32xf32>
    %47 = arith.mulf %42, %46 : vector<64x32xf32>
    %48 = vector.extract_strided_slice %40 {offsets = [1, 0], sizes = [1, 32], strides = [1, 1]} : vector<2x32xf32> to vector<1x32xf32>
    %49 = vector.shape_cast %48 : vector<1x32xf32> to vector<32xf32>
    %50 = vector.shape_cast %49 : vector<32xf32> to vector<1x32xf32>
    %51 = vector.broadcast %50 : vector<1x32xf32> to vector<64x32xf32>
    %52 = arith.addf %47, %51 : vector<64x32xf32>
    %c0_24 = arith.constant 0 : index
    %c0_25 = arith.constant 0 : index
    %c0_26 = arith.constant 0 : index
    %53 = vector.load %arg4[%c0_24, %c0_25, %c0_26] : memref<1x64x32xf32, #tpu.memory_space<vmem>>, vector<1x64x32xf32>
    %54 = vector.shape_cast %53 : vector<1x64x32xf32> to vector<64x32xf32>
    %55 = arith.addf %52, %54 : vector<64x32xf32>
    %cst_27 = arith.constant 0.000000e+00 : f32
    %56 = vector.broadcast %cst_27 : f32 to vector<64x32xf32>
    %57 = arith.maximumf %55, %56 : vector<64x32xf32>
    %c0_28 = arith.constant 0 : index
    %c0_29 = arith.constant 0 : index
    %c0_30 = arith.constant 0 : index
    %58 = vector.load %arg11[%c0_28, %c0_29, %c0_30] : memref<1x64x32xf32, #tpu.memory_space<vmem>>, vector<1x64x32xf32>
    %59 = vector.shape_cast %58 : vector<1x64x32xf32> to vector<64x32xf32>
    %60 = vector.shape_cast %57 : vector<64x32xf32> to vector<1x64x32xf32>
    tpu.vector_store %arg11[%c0_28, %c0_29, %c0_30], %60 {strides = array<i32>} : memref<1x64x32xf32, #tpu.memory_space<vmem>>, vector<1x64x32xf32>,
    return
  }
  func.func @transform_0(%arg0: i32) -> (i32, i32, i32) {
    %c0_i32 = arith.constant 0 : i32
    %c0_i32_0 = arith.constant 0 : i32
    %c0_i32_1 = arith.constant 0 : i32
    return %arg0, %c0_i32, %c0_i32_0 : i32, i32, i32
  }
  func.func @transform_1(%arg0: i32) -> (i32, i32, i32) {
    %c0_i32 = arith.constant 0 : i32
    %c0_i32_0 = arith.constant 0 : i32
    %c0_i32_1 = arith.constant 0 : i32
    return %arg0, %c0_i32, %c0_i32_0 : i32, i32, i32
  }
  func.func @transform_2(%arg0: i32) -> (i32, i32, i32) {
    %c0_i32 = arith.constant 0 : i32
    %c0_i32_0 = arith.constant 0 : i32
    %c0_i32_1 = arith.constant 0 : i32
    return %arg0, %c0_i32, %c0_i32_0 : i32, i32, i32
  }
  func.func @transform_3(%arg0: i32) -> (i32, i32, i32) {
    %c0_i32 = arith.constant 0 : i32
    %c0_i32_0 = arith.constant 0 : i32
    %c0_i32_1 = arith.constant 0 : i32
    return %arg0, %c0_i32, %c0_i32_0 : i32, i32, i32
  }
  func.func @transform_4(%arg0: i32) -> (i32, i32) {
    %c0_i32 = arith.constant 0 : i32
    %c0_i32_0 = arith.constant 0 : i32
    %c0_i32_1 = arith.constant 0 : i32
    return %c0_i32, %c0_i32_0 : i32, i32
  }
  func.func @transform_5(%arg0: i32) -> (i32, i32) {
    %c0_i32 = arith.constant 0 : i32
    %c0_i32_0 = arith.constant 0 : i32
    %c0_i32_1 = arith.constant 0 : i32
    return %c0_i32, %c0_i32_0 : i32, i32
  }
  func.func @transform_6(%arg0: i32) -> (i32, i32) {
    %c0_i32 = arith.constant 0 : i32
    %c0_i32_0 = arith.constant 0 : i32
    %c0_i32_1 = arith.constant 0 : i32
    return %c0_i32, %c0_i32_0 : i32, i32
  }
  func.func @transform_7(%arg0: i32) -> (i32, i32) {
    %c0_i32 = arith.constant 0 : i32
    %c0_i32_0 = arith.constant 0 : i32
    %c0_i32_1 = arith.constant 0 : i32
    return %c0_i32, %c0_i32_0 : i32, i32
  }
  func.func @transform_8(%arg0: i32) -> (i32, i32) {
    %c0_i32 = arith.constant 0 : i32
    %c0_i32_0 = arith.constant 0 : i32
    %c0_i32_1 = arith.constant 0 : i32
    return %c0_i32, %c0_i32_0 : i32, i32
  }
  func.func @transform_9(%arg0: i32) -> (i32, i32) {
    %c0_i32 = arith.constant 0 : i32
    %c0_i32_0 = arith.constant 0 : i32
    %c0_i32_1 = arith.constant 0 : i32
    return %c0_i32, %c0_i32_0 : i32, i32
  }
  func.func @transform_10(%arg0: i32) -> (i32, i32, i32) {
    %c0_i32 = arith.constant 0 : i32
    %c0_i32_0 = arith.constant 0 : i32
    %c0_i32_1 = arith.constant 0 : i32
    return %arg0, %c0_i32, %c0_i32_0 : i32, i32, i32
  }
}

module attributes {stable_mosaic.version = 11 : i64} {
  func.func @_trans_kernel(%arg0: i32, %arg1: memref<1x64x32xf32, #tpu.memory_space<vmem>>, %arg2: memref<9x64x64xf32, #tpu.memory_space<vmem>>, %arg3: memref<32x32xf32, #tpu.memory_space<vmem>>, %arg4: memref<9x32xf32, #tpu.memory_space<vmem>>, %arg5: memref<32x16xf32, #tpu.memory_space<vmem>>, %arg6: memref<32x16xf32, #tpu.memory_space<vmem>>, %arg7: memref<16x36xf32, #tpu.memory_space<vmem>>, %arg8: memref<32x32xf32, #tpu.memory_space<vmem>>, %arg9: memref<36x4xf32, #tpu.memory_space<vmem>>, %arg10: memref<4x36xf32, #tpu.memory_space<vmem>>, %arg11: memref<36x288xf32, #tpu.memory_space<vmem>>, %arg12: memref<8x32xf32, #tpu.memory_space<vmem>>, %arg13: memref<2x16xf32, #tpu.memory_space<vmem>>, %arg14: memref<3x36xf32, #tpu.memory_space<vmem>>, %arg15: memref<1x64x32xf32, #tpu.memory_space<vmem>>, %arg16: memref<1x64x32xf32, #tpu.memory_space<vmem>>, %arg17: memref<1x1x32xf32, #tpu.memory_space<vmem>>) attributes {dimension_semantics = [#tpu.dimension_semantics<parallel>], iteration_bounds = array<i64: 2>, scalar_prefetch = 0 : i64, scratch_operands = 0 : i64, tpu.core_type = #tpu.core_type<tc>, window_params = [{transform_indices = @transform_0, window_bounds = array<i64: 1, 64, 32>}, {pipeline_mode = #tpu.pipeline_mode<synchronous>, transform_indices = @transform_1, window_bounds = array<i64: 9, 64, 64>}, {pipeline_mode = #tpu.pipeline_mode<synchronous>, transform_indices = @transform_2, window_bounds = array<i64: 32, 32>}, {pipeline_mode = #tpu.pipeline_mode<synchronous>, transform_indices = @transform_3, window_bounds = array<i64: 9, 32>}, {pipeline_mode = #tpu.pipeline_mode<synchronous>, transform_indices = @transform_4, window_bounds = array<i64: 32, 16>}, {pipeline_mode = #tpu.pipeline_mode<synchronous>, transform_indices = @transform_5, window_bounds = array<i64: 32, 16>}, {pipeline_mode = #tpu.pipeline_mode<synchronous>, transform_indices = @transform_6, window_bounds = array<i64: 16, 36>}, {pipeline_mode = #tpu.pipeline_mode<synchronous>, transform_indices = @transform_7, window_bounds = array<i64: 32, 32>}, {pipeline_mode = #tpu.pipeline_mode<synchronous>, transform_indices = @transform_8, window_bounds = array<i64: 36, 4>}, {pipeline_mode = #tpu.pipeline_mode<synchronous>, transform_indices = @transform_9, window_bounds = array<i64: 4, 36>}, {pipeline_mode = #tpu.pipeline_mode<synchronous>, transform_indices = @transform_10, window_bounds = array<i64: 36, 288>}, {pipeline_mode = #tpu.pipeline_mode<synchronous>, transform_indices = @transform_11, window_bounds = array<i64: 8, 32>}, {pipeline_mode = #tpu.pipeline_mode<synchronous>, transform_indices = @transform_12, window_bounds = array<i64: 2, 16>}, {pipeline_mode = #tpu.pipeline_mode<synchronous>, transform_indices = @transform_13, window_bounds = array<i64: 3, 36>}, {transform_indices = @transform_14, window_bounds = array<i64: 1, 64, 32>}, {transform_indices = @transform_15, window_bounds = array<i64: 1, 64, 32>}, {transform_indices = @transform_16, window_bounds = array<i64: 1, 1, 32>}]} {
    %c0 = arith.constant 0 : index
    %c0_0 = arith.constant 0 : index
    %0 = vector.load %arg12[%c0, %c0_0] : memref<8x32xf32, #tpu.memory_space<vmem>>, vector<8x32xf32>
    %1 = vector.extract_strided_slice %0 {offsets = [0, 0], sizes = [1, 32], strides = [1, 1]} : vector<8x32xf32> to vector<1x32xf32>
    %2 = vector.shape_cast %1 : vector<1x32xf32> to vector<32xf32>
    %3 = vector.extract_strided_slice %0 {offsets = [1, 0], sizes = [1, 32], strides = [1, 1]} : vector<8x32xf32> to vector<1x32xf32>
    %4 = vector.shape_cast %3 : vector<1x32xf32> to vector<32xf32>
    %5 = vector.extract_strided_slice %0 {offsets = [2, 0], sizes = [1, 32], strides = [1, 1]} : vector<8x32xf32> to vector<1x32xf32>
    %6 = vector.shape_cast %5 : vector<1x32xf32> to vector<32xf32>
    %7 = vector.extract_strided_slice %0 {offsets = [3, 0], sizes = [1, 32], strides = [1, 1]} : vector<8x32xf32> to vector<1x32xf32>
    %8 = vector.shape_cast %7 : vector<1x32xf32> to vector<32xf32>
    %9 = vector.extract_strided_slice %0 {offsets = [4, 0], sizes = [1, 32], strides = [1, 1]} : vector<8x32xf32> to vector<1x32xf32>
    %10 = vector.shape_cast %9 : vector<1x32xf32> to vector<32xf32>
    %11 = vector.extract_strided_slice %0 {offsets = [5, 0], sizes = [1, 32], strides = [1, 1]} : vector<8x32xf32> to vector<1x32xf32>
    %12 = vector.shape_cast %11 : vector<1x32xf32> to vector<32xf32>
    %13 = vector.extract_strided_slice %0 {offsets = [6, 0], sizes = [1, 32], strides = [1, 1]} : vector<8x32xf32> to vector<1x32xf32>
    %14 = vector.shape_cast %13 : vector<1x32xf32> to vector<32xf32>
    %15 = vector.extract_strided_slice %0 {offsets = [7, 0], sizes = [1, 32], strides = [1, 1]} : vector<8x32xf32> to vector<1x32xf32>
    %16 = vector.shape_cast %15 : vector<1x32xf32> to vector<32xf32>
    %c0_1 = arith.constant 0 : index
    %c0_2 = arith.constant 0 : index
    %17 = vector.load %arg13[%c0_1, %c0_2] : memref<2x16xf32, #tpu.memory_space<vmem>>, vector<2x16xf32>
    %18 = vector.extract_strided_slice %17 {offsets = [0, 0], sizes = [1, 16], strides = [1, 1]} : vector<2x16xf32> to vector<1x16xf32>
    %19 = vector.shape_cast %18 : vector<1x16xf32> to vector<16xf32>
    %20 = vector.extract_strided_slice %17 {offsets = [1, 0], sizes = [1, 16], strides = [1, 1]} : vector<2x16xf32> to vector<1x16xf32>
    %21 = vector.shape_cast %20 : vector<1x16xf32> to vector<16xf32>
    %c0_3 = arith.constant 0 : index
    %c0_4 = arith.constant 0 : index
    %22 = vector.load %arg14[%c0_3, %c0_4] : memref<3x36xf32, #tpu.memory_space<vmem>>, vector<3x36xf32>
    %23 = vector.extract_strided_slice %22 {offsets = [0, 0], sizes = [1, 36], strides = [1, 1]} : vector<3x36xf32> to vector<1x36xf32>
    %24 = vector.shape_cast %23 : vector<1x36xf32> to vector<36xf32>
    %25 = vector.extract_strided_slice %22 {offsets = [1, 0], sizes = [1, 36], strides = [1, 1]} : vector<3x36xf32> to vector<1x36xf32>
    %26 = vector.shape_cast %25 : vector<1x36xf32> to vector<36xf32>
    %27 = vector.extract_strided_slice %22 {offsets = [2, 0], sizes = [1, 36], strides = [1, 1]} : vector<3x36xf32> to vector<1x36xf32>
    %28 = vector.shape_cast %27 : vector<1x36xf32> to vector<36xf32>
    %c0_5 = arith.constant 0 : index
    %c0_6 = arith.constant 0 : index
    %c0_7 = arith.constant 0 : index
    %29 = vector.load %arg1[%c0_5, %c0_6, %c0_7] : memref<1x64x32xf32, #tpu.memory_space<vmem>>, vector<1x64x32xf32>
    %30 = vector.shape_cast %29 : vector<1x64x32xf32> to vector<64x32xf32>
    %c0_8 = arith.constant 0 : index
    %c0_9 = arith.constant 0 : index
    %31 = vector.load %arg3[%c0_8, %c0_9] : memref<32x32xf32, #tpu.memory_space<vmem>>, vector<32x32xf32>
    %cst = arith.constant dense<0.000000e+00> : vector<64x32xf32>
    %32 = tpu.matmul %30, %31, %cst {dimension_numbers = #tpu.dot_dimension_numbers<[1], [0], [0], [1], [0, 0, 1, 1], [], []>} : vector<64x32xf32>, vector<32x32xf32>, vector<64x32xf32> -> vector<64x32xf32>
    %33 = vector.shape_cast %2 : vector<32xf32> to vector<1x32xf32>
    %34 = vector.broadcast %33 : vector<1x32xf32> to vector<64x32xf32>
    %35 = arith.mulf %32, %34 : vector<64x32xf32>
    %36 = vector.shape_cast %4 : vector<32xf32> to vector<1x32xf32>
    %37 = vector.broadcast %36 : vector<1x32xf32> to vector<64x32xf32>
    %38 = arith.addf %35, %37 : vector<64x32xf32>
    %cst_10 = arith.constant 0.000000e+00 : f32
    %39 = vector.broadcast %cst_10 : f32 to vector<64x32xf32>
    %40 = arith.maximumf %38, %39 : vector<64x32xf32>
    %c0_11 = arith.constant 0 : index
    %c0_12 = arith.constant 0 : index
    %41 = vector.load %arg4[%c0_11, %c0_12] : memref<9x32xf32, #tpu.memory_space<vmem>>, vector<9x32xf32>
    %cst_13 = arith.constant 0.000000e+00 : f32
    %42 = vector.broadcast %cst_13 : f32 to vector<64x32xf32>
    %c0_14 = arith.constant 0 : index
    %c0_15 = arith.constant 0 : index
    %c0_16 = arith.constant 0 : index
    %43 = vector.load %arg2[%c0_14, %c0_15, %c0_16] : memref<9x64x64xf32, #tpu.memory_space<vmem>>, vector<1x64x64xf32>
    %44 = vector.shape_cast %43 : vector<1x64x64xf32> to vector<64x64xf32>
    %cst_17 = arith.constant dense<0.000000e+00> : vector<64x32xf32>
    %45 = tpu.matmul %44, %40, %cst_17 {dimension_numbers = #tpu.dot_dimension_numbers<[1], [0], [0], [1], [0, 0, 1, 1], [], []>} : vector<64x64xf32>, vector<64x32xf32>, vector<64x32xf32> -> vector<64x32xf32>
    %46 = vector.extract_strided_slice %41 {offsets = [0, 0], sizes = [1, 32], strides = [1, 1]} : vector<9x32xf32> to vector<1x32xf32>
    %47 = vector.shape_cast %46 : vector<1x32xf32> to vector<32xf32>
    %48 = vector.shape_cast %47 : vector<32xf32> to vector<1x32xf32>
    %49 = vector.broadcast %48 : vector<1x32xf32> to vector<64x32xf32>
    %50 = arith.mulf %45, %49 : vector<64x32xf32>
    %51 = arith.addf %42, %50 : vector<64x32xf32>
    %c1 = arith.constant 1 : index
    %c0_18 = arith.constant 0 : index
    %c0_19 = arith.constant 0 : index
    %52 = vector.load %arg2[%c1, %c0_18, %c0_19] : memref<9x64x64xf32, #tpu.memory_space<vmem>>, vector<1x64x64xf32>
    %53 = vector.shape_cast %52 : vector<1x64x64xf32> to vector<64x64xf32>
    %cst_20 = arith.constant dense<0.000000e+00> : vector<64x32xf32>
    %54 = tpu.matmul %53, %40, %cst_20 {dimension_numbers = #tpu.dot_dimension_numbers<[1], [0], [0], [1], [0, 0, 1, 1], [], []>} : vector<64x64xf32>, vector<64x32xf32>, vector<64x32xf32> -> vector<64x32xf32>
    %55 = vector.extract_strided_slice %41 {offsets = [1, 0], sizes = [1, 32], strides = [1, 1]} : vector<9x32xf32> to vector<1x32xf32>
    %56 = vector.shape_cast %55 : vector<1x32xf32> to vector<32xf32>
    %57 = vector.shape_cast %56 : vector<32xf32> to vector<1x32xf32>
    %58 = vector.broadcast %57 : vector<1x32xf32> to vector<64x32xf32>
    %59 = arith.mulf %54, %58 : vector<64x32xf32>
    %60 = arith.addf %51, %59 : vector<64x32xf32>
    %c2 = arith.constant 2 : index
    %c0_21 = arith.constant 0 : index
    %c0_22 = arith.constant 0 : index
    %61 = vector.load %arg2[%c2, %c0_21, %c0_22] : memref<9x64x64xf32, #tpu.memory_space<vmem>>, vector<1x64x64xf32>
    %62 = vector.shape_cast %61 : vector<1x64x64xf32> to vector<64x64xf32>
    %cst_23 = arith.constant dense<0.000000e+00> : vector<64x32xf32>
    %63 = tpu.matmul %62, %40, %cst_23 {dimension_numbers = #tpu.dot_dimension_numbers<[1], [0], [0], [1], [0, 0, 1, 1], [], []>} : vector<64x64xf32>, vector<64x32xf32>, vector<64x32xf32> -> vector<64x32xf32>
    %64 = vector.extract_strided_slice %41 {offsets = [2, 0], sizes = [1, 32], strides = [1, 1]} : vector<9x32xf32> to vector<1x32xf32>
    %65 = vector.shape_cast %64 : vector<1x32xf32> to vector<32xf32>
    %66 = vector.shape_cast %65 : vector<32xf32> to vector<1x32xf32>
    %67 = vector.broadcast %66 : vector<1x32xf32> to vector<64x32xf32>
    %68 = arith.mulf %63, %67 : vector<64x32xf32>
    %69 = arith.addf %60, %68 : vector<64x32xf32>
    %c3 = arith.constant 3 : index
    %c0_24 = arith.constant 0 : index
    %c0_25 = arith.constant 0 : index
    %70 = vector.load %arg2[%c3, %c0_24, %c0_25] : memref<9x64x64xf32, #tpu.memory_space<vmem>>, vector<1x64x64xf32>
    %71 = vector.shape_cast %70 : vector<1x64x64xf32> to vector<64x64xf32>
    %cst_26 = arith.constant dense<0.000000e+00> : vector<64x32xf32>
    %72 = tpu.matmul %71, %40, %cst_26 {dimension_numbers = #tpu.dot_dimension_numbers<[1], [0], [0], [1], [0, 0, 1, 1], [], []>} : vector<64x64xf32>, vector<64x32xf32>, vector<64x32xf32> -> vector<64x32xf32>
    %73 = vector.extract_strided_slice %41 {offsets = [3, 0], sizes = [1, 32], strides = [1, 1]} : vector<9x32xf32> to vector<1x32xf32>
    %74 = vector.shape_cast %73 : vector<1x32xf32> to vector<32xf32>
    %75 = vector.shape_cast %74 : vector<32xf32> to vector<1x32xf32>
    %76 = vector.broadcast %75 : vector<1x32xf32> to vector<64x32xf32>
    %77 = arith.mulf %72, %76 : vector<64x32xf32>
    %78 = arith.addf %69, %77 : vector<64x32xf32>
    %c4 = arith.constant 4 : index
    %c0_27 = arith.constant 0 : index
    %c0_28 = arith.constant 0 : index
    %79 = vector.load %arg2[%c4, %c0_27, %c0_28] : memref<9x64x64xf32, #tpu.memory_space<vmem>>, vector<1x64x64xf32>
    %80 = vector.shape_cast %79 : vector<1x64x64xf32> to vector<64x64xf32>
    %cst_29 = arith.constant dense<0.000000e+00> : vector<64x32xf32>
    %81 = tpu.matmul %80, %40, %cst_29 {dimension_numbers = #tpu.dot_dimension_numbers<[1], [0], [0], [1], [0, 0, 1, 1], [], []>} : vector<64x64xf32>, vector<64x32xf32>, vector<64x32xf32> -> vector<64x32xf32>
    %82 = vector.extract_strided_slice %41 {offsets = [4, 0], sizes = [1, 32], strides = [1, 1]} : vector<9x32xf32> to vector<1x32xf32>
    %83 = vector.shape_cast %82 : vector<1x32xf32> to vector<32xf32>
    %84 = vector.shape_cast %83 : vector<32xf32> to vector<1x32xf32>
    %85 = vector.broadcast %84 : vector<1x32xf32> to vector<64x32xf32>
    %86 = arith.mulf %81, %85 : vector<64x32xf32>
    %87 = arith.addf %78, %86 : vector<64x32xf32>
    %c5 = arith.constant 5 : index
    %c0_30 = arith.constant 0 : index
    %c0_31 = arith.constant 0 : index
    %88 = vector.load %arg2[%c5, %c0_30, %c0_31] : memref<9x64x64xf32, #tpu.memory_space<vmem>>, vector<1x64x64xf32>
    %89 = vector.shape_cast %88 : vector<1x64x64xf32> to vector<64x64xf32>
    %cst_32 = arith.constant dense<0.000000e+00> : vector<64x32xf32>
    %90 = tpu.matmul %89, %40, %cst_32 {dimension_numbers = #tpu.dot_dimension_numbers<[1], [0], [0], [1], [0, 0, 1, 1], [], []>} : vector<64x64xf32>, vector<64x32xf32>, vector<64x32xf32> -> vector<64x32xf32>
    %91 = vector.extract_strided_slice %41 {offsets = [5, 0], sizes = [1, 32], strides = [1, 1]} : vector<9x32xf32> to vector<1x32xf32>
    %92 = vector.shape_cast %91 : vector<1x32xf32> to vector<32xf32>
    %93 = vector.shape_cast %92 : vector<32xf32> to vector<1x32xf32>
    %94 = vector.broadcast %93 : vector<1x32xf32> to vector<64x32xf32>
    %95 = arith.mulf %90, %94 : vector<64x32xf32>
    %96 = arith.addf %87, %95 : vector<64x32xf32>
    %c6 = arith.constant 6 : index
    %c0_33 = arith.constant 0 : index
    %c0_34 = arith.constant 0 : index
    %97 = vector.load %arg2[%c6, %c0_33, %c0_34] : memref<9x64x64xf32, #tpu.memory_space<vmem>>, vector<1x64x64xf32>
    %98 = vector.shape_cast %97 : vector<1x64x64xf32> to vector<64x64xf32>
    %cst_35 = arith.constant dense<0.000000e+00> : vector<64x32xf32>
    %99 = tpu.matmul %98, %40, %cst_35 {dimension_numbers = #tpu.dot_dimension_numbers<[1], [0], [0], [1], [0, 0, 1, 1], [], []>} : vector<64x64xf32>, vector<64x32xf32>, vector<64x32xf32> -> vector<64x32xf32>
    %100 = vector.extract_strided_slice %41 {offsets = [6, 0], sizes = [1, 32], strides = [1, 1]} : vector<9x32xf32> to vector<1x32xf32>
    %101 = vector.shape_cast %100 : vector<1x32xf32> to vector<32xf32>
    %102 = vector.shape_cast %101 : vector<32xf32> to vector<1x32xf32>
    %103 = vector.broadcast %102 : vector<1x32xf32> to vector<64x32xf32>
    %104 = arith.mulf %99, %103 : vector<64x32xf32>
    %105 = arith.addf %96, %104 : vector<64x32xf32>
    %c7 = arith.constant 7 : index
    %c0_36 = arith.constant 0 : index
    %c0_37 = arith.constant 0 : index
    %106 = vector.load %arg2[%c7, %c0_36, %c0_37] : memref<9x64x64xf32, #tpu.memory_space<vmem>>, vector<1x64x64xf32>
    %107 = vector.shape_cast %106 : vector<1x64x64xf32> to vector<64x64xf32>
    %cst_38 = arith.constant dense<0.000000e+00> : vector<64x32xf32>
    %108 = tpu.matmul %107, %40, %cst_38 {dimension_numbers = #tpu.dot_dimension_numbers<[1], [0], [0], [1], [0, 0, 1, 1], [], []>} : vector<64x64xf32>, vector<64x32xf32>, vector<64x32xf32> -> vector<64x32xf32>
    %109 = vector.extract_strided_slice %41 {offsets = [7, 0], sizes = [1, 32], strides = [1, 1]} : vector<9x32xf32> to vector<1x32xf32>
    %110 = vector.shape_cast %109 : vector<1x32xf32> to vector<32xf32>
    %111 = vector.shape_cast %110 : vector<32xf32> to vector<1x32xf32>
    %112 = vector.broadcast %111 : vector<1x32xf32> to vector<64x32xf32>
    %113 = arith.mulf %108, %112 : vector<64x32xf32>
    %114 = arith.addf %105, %113 : vector<64x32xf32>
    %c8 = arith.constant 8 : index
    %c0_39 = arith.constant 0 : index
    %c0_40 = arith.constant 0 : index
    %115 = vector.load %arg2[%c8, %c0_39, %c0_40] : memref<9x64x64xf32, #tpu.memory_space<vmem>>, vector<1x64x64xf32>
    %116 = vector.shape_cast %115 : vector<1x64x64xf32> to vector<64x64xf32>
    %cst_41 = arith.constant dense<0.000000e+00> : vector<64x32xf32>
    %117 = tpu.matmul %116, %40, %cst_41 {dimension_numbers = #tpu.dot_dimension_numbers<[1], [0], [0], [1], [0, 0, 1, 1], [], []>} : vector<64x64xf32>, vector<64x32xf32>, vector<64x32xf32> -> vector<64x32xf32>
    %118 = vector.extract_strided_slice %41 {offsets = [8, 0], sizes = [1, 32], strides = [1, 1]} : vector<9x32xf32> to vector<1x32xf32>
    %119 = vector.shape_cast %118 : vector<1x32xf32> to vector<32xf32>
    %120 = vector.shape_cast %119 : vector<32xf32> to vector<1x32xf32>
    %121 = vector.broadcast %120 : vector<1x32xf32> to vector<64x32xf32>
    %122 = arith.mulf %117, %121 : vector<64x32xf32>
    %123 = arith.addf %114, %122 : vector<64x32xf32>
    %124 = vector.shape_cast %6 : vector<32xf32> to vector<1x32xf32>
    %125 = vector.broadcast %124 : vector<1x32xf32> to vector<64x32xf32>
    %126 = arith.mulf %123, %125 : vector<64x32xf32>
    %127 = vector.shape_cast %8 : vector<32xf32> to vector<1x32xf32>
    %128 = vector.broadcast %127 : vector<1x32xf32> to vector<64x32xf32>
    %129 = arith.addf %126, %128 : vector<64x32xf32>
    %cst_42 = arith.constant 0.000000e+00 : f32
    %130 = vector.broadcast %cst_42 : f32 to vector<64x32xf32>
    %131 = arith.maximumf %129, %130 : vector<64x32xf32>
    %c0_43 = arith.constant 0 : index
    %c0_44 = arith.constant 0 : index
    %132 = vector.load %arg5[%c0_43, %c0_44] : memref<32x16xf32, #tpu.memory_space<vmem>>, vector<32x16xf32>
    %cst_45 = arith.constant dense<0.000000e+00> : vector<64x16xf32>
    %133 = tpu.matmul %40, %132, %cst_45 {dimension_numbers = #tpu.dot_dimension_numbers<[1], [0], [0], [1], [0, 0, 1, 1], [], []>} : vector<64x32xf32>, vector<32x16xf32>, vector<64x16xf32> -> vector<64x16xf32>
    %c0_46 = arith.constant 0 : index
    %c0_47 = arith.constant 0 : index
    %134 = vector.load %arg6[%c0_46, %c0_47] : memref<32x16xf32, #tpu.memory_space<vmem>>, vector<32x16xf32>
    %cst_48 = arith.constant dense<0.000000e+00> : vector<64x16xf32>
    %135 = tpu.matmul %131, %134, %cst_48 {dimension_numbers = #tpu.dot_dimension_numbers<[1], [0], [0], [1], [0, 0, 1, 1], [], []>} : vector<64x32xf32>, vector<32x16xf32>, vector<64x16xf32> -> vector<64x16xf32>
    %136 = arith.addf %133, %135 : vector<64x16xf32>
    %137 = vector.shape_cast %19 : vector<16xf32> to vector<1x16xf32>
    %138 = vector.broadcast %137 : vector<1x16xf32> to vector<64x16xf32>
    %139 = arith.mulf %136, %138 : vector<64x16xf32>
    %140 = vector.shape_cast %21 : vector<16xf32> to vector<1x16xf32>
    %141 = vector.broadcast %140 : vector<1x16xf32> to vector<64x16xf32>
    %142 = arith.addf %139, %141 : vector<64x16xf32>
    %cst_49 = arith.constant 0.000000e+00 : f32
    %143 = vector.broadcast %cst_49 : f32 to vector<64x16xf32>
    %144 = arith.maximumf %142, %143 : vector<64x16xf32>
    %c0_50 = arith.constant 0 : index
    %c0_51 = arith.constant 0 : index
    %145 = vector.load %arg7[%c0_50, %c0_51] : memref<16x36xf32, #tpu.memory_space<vmem>>, vector<16x36xf32>
    %cst_52 = arith.constant dense<0.000000e+00> : vector<64x36xf32>
    %146 = tpu.matmul %144, %145, %cst_52 {dimension_numbers = #tpu.dot_dimension_numbers<[1], [0], [0], [1], [0, 0, 1, 1], [], []>} : vector<64x16xf32>, vector<16x36xf32>, vector<64x36xf32> -> vector<64x36xf32>
    %147 = vector.shape_cast %24 : vector<36xf32> to vector<1x36xf32>
    %148 = vector.broadcast %147 : vector<1x36xf32> to vector<64x36xf32>
    %149 = arith.addf %146, %148 : vector<64x36xf32>
    %c0_53 = arith.constant 0 : index
    %c0_54 = arith.constant 0 : index
    %150 = vector.load %arg9[%c0_53, %c0_54] : memref<36x4xf32, #tpu.memory_space<vmem>>, vector<36x4xf32>
    %c0_55 = arith.constant 0 : index
    %c0_56 = arith.constant 0 : index
    %151 = vector.load %arg10[%c0_55, %c0_56] : memref<4x36xf32, #tpu.memory_space<vmem>>, vector<4x36xf32>
    %cst_57 = arith.constant dense<0.000000e+00> : vector<36xf32>
    %152 = vector.multi_reduction <add>, %149, %cst_57 [0] : vector<64x36xf32> to vector<36xf32>
    %153 = vector.shape_cast %152 : vector<36xf32> to vector<1x36xf32>
    %cst_58 = arith.constant dense<0.000000e+00> : vector<1x4xf32>
    %154 = tpu.matmul %153, %150, %cst_58 {dimension_numbers = #tpu.dot_dimension_numbers<[1], [0], [0], [1], [0, 0, 1, 1], [], []>} : vector<1x36xf32>, vector<36x4xf32>, vector<1x4xf32> -> vector<1x4xf32>
    %cst_59 = arith.constant 0.00173611112 : f32
    %155 = vector.broadcast %cst_59 : f32 to vector<1x4xf32>
    %156 = arith.mulf %154, %155 : vector<1x4xf32>
    %cst_60 = arith.constant dense<0.000000e+00> : vector<1x36xf32>
    %157 = tpu.matmul %156, %151, %cst_60 {dimension_numbers = #tpu.dot_dimension_numbers<[1], [0], [0], [1], [0, 0, 1, 1], [], []>} : vector<1x4xf32>, vector<4x36xf32>, vector<1x36xf32> -> vector<1x36xf32>
    %158 = vector.broadcast %157 : vector<1x36xf32> to vector<64x36xf32>
    %159 = arith.subf %149, %158 : vector<64x36xf32>
    %160 = arith.mulf %159, %159 : vector<64x36xf32>
    %cst_61 = arith.constant dense<0.000000e+00> : vector<36xf32>
    %161 = vector.multi_reduction <add>, %160, %cst_61 [0] : vector<64x36xf32> to vector<36xf32>
    %162 = vector.shape_cast %161 : vector<36xf32> to vector<1x36xf32>
    %cst_62 = arith.constant dense<0.000000e+00> : vector<1x4xf32>
    %163 = tpu.matmul %162, %150, %cst_62 {dimension_numbers = #tpu.dot_dimension_numbers<[1], [0], [0], [1], [0, 0, 1, 1], [], []>} : vector<1x36xf32>, vector<36x4xf32>, vector<1x4xf32> -> vector<1x4xf32>
    %cst_63 = arith.constant 0.00173611112 : f32
    %164 = vector.broadcast %cst_63 : f32 to vector<1x4xf32>
    %165 = arith.mulf %163, %164 : vector<1x4xf32>
    %cst_64 = arith.constant dense<0.000000e+00> : vector<1x36xf32>
    %166 = tpu.matmul %165, %151, %cst_64 {dimension_numbers = #tpu.dot_dimension_numbers<[1], [0], [0], [1], [0, 0, 1, 1], [], []>} : vector<1x4xf32>, vector<4x36xf32>, vector<1x36xf32> -> vector<1x36xf32>
    %cst_65 = arith.constant 9.99999974E-6 : f32
    %167 = vector.broadcast %cst_65 : f32 to vector<1x36xf32>
    %168 = arith.addf %166, %167 : vector<1x36xf32>
    %169 = math.rsqrt %168 : vector<1x36xf32>
    %170 = vector.broadcast %169 : vector<1x36xf32> to vector<64x36xf32>
    %171 = arith.mulf %159, %170 : vector<64x36xf32>
    %172 = vector.shape_cast %26 : vector<36xf32> to vector<1x36xf32>
    %173 = vector.broadcast %172 : vector<1x36xf32> to vector<64x36xf32>
    %174 = arith.mulf %171, %173 : vector<64x36xf32>
    %175 = vector.shape_cast %28 : vector<36xf32> to vector<1x36xf32>
    %176 = vector.broadcast %175 : vector<1x36xf32> to vector<64x36xf32>
    %177 = arith.addf %174, %176 : vector<64x36xf32>
    %c0_66 = arith.constant 0 : index
    %c0_67 = arith.constant 0 : index
    %178 = vector.load %arg11[%c0_66, %c0_67] : memref<36x288xf32, #tpu.memory_space<vmem>>, vector<36x288xf32>
    %cst_68 = arith.constant dense<0.000000e+00> : vector<64x288xf32>
    %179 = tpu.matmul %177, %178, %cst_68 {dimension_numbers = #tpu.dot_dimension_numbers<[1], [0], [0], [1], [0, 0, 1, 1], [], []>} : vector<64x36xf32>, vector<36x288xf32>, vector<64x288xf32> -> vector<64x288xf32>
    %c0_69 = arith.constant 0 : index
    %c0_70 = arith.constant 0 : index
    %180 = vector.load %arg8[%c0_69, %c0_70] : memref<32x32xf32, #tpu.memory_space<vmem>>, vector<32x32xf32>
    %cst_71 = arith.constant dense<0.000000e+00> : vector<64x32xf32>
    %181 = tpu.matmul %40, %180, %cst_71 {dimension_numbers = #tpu.dot_dimension_numbers<[1], [0], [0], [1], [0, 0, 1, 1], [], []>} : vector<64x32xf32>, vector<32x32xf32>, vector<64x32xf32> -> vector<64x32xf32>
    %182 = vector.shape_cast %10 : vector<32xf32> to vector<1x32xf32>
    %183 = vector.broadcast %182 : vector<1x32xf32> to vector<64x32xf32>
    %184 = arith.mulf %181, %183 : vector<64x32xf32>
    %185 = vector.shape_cast %12 : vector<32xf32> to vector<1x32xf32>
    %186 = vector.broadcast %185 : vector<1x32xf32> to vector<64x32xf32>
    %187 = arith.addf %184, %186 : vector<64x32xf32>
    %cst_72 = arith.constant 0.000000e+00 : f32
    %188 = vector.broadcast %cst_72 : f32 to vector<64x32xf32>
    %c0_73 = arith.constant 0 : index
    %c0_74 = arith.constant 0 : index
    %c0_75 = arith.constant 0 : index
    %189 = vector.load %arg2[%c0_73, %c0_74, %c0_75] : memref<9x64x64xf32, #tpu.memory_space<vmem>>, vector<1x64x64xf32>
    %190 = vector.shape_cast %189 : vector<1x64x64xf32> to vector<64x64xf32>
    %cst_76 = arith.constant dense<0.000000e+00> : vector<64x32xf32>
    %191 = tpu.matmul %190, %187, %cst_76 {dimension_numbers = #tpu.dot_dimension_numbers<[1], [0], [0], [1], [0, 0, 1, 1], [], []>} : vector<64x64xf32>, vector<64x32xf32>, vector<64x32xf32> -> vector<64x32xf32>
    %192 = vector.extract_strided_slice %179 {offsets = [0, 0], sizes = [64, 32], strides = [1, 1]} : vector<64x288xf32> to vector<64x32xf32>
    %193 = arith.mulf %191, %192 : vector<64x32xf32>
    %194 = arith.addf %188, %193 : vector<64x32xf32>
    %c1_77 = arith.constant 1 : index
    %c0_78 = arith.constant 0 : index
    %c0_79 = arith.constant 0 : index
    %195 = vector.load %arg2[%c1_77, %c0_78, %c0_79] : memref<9x64x64xf32, #tpu.memory_space<vmem>>, vector<1x64x64xf32>
    %196 = vector.shape_cast %195 : vector<1x64x64xf32> to vector<64x64xf32>
    %cst_80 = arith.constant dense<0.000000e+00> : vector<64x32xf32>
    %197 = tpu.matmul %196, %187, %cst_80 {dimension_numbers = #tpu.dot_dimension_numbers<[1], [0], [0], [1], [0, 0, 1, 1], [], []>} : vector<64x64xf32>, vector<64x32xf32>, vector<64x32xf32> -> vector<64x32xf32>
    %198 = vector.extract_strided_slice %179 {offsets = [0, 32], sizes = [64, 32], strides = [1, 1]} : vector<64x288xf32> to vector<64x32xf32>
    %199 = arith.mulf %197, %198 : vector<64x32xf32>
    %200 = arith.addf %194, %199 : vector<64x32xf32>
    %c2_81 = arith.constant 2 : index
    %c0_82 = arith.constant 0 : index
    %c0_83 = arith.constant 0 : index
    %201 = vector.load %arg2[%c2_81, %c0_82, %c0_83] : memref<9x64x64xf32, #tpu.memory_space<vmem>>, vector<1x64x64xf32>
    %202 = vector.shape_cast %201 : vector<1x64x64xf32> to vector<64x64xf32>
    %cst_84 = arith.constant dense<0.000000e+00> : vector<64x32xf32>
    %203 = tpu.matmul %202, %187, %cst_84 {dimension_numbers = #tpu.dot_dimension_numbers<[1], [0], [0], [1], [0, 0, 1, 1], [], []>} : vector<64x64xf32>, vector<64x32xf32>, vector<64x32xf32> -> vector<64x32xf32>
    %204 = vector.extract_strided_slice %179 {offsets = [0, 64], sizes = [64, 32], strides = [1, 1]} : vector<64x288xf32> to vector<64x32xf32>
    %205 = arith.mulf %203, %204 : vector<64x32xf32>
    %206 = arith.addf %200, %205 : vector<64x32xf32>
    %c3_85 = arith.constant 3 : index
    %c0_86 = arith.constant 0 : index
    %c0_87 = arith.constant 0 : index
    %207 = vector.load %arg2[%c3_85, %c0_86, %c0_87] : memref<9x64x64xf32, #tpu.memory_space<vmem>>, vector<1x64x64xf32>
    %208 = vector.shape_cast %207 : vector<1x64x64xf32> to vector<64x64xf32>
    %cst_88 = arith.constant dense<0.000000e+00> : vector<64x32xf32>
    %209 = tpu.matmul %208, %187, %cst_88 {dimension_numbers = #tpu.dot_dimension_numbers<[1], [0], [0], [1], [0, 0, 1, 1], [], []>} : vector<64x64xf32>, vector<64x32xf32>, vector<64x32xf32> -> vector<64x32xf32>
    %210 = vector.extract_strided_slice %179 {offsets = [0, 96], sizes = [64, 32], strides = [1, 1]} : vector<64x288xf32> to vector<64x32xf32>
    %211 = arith.mulf %209, %210 : vector<64x32xf32>
    %212 = arith.addf %206, %211 : vector<64x32xf32>
    %c4_89 = arith.constant 4 : index
    %c0_90 = arith.constant 0 : index
    %c0_91 = arith.constant 0 : index
    %213 = vector.load %arg2[%c4_89, %c0_90, %c0_91] : memref<9x64x64xf32, #tpu.memory_space<vmem>>, vector<1x64x64xf32>
    %214 = vector.shape_cast %213 : vector<1x64x64xf32> to vector<64x64xf32>
    %cst_92 = arith.constant dense<0.000000e+00> : vector<64x32xf32>
    %215 = tpu.matmul %214, %187, %cst_92 {dimension_numbers = #tpu.dot_dimension_numbers<[1], [0], [0], [1], [0, 0, 1, 1], [], []>} : vector<64x64xf32>, vector<64x32xf32>, vector<64x32xf32> -> vector<64x32xf32>
    %216 = vector.extract_strided_slice %179 {offsets = [0, 128], sizes = [64, 32], strides = [1, 1]} : vector<64x288xf32> to vector<64x32xf32>
    %217 = arith.mulf %215, %216 : vector<64x32xf32>
    %218 = arith.addf %212, %217 : vector<64x32xf32>
    %c5_93 = arith.constant 5 : index
    %c0_94 = arith.constant 0 : index
    %c0_95 = arith.constant 0 : index
    %219 = vector.load %arg2[%c5_93, %c0_94, %c0_95] : memref<9x64x64xf32, #tpu.memory_space<vmem>>, vector<1x64x64xf32>
    %220 = vector.shape_cast %219 : vector<1x64x64xf32> to vector<64x64xf32>
    %cst_96 = arith.constant dense<0.000000e+00> : vector<64x32xf32>
    %221 = tpu.matmul %220, %187, %cst_96 {dimension_numbers = #tpu.dot_dimension_numbers<[1], [0], [0], [1], [0, 0, 1, 1], [], []>} : vector<64x64xf32>, vector<64x32xf32>, vector<64x32xf32> -> vector<64x32xf32>
    %222 = vector.extract_strided_slice %179 {offsets = [0, 160], sizes = [64, 32], strides = [1, 1]} : vector<64x288xf32> to vector<64x32xf32>
    %223 = arith.mulf %221, %222 : vector<64x32xf32>
    %224 = arith.addf %218, %223 : vector<64x32xf32>
    %c6_97 = arith.constant 6 : index
    %c0_98 = arith.constant 0 : index
    %c0_99 = arith.constant 0 : index
    %225 = vector.load %arg2[%c6_97, %c0_98, %c0_99] : memref<9x64x64xf32, #tpu.memory_space<vmem>>, vector<1x64x64xf32>
    %226 = vector.shape_cast %225 : vector<1x64x64xf32> to vector<64x64xf32>
    %cst_100 = arith.constant dense<0.000000e+00> : vector<64x32xf32>
    %227 = tpu.matmul %226, %187, %cst_100 {dimension_numbers = #tpu.dot_dimension_numbers<[1], [0], [0], [1], [0, 0, 1, 1], [], []>} : vector<64x64xf32>, vector<64x32xf32>, vector<64x32xf32> -> vector<64x32xf32>
    %228 = vector.extract_strided_slice %179 {offsets = [0, 192], sizes = [64, 32], strides = [1, 1]} : vector<64x288xf32> to vector<64x32xf32>
    %229 = arith.mulf %227, %228 : vector<64x32xf32>
    %230 = arith.addf %224, %229 : vector<64x32xf32>
    %c7_101 = arith.constant 7 : index
    %c0_102 = arith.constant 0 : index
    %c0_103 = arith.constant 0 : index
    %231 = vector.load %arg2[%c7_101, %c0_102, %c0_103] : memref<9x64x64xf32, #tpu.memory_space<vmem>>, vector<1x64x64xf32>
    %232 = vector.shape_cast %231 : vector<1x64x64xf32> to vector<64x64xf32>
    %cst_104 = arith.constant dense<0.000000e+00> : vector<64x32xf32>
    %233 = tpu.matmul %232, %187, %cst_104 {dimension_numbers = #tpu.dot_dimension_numbers<[1], [0], [0], [1], [0, 0, 1, 1], [], []>} : vector<64x64xf32>, vector<64x32xf32>, vector<64x32xf32> -> vector<64x32xf32>
    %234 = vector.extract_strided_slice %179 {offsets = [0, 224], sizes = [64, 32], strides = [1, 1]} : vector<64x288xf32> to vector<64x32xf32>
    %235 = arith.mulf %233, %234 : vector<64x32xf32>
    %236 = arith.addf %230, %235 : vector<64x32xf32>
    %c8_105 = arith.constant 8 : index
    %c0_106 = arith.constant 0 : index
    %c0_107 = arith.constant 0 : index
    %237 = vector.load %arg2[%c8_105, %c0_106, %c0_107] : memref<9x64x64xf32, #tpu.memory_space<vmem>>, vector<1x64x64xf32>
    %238 = vector.shape_cast %237 : vector<1x64x64xf32> to vector<64x64xf32>
    %cst_108 = arith.constant dense<0.000000e+00> : vector<64x32xf32>
    %239 = tpu.matmul %238, %187, %cst_108 {dimension_numbers = #tpu.dot_dimension_numbers<[1], [0], [0], [1], [0, 0, 1, 1], [], []>} : vector<64x64xf32>, vector<64x32xf32>, vector<64x32xf32> -> vector<64x32xf32>
    %240 = vector.extract_strided_slice %179 {offsets = [0, 256], sizes = [64, 32], strides = [1, 1]} : vector<64x288xf32> to vector<64x32xf32>
    %241 = arith.mulf %239, %240 : vector<64x32xf32>
    %242 = arith.addf %236, %241 : vector<64x32xf32>
    %243 = vector.shape_cast %14 : vector<32xf32> to vector<1x32xf32>
    %244 = vector.broadcast %243 : vector<1x32xf32> to vector<64x32xf32>
    %245 = arith.mulf %242, %244 : vector<64x32xf32>
    %246 = vector.shape_cast %16 : vector<32xf32> to vector<1x32xf32>
    %247 = vector.broadcast %246 : vector<1x32xf32> to vector<64x32xf32>
    %248 = arith.addf %245, %247 : vector<64x32xf32>
    %249 = arith.negf %248 : vector<64x32xf32>
    %250 = math.exp %249 : vector<64x32xf32>
    %cst_109 = arith.constant 1.000000e+00 : f32
    %251 = vector.broadcast %cst_109 : f32 to vector<64x32xf32>
    %252 = arith.addf %251, %250 : vector<64x32xf32>
    %253 = arith.divf %251, %252 : vector<64x32xf32>
    %254 = arith.mulf %248, %253 : vector<64x32xf32>
    %c0_110 = arith.constant 0 : index
    %c0_111 = arith.constant 0 : index
    %c0_112 = arith.constant 0 : index
    %255 = vector.load %arg15[%c0_110, %c0_111, %c0_112] : memref<1x64x32xf32, #tpu.memory_space<vmem>>, vector<1x64x32xf32>
    %256 = vector.shape_cast %255 : vector<1x64x32xf32> to vector<64x32xf32>
    %257 = vector.shape_cast %254 : vector<64x32xf32> to vector<1x64x32xf32>
    tpu.vector_store %arg15[%c0_110, %c0_111, %c0_112], %257 {strides = array<i32>} : memref<1x64x32xf32, #tpu.memory_space<vmem>>, vector<1x64x32xf32>,
    %c0_113 = arith.constant 0 : index
    %c0_114 = arith.constant 0 : index
    %c0_115 = arith.constant 0 : index
    %258 = vector.load %arg16[%c0_113, %c0_114, %c0_115] : memref<1x64x32xf32, #tpu.memory_space<vmem>>, vector<1x64x32xf32>
    %259 = vector.shape_cast %258 : vector<1x64x32xf32> to vector<64x32xf32>
    %260 = vector.shape_cast %131 : vector<64x32xf32> to vector<1x64x32xf32>
    tpu.vector_store %arg16[%c0_113, %c0_114, %c0_115], %260 {strides = array<i32>} : memref<1x64x32xf32, #tpu.memory_space<vmem>>, vector<1x64x32xf32>,
    %261 = arith.addf %254, %131 : vector<64x32xf32>
    %cst_116 = arith.constant dense<0.000000e+00> : vector<32xf32>
    %262 = vector.multi_reduction <add>, %261, %cst_116 [0] : vector<64x32xf32> to vector<32xf32>
    %263 = vector.shape_cast %262 : vector<32xf32> to vector<1x32xf32>
    %cst_117 = arith.constant 1.562500e-02 : f32
    %264 = vector.broadcast %cst_117 : f32 to vector<1x32xf32>
    %265 = arith.mulf %263, %264 : vector<1x32xf32>
    %c0_118 = arith.constant 0 : index
    %c0_119 = arith.constant 0 : index
    %c0_120 = arith.constant 0 : index
    %266 = vector.load %arg17[%c0_118, %c0_119, %c0_120] : memref<1x1x32xf32, #tpu.memory_space<vmem>>, vector<1x1x32xf32>
    %267 = vector.shape_cast %266 : vector<1x1x32xf32> to vector<1x32xf32>
    %268 = vector.shape_cast %265 : vector<1x32xf32> to vector<1x1x32xf32>
    tpu.vector_store %arg17[%c0_118, %c0_119, %c0_120], %268 {strides = array<i32>} : memref<1x1x32xf32, #tpu.memory_space<vmem>>, vector<1x1x32xf32>,
    return
  }
  func.func @transform_0(%arg0: i32) -> (i32, i32, i32) {
    %c0_i32 = arith.constant 0 : i32
    %c0_i32_0 = arith.constant 0 : i32
    %c0_i32_1 = arith.constant 0 : i32
    return %arg0, %c0_i32, %c0_i32_0 : i32, i32, i32
  }
  func.func @transform_1(%arg0: i32) -> (i32, i32, i32) {
    %c0_i32 = arith.constant 0 : i32
    %c0_i32_0 = arith.constant 0 : i32
    %c0_i32_1 = arith.constant 0 : i32
    %c0_i32_2 = arith.constant 0 : i32
    return %c0_i32, %c0_i32_0, %c0_i32_1 : i32, i32, i32
  }
  func.func @transform_2(%arg0: i32) -> (i32, i32) {
    %c0_i32 = arith.constant 0 : i32
    %c0_i32_0 = arith.constant 0 : i32
    %c0_i32_1 = arith.constant 0 : i32
    return %c0_i32, %c0_i32_0 : i32, i32
  }
  func.func @transform_3(%arg0: i32) -> (i32, i32) {
    %c0_i32 = arith.constant 0 : i32
    %c0_i32_0 = arith.constant 0 : i32
    %c0_i32_1 = arith.constant 0 : i32
    return %c0_i32, %c0_i32_0 : i32, i32
  }
  func.func @transform_4(%arg0: i32) -> (i32, i32) {
    %c0_i32 = arith.constant 0 : i32
    %c0_i32_0 = arith.constant 0 : i32
    %c0_i32_1 = arith.constant 0 : i32
    return %c0_i32, %c0_i32_0 : i32, i32
  }
  func.func @transform_5(%arg0: i32) -> (i32, i32) {
    %c0_i32 = arith.constant 0 : i32
    %c0_i32_0 = arith.constant 0 : i32
    %c0_i32_1 = arith.constant 0 : i32
    return %c0_i32, %c0_i32_0 : i32, i32
  }
  func.func @transform_6(%arg0: i32) -> (i32, i32) {
    %c0_i32 = arith.constant 0 : i32
    %c0_i32_0 = arith.constant 0 : i32
    %c0_i32_1 = arith.constant 0 : i32
    return %c0_i32, %c0_i32_0 : i32, i32
  }
  func.func @transform_7(%arg0: i32) -> (i32, i32) {
    %c0_i32 = arith.constant 0 : i32
    %c0_i32_0 = arith.constant 0 : i32
    %c0_i32_1 = arith.constant 0 : i32
    return %c0_i32, %c0_i32_0 : i32, i32
  }
  func.func @transform_8(%arg0: i32) -> (i32, i32) {
    %c0_i32 = arith.constant 0 : i32
    %c0_i32_0 = arith.constant 0 : i32
    %c0_i32_1 = arith.constant 0 : i32
    return %c0_i32, %c0_i32_0 : i32, i32
  }
  func.func @transform_9(%arg0: i32) -> (i32, i32) {
    %c0_i32 = arith.constant 0 : i32
    %c0_i32_0 = arith.constant 0 : i32
    %c0_i32_1 = arith.constant 0 : i32
    return %c0_i32, %c0_i32_0 : i32, i32
  }
  func.func @transform_10(%arg0: i32) -> (i32, i32) {
    %c0_i32 = arith.constant 0 : i32
    %c0_i32_0 = arith.constant 0 : i32
    %c0_i32_1 = arith.constant 0 : i32
    return %c0_i32, %c0_i32_0 : i32, i32
  }
  func.func @transform_11(%arg0: i32) -> (i32, i32) {
    %c0_i32 = arith.constant 0 : i32
    %c0_i32_0 = arith.constant 0 : i32
    %c0_i32_1 = arith.constant 0 : i32
    return %c0_i32, %c0_i32_0 : i32, i32
  }
  func.func @transform_12(%arg0: i32) -> (i32, i32) {
    %c0_i32 = arith.constant 0 : i32
    %c0_i32_0 = arith.constant 0 : i32
    %c0_i32_1 = arith.constant 0 : i32
    return %c0_i32, %c0_i32_0 : i32, i32
  }
  func.func @transform_13(%arg0: i32) -> (i32, i32) {
    %c0_i32 = arith.constant 0 : i32
    %c0_i32_0 = arith.constant 0 : i32
    %c0_i32_1 = arith.constant 0 : i32
    return %c0_i32, %c0_i32_0 : i32, i32
  }
  func.func @transform_14(%arg0: i32) -> (i32, i32, i32) {
    %c0_i32 = arith.constant 0 : i32
    %c0_i32_0 = arith.constant 0 : i32
    %c0_i32_1 = arith.constant 0 : i32
    return %arg0, %c0_i32, %c0_i32_0 : i32, i32, i32
  }
  func.func @transform_15(%arg0: i32) -> (i32, i32, i32) {
    %c0_i32 = arith.constant 0 : i32
    %c0_i32_0 = arith.constant 0 : i32
    %c0_i32_1 = arith.constant 0 : i32
    return %arg0, %c0_i32, %c0_i32_0 : i32, i32, i32
  }
  func.func @transform_16(%arg0: i32) -> (i32, i32, i32) {
    %c0_i32 = arith.constant 0 : i32
    %c0_i32_0 = arith.constant 0 : i32
    %c0_i32_1 = arith.constant 0 : i32
    return %arg0, %c0_i32, %c0_i32_0 : i32, i32, i32
  }
}

</mosaic_0001>

<bundles_post_ra>
// kernel: cot_bottleneck_forward.3
= control target key start
LH: loop header
LB: loop body
LE: loop exit
PB: predicated region body
PF: predicated region fallthrough
CT: control target
= control target key end

     0   :  { %15 = vsyncpa [#allocation3], 0  ;;  %s1446_s0 = inlined_call_operand.vmem [shape: f32[2,64,32], index: 0, kind: input, shape index: {}]   ;;  %s1447_s1 = inlined_call_operand.vmem [shape: f32[2,64,32], index: 1, kind: input, shape index: {}]   ;;  %s1448_s2 = inlined_call_operand.vmem [shape: f32[2,1,32], index: 2, kind: input, shape index: {}]   ;;  %s1449_s3 = inlined_call_operand.vmem [shape: f32[2,64,32], index: 3, kind: input, shape index: {}]   ;;  %s1450_s4 = inlined_call_operand.vmem [shape: f32[32,32], index: 4, kind: input, shape index: {}]   ;;  %s1451_s5 = inlined_call_operand.vmem [shape: f32[2,32], index: 5, kind: input, shape index: {}]   ;;  %s1452_s6 = inlined_call_operand.vmem [shape: f32[32,64], index: 6, kind: input, shape index: {}]   ;;  %s1453_s7 = inlined_call_operand.vmem [shape: f32[1,64], index: 7, kind: input, shape index: {}]   ;;  %s1454_s8 = inlined_call_operand.vmem [shape: f32[32,32], index: 8, kind: input, shape index: {}]   ;;  %s1455_s9 = inlined_call_operand.vmem [shape: f32[2,32], index: 9, kind: input, shape index: {}]   ;;  %s1456_s10 = inlined_call_operand.hbm [shape: f32[2,64,32], index: 10, kind: output, shape index: {}]  }
   0x1   :  { %17 = vsyncpa [#allocation3 + $0x1], 0  ;;  %s1224_s13 = smov 0   ;;  %s1226_s14 = smov 0  }
   0x2   :  { %s1228_s15 = smov 0   ;;  %s1230_s16 = smov 0  }
   0x3 LB: > { %s1245_s17 = sadd.s32 4294967295, %s1160_s16   ;;  %s955_s18 = sadd.s32 4294967294, %s1160_s16   ;;  %s1160_s16 = sphi %s1230_s16, %s1462_s16   ;;  %s1156_s15 = sphi %s1228_s15, %s1461_s15   ;;  %s1152_s14 = sphi %s1226_s14, %s1460_s14   ;;  %s1148_s13 = sphi %s1224_s13, %s1459_s13  }
   0x4   : > { %s1249_s19 = sadd.s32 1, %s1160_s16   ;;  %s260_s20 = sadd.s32 1, %s1156_s15 }
   0x5   : > { %s257_s21 = ssub.s32 %s1160_s16, %s1249_s19  ;;  %p270_p0 = scmp.ne.s32.totalorder %s1156_s15, %s1152_s14 }
   0x6   : > { %p258_p1 = scmp.eq.s32.totalorder %s257_s21, 0  ;;  %p271_p2 = scmp.eq.s32.totalorder %s1245_s17, 1 }
   0x7   : > { %p276_p3 = scmp.ne.s32.totalorder %s1152_s14, %s1148_s13  ;;  %p277_p4 = scmp.eq.s32.totalorder %s955_s18, 1 }
   0x8   : > { %s1260_s22 = scalar_select %p258_p1, %s1156_s15, %s260_s20  }
   0x9   : > { %p1262_p5 = por %p271_p2, %p270_p0  ;;  %p1266_p6 = por %p277_p4, %p276_p3 }
   0xa   : > { %p958_p7 = scmp.ge.s32.totalorder %s1160_s16, 1  ;;  %p343_p8 = scmp.lt.s32.totalorder %s1160_s16, 3 }
   0xc   : > { %p344_p9 = pnand %p958_p7, %p343_p8 }
   0xd   : > { %p394_p10 = scmp.lt.s32.totalorder (!%p344_p9), %s1245_s17, 1  ;;  %s1164_s28 = smov (!%p344_p9), 96  }
   0xe   : > { %347 = sbr.rel (%p344_p9) target bundleno = 1271 (0x4f7), region = 60  ;;  %s1165_s30 = smov (!%p344_p9), 32  }
   0xf   : > { %s391_s11 = sand.u32 (!%p344_p9), 1, %s1152_s14   ;;  %s984_s18 = sshll.u32 (!%p344_p9), %s1245_s17, 10 }
  0x10   : > { %s959_s12 = sshll.u32 (!%p344_p9), %s391_s11, 6  ;;  %s1396_s26 = scalar_lea.hbm (!%p344_p9), %s1456_s10, %s984_s18 }
  0x13   : > { %v417_v0 = vld [vmem:[%s1450_s4 + $0x18] sm:$0xff]  ;;  %v1162_v1 = vmov 0.0   ;;  %v416_v2 = vld [vmem:[%s1450_s4 + $0x10] sm:$0xff]  ;;  %vm1163_vm0 = vmmov 0   ;;  %s1281_s29 = scalar_select %p394_p10, %s1245_s17, 1  ;;  %v415_v3 = vld [vmem:[%s1450_s4 + $0x8] sm:$0xff]  ;;  %v612_v32 = vlaneseq }
  0x14   : > { %1007 = vmatprep.subr.mxu1 %v1162_v1  ;;  %1015 = vmatprep.mubr.msk.f32.mxu1 %vm1163_vm0, %v1162_v1  ;;  %v414_v4 = vld [vmem:[%s1450_s4] sm:$0xff]  ;;  %vm418_vm1 = vcmask 261120   ;;  %v501_v6 = vld [vmem:[%s1452_s6 + $0x18] sm:$0xff]  ;;  %v500_v7 = vld [vmem:[%s1452_s6 + $0x10] sm:$0xff]  ;;  %s1406_s17 = scalar_lea.sflag [#allocation3], %s391_s11 }
  0x15   : > { %1008 = vmatpush3.msra.mxu1 %v417_v0  ;;  %s406_s20 = scalar_lea.vmem %s1448_s2, %s1281_s29  ;;  %v499_v8 = vld [vmem:[%s1452_s6 + $0x8] sm:$0xff]  ;;  %v498_v9 = vld [vmem:[%s1452_s6] sm:$0xff]  ;;  %v660_v33 = vld [vmem:[%s1454_s8 + $0x18] sm:$0xff]  ;;  %s1323_s21 = sshll.u32 %s1281_s29, 6  ;;  %v1325_v35 = vshrl.u32 %v612_v32, 7 }
  0x16   : > { %1009 = vmatprep.subr.mxu1 %v1162_v1  ;;  %v413_v5 = vld [vmem:[%s406_s20] sm:$0x1]  ;;  %v659_v34 = vld [vmem:[%s1454_s8 + $0x10] sm:$0xff]  ;;  %1029 = vmatprep.subr.mxu0 %v660_v33  ;;  %s398_s27 = scalar_lea.vmem %s1446_s0, %s1323_s21  ;;  %v658_v56 = vld [vmem:[%s1454_s8 + $0x8] sm:$0xff]  ;;  %s403_s25 = scalar_lea.vmem %s1447_s1, %s1323_s21 }
  0x17   : > { %1010 = vmatpush3.msra.mxu1 %v416_v2  ;;  %v412_v10 = vld [vmem:[%s1451_s5] sm:$0x3]  ;;  %1030 = vmatpush3.msra.mxu0 %v660_v33  ;;  %v1332_v36 = vsub.s32 0, %v1325_v35  ;;  %v605_v40 = vld [vmem:[%s398_s27 + $0x8] sm:$0xff]  ;;  %v606_v41 = vld [vmem:[%s398_s27 + $0x10] sm:$0xff]  ;;  %s1166_s29 = smov [#allocation2]  }
  0x18   : > { %1011 = vmatprep.subr.mxu1 %v1162_v1  ;;  %v494_v11 = vrot.slane %v412_v10, 1  ;;  %v502_v17 = vld [vmem:[%s1453_s7] sm:$0x1]  ;;  %1031 = vmatprep.subr.mxu0 %v659_v34  ;;  %v607_v42 = vld [vmem:[%s398_s27 + $0x18] sm:$0xff]  ;;  %v609_v45 = vld [vmem:[%s398_s27 + $0x28] sm:$0xff] }
  0x19   : > { %1012 = vmatpush3.msra.mxu1 %v415_v3  ;;  %1032 = vmatpush3.msra.mxu0 %v659_v34  ;;  %v604_v39 = vld [vmem:[%s398_s27] sm:$0xff]  ;;  %v610_v46 = vld [vmem:[%s398_s27 + $0x30] sm:$0xff]  ;;  %v611_v47 = vld [vmem:[%s398_s27 + $0x38] sm:$0xff] }
  0x1a   : > { %1013 = vmatprep.subr.mxu1 %v1162_v1  ;;  %v608_v43 = vld [vmem:[%s398_s27 + $0x20] sm:$0xff]  ;;  %1033 = vmatprep.subr.mxu0 %v658_v56  ;;  %v625_v62 = vld [vmem:[%s403_s25 + $0x8] sm:$0xff]  ;;  %v626_v63 = vld [vmem:[%s403_s25 + $0x10] sm:$0xff] }
  0x1b   : > { %1014 = vmatpush3.msra.mxu1 %v414_v4  ;;  %v657_v57 = vld [vmem:[%s1454_s8] sm:$0xff]  ;;  %1034 = vmatpush3.msra.mxu0 %v658_v56  ;;  %v627_v0 = vld [vmem:[%s403_s25 + $0x18] sm:$0xff]  ;;  %v629_v2 = vld [vmem:[%s403_s25 + $0x28] sm:$0xff] }
  0x1c   : > { %1016 = vmatmul.mubr.msk.f32.vlgmr.msra.gmra.mxu1 %vm418_vm1, %v413_v5  ;;  %1018 = vmatprep.subr.mxu1 %v1162_v1  ;;  %v624_v61 = vld [vmem:[%s403_s25] sm:$0xff]  ;;  %v630_v3 = vld [vmem:[%s403_s25 + $0x30] sm:$0xff]  ;;  %v631_v4 = vld [vmem:[%s403_s25 + $0x38] sm:$0xff] }
  0x1d   : > { %1026 = vmatprep.mubr.msk.f32.mxu1 %vm1163_vm0, %v1162_v1  ;;  %1019 = vmatpush3.msra.mxu1 %v501_v6 }
  0x1e   : > { %1020 = vmatprep.subr.mxu1 %v1162_v1  ;;  %1035 = vmatprep.subr.mxu0 %v657_v57 }
  0x1f   : > { %1021 = vmatpush3.msra.mxu1 %v500_v7  ;;  %1036 = vmatpush3.msra.mxu0 %v657_v57 }
  0x20   : > { %1022 = vmatprep.subr.mxu1 %v1162_v1 }
  0x21   : > { %1023 = vmatpush3.msra.mxu1 %v499_v8 }
  0x22   : > { %1024 = vmatprep.subr.mxu1 %v1162_v1  ;;  %v628_v1 = vld [vmem:[%s403_s25 + $0x20] sm:$0xff] }
  0x23   : > { %1025 = vmatpush3.msra.mxu1 %v498_v9 }
  0xdc   : > { %v488_v12 = vpop.f32.mrf.mxu1 }
  0xdd   : > { %v492_v13 = vmul.f32 %v488_v12, %v412_v10 }
  0xde   : > { %v1017_v14 = vpop.f32.mrf.mxu1 }
  0xdf   : > { %v496_v15 = vadd.f32 %v494_v11, %v492_v13 }
  0xe1   : > { %v497_v16 = vmax.f32 %v496_v15, 0.0 }
  0xe3   : > { %1027 = vmatmul.mubr.msk.f32.vlgmr.msra.gmra.mxu1 %vm418_vm1, %v497_v16 }
 0x1a3   : > { %v572_v18 = vpop.f32.mrf.mxu1 }
 0x1a4   : > { %v573_v19 = vadd.f32 %v572_v18, %v502_v17 }
 0x1a5   : > { %v1028_v20 = vpop.f32.mrf.mxu1 }
 0x1a6   : > { %577 = vrot.lane.b32.xlu0 %v573_v19, %s1164_s28 }
 0x218   : > { %v578_v21 = vpop.permute.xlu0 %577 }
 0x219   : > { %v580_v22 = vmax.f32 %v573_v19, %v578_v21 }
 0x21b   : > { %585 = vrot.lane.b32.xlu0 %v580_v22, %s1165_s30  ;;  %v581_v27 = vsub.f32 %v573_v19, %v580_v22  ;;  %v656_v22 = vld [vmem:[%s1455_s9] sm:$0x3] }
 0x21d   : > { %v582_v28 = vmul.f32 1.442695, %v581_v27 }
 0x28d   : > { %v586_v23 = vpop.permute.xlu0 %585 }
 0x28e   : > { %v588_v24 = vsub.f32 %v573_v19, %v586_v23  ;;  %v804_v23 = vsub.s32 1, %v1325_v35 }
 0x290   : > { %v589_v25 = vmul.f32 1.442695, %v588_v24  ;;  %v793_v24 = vrot.slane %v656_v22, %v1332_v36 }
 0x292   : > { %1094 = vpow2.f32 %v589_v25  ;;  %v805_v25 = vrot.slane %v656_v22, %v804_v23 }
 0x293   : > { %1096 = vpow2.f32 %v582_v28 }
 0x29f   : > { %v1095_v26 = vpop.eup %1094 }
 0x2a0   : > { %592 = vrot.lane.b32.xlu1 %v1095_v26, %s1164_s28  ;;  %v1097_v29 = vpop.eup %1096 }
 0x312   : > { %v593_v30 = vpop.permute.xlu1 %592 }
 0x313   : > { %v595_v31 = vadd.f32 %v1097_v29, %v593_v30 }
 0x315   : > { %1098 = vrcp.f32 %v595_v31 }
 0x322   : > { %v1099_v37 = vpop.eup %1098 }
 0x323   : > { %600 = vrot.lane.b32.xlu1 %v1099_v37, %s1165_s30  ;;  %v598_v38 = vmul.f32 %v1099_v37, %v1097_v29  ;;  %s1364_s30 = scalar_lea.vmem %s1449_s3, %s1323_s21  ;;  %s1373_s21 = scalar_lea.vmem [#allocation2], %s959_s12 }
 0x324   : > { %v815_v28 = vld [vmem:[%s1364_s30 + $0x8] sm:$0xff]  ;;  %v814_v32 = vld [vmem:[%s1364_s30] sm:$0xff]  ;;  %v817_v37 = vld [vmem:[%s1364_s30 + $0x18] sm:$0xff]  ;;  %s860_s20 = sshll.u32 %s1373_s21, 4  ;;  %s1398_s20 = int_to_ptr.vmem [resolvable:$true] %s860_s20 }
 0x325   : > { %v615_v44 = vrot.slane %v598_v38, %v1332_v36  ;;  %s1100_s27 = scalar_lea.vmem %s1398_s20, 1024 }
 0x326   : > { %p1101_p11 = scmp.ne.s32.totalorder %s1398_s20, %s1100_s27 }
 0x327   : > { %v616_v48 = vmul.f32 %v615_v44, %v604_v39  ;;  %v617_v49 = vmul.f32 %v615_v44, %v605_v40  ;;  %v618_v50 = vmul.f32 %v615_v44, %v606_v41  ;;  %v619_v51 = vmul.f32 %v615_v44, %v607_v42 }
 0x328   : > { %v620_v52 = vmul.f32 %v615_v44, %v608_v43  ;;  %v621_v53 = vmul.f32 %v615_v44, %v609_v45  ;;  %v622_v54 = vmul.f32 %v615_v44, %v610_v46  ;;  %v623_v55 = vmul.f32 %v615_v44, %v611_v47  ;;  %v816_v43 = vld [vmem:[%s1364_s30 + $0x10] sm:$0xff]  ;;  %p1102_p12 = pnand %p1101_p11, %p1262_p5 }
 0x32a   : > { %p1103_p13 = pneg %p1102_p12 }
 0x395   : > { %v601_v58 = vpop.permute.xlu1 %600 }
 0x396   : > { %v603_v59 = vmul.f32 %v1095_v26, %v601_v58 }
 0x398   : > { %v635_v60 = vrot.slane %v603_v59, %v1332_v36 }
 0x39a   : > { %637 = vrot.lane.b32.xlu0 %v635_v60, %s1164_s28 }
 0x40c   : > { %v638_v5 = vpop.permute.xlu0 %637 }
 0x40d   : > { %v640_v6 = vmul.f32 %v638_v5, %v624_v61  ;;  %v641_v7 = vmul.f32 %v638_v5, %v625_v62  ;;  %v642_v8 = vmul.f32 %v638_v5, %v626_v63  ;;  %v643_v9 = vmul.f32 %v638_v5, %v627_v0  ;;  %v821_v61 = vld [vmem:[%s1364_s30 + $0x38] sm:$0xff] }
 0x40e   : > { %v644_v10 = vmul.f32 %v638_v5, %v628_v1  ;;  %v645_v11 = vmul.f32 %v638_v5, %v629_v2  ;;  %v646_v12 = vmul.f32 %v638_v5, %v630_v3  ;;  %v647_v13 = vmul.f32 %v638_v5, %v631_v4  ;;  %v820_v3 = vld [vmem:[%s1364_s30 + $0x30] sm:$0xff] }
 0x40f   : > { %v648_v14 = vadd.f32 %v640_v6, %v616_v48  ;;  %v649_v15 = vadd.f32 %v641_v7, %v617_v49  ;;  %v650_v16 = vadd.f32 %v642_v8, %v618_v50  ;;  %v651_v17 = vadd.f32 %v643_v9, %v619_v51  ;;  %v819_v49 = vld [vmem:[%s1364_s30 + $0x28] sm:$0xff] }
 0x410   : > { %v652_v18 = vadd.f32 %v644_v10, %v620_v52  ;;  %v653_v19 = vadd.f32 %v645_v11, %v621_v53  ;;  %v654_v20 = vadd.f32 %v646_v12, %v622_v54  ;;  %v655_v21 = vadd.f32 %v647_v13, %v623_v55  ;;  %v818_v55 = vld [vmem:[%s1364_s30 + $0x20] sm:$0xff]  ;;  %s1104_s30 = sshll.u32 %s1166_s29, 4  ;;  %s1105_s30 = int_to_ptr.vmem [resolvable:$false] %s1104_s30 }
 0x411   : > { %1037 = vmatprep.mubr.msk.f32.mxu0 %vm418_vm1, %v648_v14  ;;  %s1106_s12 = scalar_lea.vmem %s1105_s30, 2048  ;;  %p1107_p0 = scmp.lt.s32.totalorder %s1398_s20, %s1105_s30 }
 0x412   : > { %1038 = vmatmul.mubr.msk.f32.vlgmr.msra.gmra.mxu0 %vm418_vm1, %v649_v15  ;;  %p1108_p1 = scmp.lt.s32.totalorder %s1106_s12, %s1100_s27 }
 0x413   : > { %1040 = vmatprep.mubr.msk.f32.mxu0 %vm418_vm1, %v650_v16 }
 0x414   : > { %p1109_p2 = por %p1108_p1, %p1107_p0 }
 0x416   : > { %1041 = vmatmul.mubr.msk.f32.gmra.mxu0 %vm418_vm1, %v651_v17  ;;  %p1110_p3 = pnand %p1109_p2, %p1103_p13 }
 0x417   : > { %1043 = vmatprep.mubr.msk.f32.mxu0 %vm418_vm1, %v652_v18 }
 0x41a   : > { %1044 = vmatmul.mubr.msk.f32.gmra.mxu0 %vm418_vm1, %v653_v19 }
 0x41b   : > { %1046 = vmatprep.mubr.msk.f32.mxu0 %vm418_vm1, %v654_v20 }
 0x41e   : > { %1047 = vmatmul.mubr.msk.f32.gmra.mxu0 %vm418_vm1, %v655_v21 }
 0x4d2   : > { %v1039_v26 = vpop.f32.mrf.mxu0 }
 0x4d3   : > { %v795_v27 = vmul.f32 %v1039_v26, %v793_v24 }
 0x4d4   : > { %v751_v29 = vpop.f32.mrf.mxu0 }
 0x4d5   : > { %v807_v30 = vadd.f32 %v805_v25, %v795_v27  ;;  %v794_v31 = vmul.f32 %v793_v24, %v751_v29 }
 0x4d6   : > { %v1042_v33 = vpop.f32.mrf.mxu0 }
 0x4d7   : > { %v823_v34 = vadd.f32 %v815_v28, %v807_v30  ;;  %v806_v35 = vadd.f32 %v805_v25, %v794_v31  ;;  %v797_v36 = vmul.f32 %v1042_v33, %v793_v24 }
 0x4d8   : > { %v761_v38 = vpop.f32.mrf.mxu0 }
 0x4d9   : > { %v831_v39 = vmax.f32 %v823_v34, 0.0  ;;  %v822_v40 = vadd.f32 %v814_v32, %v806_v35  ;;  %v809_v41 = vadd.f32 %v805_v25, %v797_v36  ;;  %v796_v42 = vmul.f32 %v793_v24, %v761_v38 }
 0x4da   : > { %v1045_v44 = vpop.f32.mrf.mxu0 }
 0x4db   : > { %839 = vst.msk [vmem:[%s1373_s21 + $0x8] sm:$0xff] %vm418_vm1, %v831_v39  ;;  %v830_v45 = vmax.f32 %v822_v40, 0.0  ;;  %v825_v46 = vadd.f32 %v817_v37, %v809_v41  ;;  %v808_v47 = vadd.f32 %v805_v25, %v796_v42  ;;  %v799_v48 = vmul.f32 %v1045_v44, %v793_v24 }
 0x4dc   : > { %v771_v50 = vpop.f32.mrf.mxu0 }
 0x4dd   : > { %838 = vst.msk [vmem:[%s1373_s21] sm:$0xff] %vm418_vm1, %v830_v45  ;;  %v833_v51 = vmax.f32 %v825_v46, 0.0  ;;  %v824_v52 = vadd.f32 %v816_v43, %v808_v47  ;;  %v811_v53 = vadd.f32 %v805_v25, %v799_v48  ;;  %v798_v54 = vmul.f32 %v793_v24, %v771_v50 }
 0x4de   : > { %v1048_v56 = vpop.f32.mrf.mxu0 }
 0x4df   : > { %841 = vst.msk [vmem:[%s1373_s21 + $0x18] sm:$0xff] %vm418_vm1, %v833_v51  ;;  %v832_v57 = vmax.f32 %v824_v52, 0.0  ;;  %v827_v58 = vadd.f32 %v819_v49, %v811_v53  ;;  %v810_v59 = vadd.f32 %v805_v25, %v798_v54  ;;  %v801_v60 = vmul.f32 %v1048_v56, %v793_v24 }
 0x4e0   : > { %v781_v62 = vpop.f32.mrf.mxu0 }
 0x4e1   : > { %840 = vst.msk [vmem:[%s1373_s21 + $0x10] sm:$0xff] %vm418_vm1, %v832_v57  ;;  %v835_v63 = vmax.f32 %v827_v58, 0.0  ;;  %v826_v0 = vadd.f32 %v818_v55, %v810_v59  ;;  %v813_v1 = vadd.f32 %v805_v25, %v801_v60  ;;  %v800_v2 = vmul.f32 %v793_v24, %v781_v62 }
 0x4e3   : > { %843 = vst.msk [vmem:[%s1373_s21 + $0x28] sm:$0xff] %vm418_vm1, %v835_v63  ;;  %v834_v4 = vmax.f32 %v826_v0, 0.0  ;;  %v829_v5 = vadd.f32 %v821_v61, %v813_v1  ;;  %v812_v6 = vadd.f32 %v805_v25, %v800_v2 }
 0x4e5   : > { %842 = vst.msk [vmem:[%s1373_s21 + $0x20] sm:$0xff] %vm418_vm1, %v834_v4  ;;  %v837_v7 = vmax.f32 %v829_v5, 0.0  ;;  %v828_v8 = vadd.f32 %v820_v3, %v812_v6 }
 0x4e7   : > { %845 = vst.msk [vmem:[%s1373_s21 + $0x38] sm:$0xff] %vm418_vm1, %v837_v7  ;;  %v836_v9 = vmax.f32 %v828_v8, 0.0 }
 0x4e9   : > { %844 = vst.msk [vmem:[%s1373_s21 + $0x30] sm:$0xff] %vm418_vm1, %v836_v9 }
 0x4ea   : > { %1113 = shalt.err (!%p1110_p3)
}
 0x4eb   : > { %s1114_s11 = scalar_lea.hbm %s1396_s26, 1024  ;;  %s1118_s25 = scalar_lea.hbm %s1456_s10, 2048 }
 0x4ec   : > { %p1115_p4 = scmp.ne.s32.totalorder %s1396_s26, %s1114_s11  ;;  %p1119_p9 = scmp.lt.s32.totalorder %s1396_s26, %s1456_s10 }
 0x4ed   : > { %p1120_p10 = scmp.lt.s32.totalorder %s1118_s25, %s1114_s11 }
 0x4ee   : > { %p1116_p7 = pnand %p1115_p4, %p1262_p5 }
 0x4ef   : > { %p1121_p11 = por %p1120_p10, %p1119_p9 }
 0x4f0   : > { %p1117_p8 = pneg %p1116_p7 }
 0x4f2   : > { %p1122_p12 = pnand %p1121_p11, %p1117_p8 }
 0x4f4   : > { %1125 = shalt.err (!%p1122_p12)
}
 0x4f5   : > { %s1167_s27 = smov 128   ;;  %s1168_s30 = smov 8  }
 0x4f6   : > { %1049 = dma.vmem_to_hbm [thread:$0]  (%p1262_p5), %s1398_s20, 1024, %s1396_s26, %s1406_s17, %s1167_s27, %s1167_s27, %s1168_s30  }
 0x4f7 PF: > { %p1055_p13 = scmp.ge.s32.totalorder %s1160_s16, 2  ;;  %s875_s12 = sand.u32 1, %s1148_s13  }
 0x4f8   : > { %s876_s11 = scalar_lea.sflag [#allocation3], %s875_s12 }
 0x4f9   : > { %p1052_p0 = pnand %p1055_p13, %p1266_p6 }
 0x4fb   : > { %p1053_p1 = pneg %p1052_p0 }
 0x4fd   : > { %1143 = dma.done.wait (%p1053_p1), %s876_s11, 1024  }
 0x4fe   : > { %1145 = vsyncadd (%p1053_p1), %s876_s11, 4294966272  ;;  %p20_p2 = scmp.ge.s32.totalorder %s1249_s19, 4   ;;  %s1459_s13 = smov %s1152_s14 }
 0x4ff   : > { %s1460_s14 = smov %s1156_s15  ;;  %s1461_s15 = smov %s1260_s22 }
 0x500   : > { %s1462_s16 = smov %s1249_s19  ;;  %22 = sbr.rel (!%p20_p2) target bundleno = 3 (0x3), region = 104 }
 0x505   :  { %881 = vsyncpa [#allocation3], 1 }
 0x506   :  { %883 = vsyncpa [#allocation3 + $0x1], 1 }

// kernel: cot_bottleneck_forward.2
= control target key start
LH: loop header
LB: loop body
LE: loop exit
PB: predicated region body
PF: predicated region fallthrough
CT: control target
= control target key end

     0   :  { %s6458_s21 = smov 0   ;;  %s8488_s0 = inlined_call_operand.vmem [shape: f32[2,64,32], index: 0, kind: input, shape index: {}]   ;;  %s8489_s1 = inlined_call_operand.vmem [shape: f32[9,64,64], index: 1, kind: input, shape index: {}]   ;;  %s8490_s2 = inlined_call_operand.vmem [shape: f32[32,32], index: 2, kind: input, shape index: {}]   ;;  %s8491_s3 = inlined_call_operand.vmem [shape: f32[9,32], index: 3, kind: input, shape index: {}]   ;;  %s8492_s4 = inlined_call_operand.vmem [shape: f32[32,16], index: 4, kind: input, shape index: {}]   ;;  %s8493_s5 = inlined_call_operand.vmem [shape: f32[32,16], index: 5, kind: input, shape index: {}]   ;;  %s8494_s6 = inlined_call_operand.vmem [shape: f32[16,36], index: 6, kind: input, shape index: {}]   ;;  %s8495_s7 = inlined_call_operand.vmem [shape: f32[32,32], index: 7, kind: input, shape index: {}]   ;;  %s8496_s8 = inlined_call_operand.vmem [shape: f32[36,4], index: 8, kind: input, shape index: {}]   ;;  %s8497_s9 = inlined_call_operand.vmem [shape: f32[4,36], index: 9, kind: input, shape index: {}]   ;;  %s8498_s10 = inlined_call_operand.vmem [shape: f32[36,288], index: 10, kind: input, shape index: {}]   ;;  %s8499_s11 = inlined_call_operand.vmem [shape: f32[8,32], index: 11, kind: input, shape index: {}]   ;;  %s8500_s12 = inlined_call_operand.vmem [shape: f32[2,16], index: 12, kind: input, shape index: {}]   ;;  %s8501_s13 = inlined_call_operand.vmem [shape: f32[3,36], index: 13, kind: input, shape index: {}]   ;;  %s8502_s14 = inlined_call_operand.vmem [shape: f32[2,64,32], index: 14, kind: output, shape index: {0}]   ;;  %s8503_s15 = inlined_call_operand.vmem [shape: f32[2,64,32], index: 15, kind: output, shape index: {1}]   ;;  %s8504_s16 = inlined_call_operand.vmem [shape: f32[2,1,32], index: 16, kind: output, shape index: {2}]  }
   0x1   :  { %8536 = sst [smem:[#allocation64_spill]] %s8488_s0 }
   0x2 LB: > { %s4907_s22 = sadd.s32 4294967295, %s6366_s21   ;;  %p4911_p0 = scmp.ge.s32.totalorder %s6366_s21, 1  ;;  %s6366_s21 = sphi %s6458_s21, %s27_s21  }
   0x3   : > { %p467_p1 = scmp.lt.s32.totalorder %s6366_s21, 3 }
   0x5   : > { %p468_p2 = pnand %p4911_p0, %p467_p1 }
   0x7   : > { %471 = sbr.rel (%p468_p2) target bundleno = 2424 (0x978), region = 76 }
   0xc   : > { %v557_v0 = vld [vmem:[%s8490_s2 + $0x18] sm:$0xff]  ;;  %v556_v1 = vld [vmem:[%s8490_s2 + $0x10] sm:$0xff]  ;;  %p525_p3 = scmp.lt.s32.totalorder %s4907_s22, 1  ;;  %v555_v2 = vld [vmem:[%s8490_s2 + $0x8] sm:$0xff]  ;;  %vm558_vm0 = vcmask 261120   ;;  %s8537_s19 = sld [smem:[#allocation64_spill]]  ;;  %v688_v14 = vlaneseq }
   0xd   : > { %5582 = vmatprep.subr.mxu1 %v557_v0  ;;  %v554_v3 = vld [vmem:[%s8490_s2] sm:$0xff]  ;;  %vm730_vm1 = vcmask 523264   ;;  %v723_v53 = vld [vmem:[%s8489_s1 + $0x8] sm:$0xff]  ;;  %v724_v55 = vld [vmem:[%s8489_s1 + $0x10] sm:$0xff]  ;;  %vm2480_vm2 = vcmask 130048   ;;  %vm2641_vm3 = vcmask 1043456  }
   0xe   : > { %5583 = vmatpush3.msra.mxu1 %v557_v0  ;;  %s8703_s22 = smov (!%p525_p3, %s4907_s22), 1  ;;  %v722_v12 = vld [vmem:[%s8489_s1] sm:$0xff]  ;;  %v6503_v17 = vshrl.u32 %v688_v14, 7  ;;  %v4935_v54 = vld [vmem:[%s8489_s1 + $0x48] sm:$0xff]  ;;  %v4936_v56 = vld [vmem:[%s8489_s1 + $0x50] sm:$0xff]  ;;  %vm6369_vm4 = vmmov 0  }
   0xf   : > { %5584 = vmatprep.subr.mxu1 %v556_v1  ;;  %s6481_s0 = sshll.u32 %s8703_s22, 6  ;;  %v4934_v13 = vld [vmem:[%s8489_s1 + $0x40] sm:$0xff]  ;;  %v725_v57 = vld [vmem:[%s8489_s1 + $0x18] sm:$0xff]  ;;  %v727_v61 = vld [vmem:[%s8489_s1 + $0x28] sm:$0xff]  ;;  %vm2616_vm5 = vcmask 293888   ;;  %vm2716_vm6 = vcmask 31744   ;;  %s542_s18 = scalar_lea.vmem %s8504_s16, %s8703_s22 }
  0x10   : > { %5585 = vmatpush3.msra.mxu1 %v556_v1  ;;  %5646 = vmatprep.mubr.msk.f32.mxu0 %vm730_vm1, %v4934_v13  ;;  %v6506_v20 = vsub.s32 0, %v6503_v17  ;;  %v6511_v21 = vld [vmem:[%s8499_s11] sm:$0xff]  ;;  %v6514_v23 = vsub.s32 1, %v6503_v17  ;;  %v4937_v58 = vld [vmem:[%s8489_s1 + $0x58] sm:$0xff]  ;;  %v4939_v62 = vld [vmem:[%s8489_s1 + $0x68] sm:$0xff]  ;;  %s7199_s23 = scalar_lea.vmem %s8503_s15, %s6481_s0  ;;  %s6370_s26 = smov 64  }
  0x11   : > { %5586 = vmatprep.subr.mxu1 %v555_v2  ;;  %v726_v59 = vld [vmem:[%s8489_s1 + $0x20] sm:$0xff]  ;;  %v728_v63 = vld [vmem:[%s8489_s1 + $0x30] sm:$0xff]  ;;  %v729_v1 = vld [vmem:[%s8489_s1 + $0x38] sm:$0xff]  ;;  %s6371_s27 = smov 96   ;;  %s6372_s28 = smov 32   ;;  %vm4792_vm7 = vcmask 253952  }
  0x12   : > { %s529_s20 = scalar_lea.vmem %s8537_s19, %s6481_s0  ;;  %5587 = vmatpush3.msra.mxu1 %v555_v2  ;;  %8538 = vst [vmem:[#allocation2_spill] sm:$0xff] %v6506_v20  ;;  %8539 = vst [vmem:[#allocation3_spill] sm:$0xff] %v6514_v23  ;;  %v691_v25 = vrot.slane %v6511_v21, %v6506_v20  ;;  %v703_v27 = vrot.slane %v6511_v21, %v6514_v23  ;;  %v4938_v60 = vld [vmem:[%s8489_s1 + $0x60] sm:$0xff]  ;;  %v4940_v0 = vld [vmem:[%s8489_s1 + $0x70] sm:$0xff] }
  0x13   : > { %v546_v4 = vld [vmem:[%s529_s20] sm:$0xff]  ;;  %v547_v5 = vld [vmem:[%s529_s20 + $0x8] sm:$0xff]  ;;  %5588 = vmatprep.subr.mxu1 %v554_v3  ;;  %v548_v6 = vld [vmem:[%s529_s20 + $0x10] sm:$0xff] }
  0x14   : > { %5590 = vmatprep.mubr.msk.f32.mxu1 %vm558_vm0, %v546_v4  ;;  %5589 = vmatpush3.msra.mxu1 %v554_v3  ;;  %v549_v7 = vld [vmem:[%s529_s20 + $0x18] sm:$0xff]  ;;  %v550_v8 = vld [vmem:[%s529_s20 + $0x20] sm:$0xff]  ;;  %v551_v9 = vld [vmem:[%s529_s20 + $0x28] sm:$0xff] }
  0x15   : > { %5591 = vmatmul.mubr.msk.f32.vlgmr.msra.gmra.mxu1 %vm558_vm0, %v547_v5  ;;  %v552_v10 = vld [vmem:[%s529_s20 + $0x30] sm:$0xff]  ;;  %v553_v11 = vld [vmem:[%s529_s20 + $0x38] sm:$0xff]  ;;  %v4950_v3 = vld [vmem:[%s8489_s1 + $0x80] sm:$0xff] }
  0x16   : > { %5593 = vmatprep.mubr.msk.f32.mxu1 %vm558_vm0, %v548_v6  ;;  %v4941_v2 = vld [vmem:[%s8489_s1 + $0x78] sm:$0xff]  ;;  %v4951_v4 = vld [vmem:[%s8489_s1 + $0x88] sm:$0xff]  ;;  %v4966_v5 = vld [vmem:[%s8489_s1 + $0xc0] sm:$0xff] }
  0x17   : > { %v4967_v6 = vld [vmem:[%s8489_s1 + $0xc8] sm:$0xff]  ;;  %v4970_v13 = vld [vmem:[%s8489_s1 + $0xe0] sm:$0xff] }
  0x18   : > { %v4971_v14 = vld [vmem:[%s8489_s1 + $0xe8] sm:$0xff] }
  0x19   : > { %5594 = vmatmul.mubr.msk.f32.gmra.mxu1 %vm558_vm0, %v549_v7  ;;  %v4952_v7 = vld [vmem:[%s8489_s1 + $0x90] sm:$0xff] }
  0x1a   : > { %5596 = vmatprep.mubr.msk.f32.mxu1 %vm558_vm0, %v550_v8  ;;  %v4953_v8 = vld [vmem:[%s8489_s1 + $0x98] sm:$0xff] }
  0x1d   : > { %5597 = vmatmul.mubr.msk.f32.gmra.mxu1 %vm558_vm0, %v551_v9  ;;  %v4968_v9 = vld [vmem:[%s8489_s1 + $0xd0] sm:$0xff] }
  0x1e   : > { %5599 = vmatprep.mubr.msk.f32.mxu1 %vm558_vm0, %v552_v10  ;;  %v4969_v10 = vld [vmem:[%s8489_s1 + $0xd8] sm:$0xff] }
  0x21   : > { %5600 = vmatmul.mubr.msk.f32.gmra.mxu1 %vm558_vm0, %v553_v11  ;;  %v4954_v11 = vld [vmem:[%s8489_s1 + $0xa0] sm:$0xff] }
  0x22   : > { %5618 = vmatprep.mubr.msk.f32.mxu1 %vm730_vm1, %v722_v12  ;;  %v4955_v12 = vld [vmem:[%s8489_s1 + $0xa8] sm:$0xff] }
  0xd5   : > { %v5592_v15 = vpop.f32.mrf.mxu1 }
  0xd6   : > { %v693_v41 = vmul.f32 %v5592_v15, %v691_v25  ;;  %v4956_v15 = vld [vmem:[%s8489_s1 + $0xb0] sm:$0xff] }
  0xd7   : > { %v649_v16 = vpop.f32.mrf.mxu1 }
  0xd8   : > { %v692_v44 = vmul.f32 %v691_v25, %v649_v16  ;;  %v705_v47 = vadd.f32 %v703_v27, %v693_v41  ;;  %v4957_v16 = vld [vmem:[%s8489_s1 + $0xb8] sm:$0xff]  ;;  %v5014_v41 = vld [vmem:[%s8489_s1 + $0x180] sm:$0xff] }
  0xd9   : > { %v5595_v18 = vpop.f32.mrf.mxu1 }
  0xda   : > { %v695_v34 = vmul.f32 %v5595_v18, %v691_v25  ;;  %v704_v49 = vadd.f32 %v703_v27, %v692_v44  ;;  %v6552_v51 = vmax.f32 %v705_v47, 0.0  ;;  %v4972_v18 = vld [vmem:[%s8489_s1 + $0xf0] sm:$0xff]  ;;  %v5030_v44 = vld [vmem:[%s8489_s1 + $0x1c0] sm:$0xff] }
  0xdb   : > { %v659_v19 = vpop.f32.mrf.mxu1  ;;  %v5016_v47 = vld [vmem:[%s8489_s1 + $0x190] sm:$0xff] }
  0xdc   : > { %v694_v38 = vmul.f32 %v691_v25, %v659_v19  ;;  %v707_v42 = vadd.f32 %v703_v27, %v695_v34  ;;  %8546 = vst [vmem:[#allocation10_spill] sm:$0xff] %v6552_v51  ;;  %v6558_v52 = vmax.f32 %v704_v49, 0.0  ;;  %v4973_v19 = vld [vmem:[%s8489_s1 + $0xf8] sm:$0xff]  ;;  %v5003_v34 = vld [vmem:[%s8489_s1 + $0x168] sm:$0xff]  ;;  %v5032_v49 = vld [vmem:[%s8489_s1 + $0x1d0] sm:$0xff] }
  0xdd   : > { %v5598_v22 = vpop.f32.mrf.mxu1 }
  0xde   : > { %v697_v28 = vmul.f32 %v5598_v22, %v691_v25  ;;  %v706_v45 = vadd.f32 %v703_v27, %v694_v38  ;;  %v6540_v48 = vmax.f32 %v707_v42, 0.0  ;;  %8547 = vst [vmem:[#allocation11_spill] sm:$0xff] %v6558_v52  ;;  %v4982_v22 = vld [vmem:[%s8489_s1 + $0x100] sm:$0xff]  ;;  %v5004_v38 = vld [vmem:[%s8489_s1 + $0x170] sm:$0xff]  ;;  %v5015_v42 = vld [vmem:[%s8489_s1 + $0x188] sm:$0xff] }
  0xdf   : > { %v669_v24 = vpop.f32.mrf.mxu1 }
  0xe0   : > { %v696_v31 = vmul.f32 %v691_v25, %v669_v24  ;;  %v709_v35 = vadd.f32 %v703_v27, %v697_v28  ;;  %8544 = vst [vmem:[#allocation8_spill] sm:$0xff] %v6540_v48  ;;  %v6546_v50 = vmax.f32 %v706_v45, 0.0  ;;  %v4983_v24 = vld [vmem:[%s8489_s1 + $0x108] sm:$0xff]  ;;  %v4985_v28 = vld [vmem:[%s8489_s1 + $0x118] sm:$0xff] }
  0xe1   : > { %v5601_v26 = vpop.f32.mrf.mxu1  ;;  %v5031_v45 = vld [vmem:[%s8489_s1 + $0x1c8] sm:$0xff] }
  0xe2   : > { %v699_v29 = vmul.f32 %v5601_v26, %v691_v25  ;;  %v708_v39 = vadd.f32 %v703_v27, %v696_v31  ;;  %v6528_v43 = vmax.f32 %v709_v35, 0.0  ;;  %8545 = vst [vmem:[#allocation9_spill] sm:$0xff] %v6546_v50  ;;  %v4999_v26 = vld [vmem:[%s8489_s1 + $0x148] sm:$0xff]  ;;  %v4986_v31 = vld [vmem:[%s8489_s1 + $0x120] sm:$0xff]  ;;  %v4988_v35 = vld [vmem:[%s8489_s1 + $0x130] sm:$0xff] }
  0xe3   : > { %v679_v30 = vpop.f32.mrf.mxu1 }
  0xe4   : > { %v711_v32 = vadd.f32 %v703_v27, %v699_v29  ;;  %v698_v33 = vmul.f32 %v691_v25, %v679_v30  ;;  %8542 = vst [vmem:[#allocation6_spill] sm:$0xff] %v6528_v43  ;;  %v6534_v46 = vmax.f32 %v708_v39, 0.0  ;;  %v4998_v25 = vld [vmem:[%s8489_s1 + $0x140] sm:$0xff]  ;;  %v5000_v29 = vld [vmem:[%s8489_s1 + $0x150] sm:$0xff]  ;;  %v5001_v30 = vld [vmem:[%s8489_s1 + $0x158] sm:$0xff] }
  0xe5   : > { %v5005_v39 = vld [vmem:[%s8489_s1 + $0x178] sm:$0xff] }
  0xe6   : > { %v6520_v36 = vmax.f32 %v711_v32, 0.0  ;;  %v710_v37 = vadd.f32 %v703_v27, %v698_v33  ;;  %8543 = vst [vmem:[#allocation7_spill] sm:$0xff] %v6534_v46  ;;  %v4984_v27 = vld [vmem:[%s8489_s1 + $0x110] sm:$0xff]  ;;  %v4987_v32 = vld [vmem:[%s8489_s1 + $0x128] sm:$0xff]  ;;  %v5002_v33 = vld [vmem:[%s8489_s1 + $0x160] sm:$0xff] }
  0xe8   : > { %8540 = vst [vmem:[#allocation4_spill] sm:$0xff] %v6520_v36  ;;  %v6522_v40 = vmax.f32 %v710_v37, 0.0  ;;  %5602 = vmatprep.subr.mxu1 %v6520_v36  ;;  %5630 = vmatprep.subr.mxu0 %v6520_v36  ;;  %v4989_v37 = vld [vmem:[%s8489_s1 + $0x138] sm:$0xff] }
  0xe9   : > { %5603 = vmatpush3.msra.mxu1 %v6520_v36  ;;  %5631 = vmatpush3.msra.mxu0 %v6520_v36 }
  0xea   : > { %8541 = vst [vmem:[#allocation5_spill] sm:$0xff] %v6522_v40  ;;  %5604 = vmatprep.subr.mxu1 %v6522_v40  ;;  %5632 = vmatprep.subr.mxu0 %v6522_v40 }
  0xeb   : > { %5605 = vmatpush3.msra.mxu1 %v6522_v40  ;;  %5633 = vmatpush3.msra.mxu0 %v6522_v40 }
  0xec   : > { %5606 = vmatprep.subr.mxu1 %v6528_v43  ;;  %5634 = vmatprep.subr.mxu0 %v6528_v43 }
  0xed   : > { %5607 = vmatpush3.msra.mxu1 %v6528_v43  ;;  %5635 = vmatpush3.msra.mxu0 %v6528_v43 }
  0xee   : > { %5608 = vmatprep.subr.mxu1 %v6534_v46  ;;  %5636 = vmatprep.subr.mxu0 %v6534_v46 }
  0xef   : > { %5609 = vmatpush3.msra.mxu1 %v6534_v46  ;;  %5637 = vmatpush3.msra.mxu0 %v6534_v46 }
  0xf0   : > { %5610 = vmatprep.subr.mxu1 %v6540_v48  ;;  %5638 = vmatprep.subr.mxu0 %v6540_v48 }
  0xf1   : > { %5611 = vmatpush3.msra.mxu1 %v6540_v48  ;;  %5639 = vmatpush3.msra.mxu0 %v6540_v48 }
  0xf2   : > { %5612 = vmatprep.subr.mxu1 %v6546_v50  ;;  %5640 = vmatprep.subr.mxu0 %v6546_v50 }
  0xf3   : > { %5613 = vmatpush3.msra.mxu1 %v6546_v50  ;;  %5641 = vmatpush3.msra.mxu0 %v6546_v50 }
  0xf4   : > { %5614 = vmatprep.subr.mxu1 %v6552_v51  ;;  %5642 = vmatprep.subr.mxu0 %v6552_v51 }
  0xf5   : > { %5615 = vmatpush3.msra.mxu1 %v6552_v51  ;;  %5643 = vmatpush3.msra.mxu0 %v6552_v51 }
  0xf6   : > { %5616 = vmatprep.subr.mxu1 %v6558_v52  ;;  %5644 = vmatprep.subr.mxu0 %v6558_v52 }
  0xf7   : > { %5617 = vmatpush3.msra.mxu1 %v6558_v52  ;;  %5645 = vmatpush3.msra.mxu0 %v6558_v52 }
  0xf8   : > { %5619 = vmatmul.mubr.msk.f32.vlgmr.msra.gmra.mxu1 %vm730_vm1, %v723_v53  ;;  %5647 = vmatmul.mubr.msk.f32.vlgmr.msra.gmra.mxu0 %vm730_vm1, %v4935_v54  ;;  %v5017_v53 = vld [vmem:[%s8489_s1 + $0x198] sm:$0xff] }
  0xf9   : > { %5658 = vmatprep.subr.mxu1 %v6520_v36  ;;  %5686 = vmatprep.subr.mxu0 %v6520_v36  ;;  %v5033_v54 = vld [vmem:[%s8489_s1 + $0x1d8] sm:$0xff] }
  0xfa   : > { %5659 = vmatpush3.msra.mxu1 %v6520_v36  ;;  %5687 = vmatpush3.msra.mxu0 %v6520_v36 }
  0xfb   : > { %5660 = vmatprep.subr.mxu1 %v6522_v40  ;;  %5688 = vmatprep.subr.mxu0 %v6522_v40 }
  0xfc   : > { %5621 = vmatprep.mubr.msk.f32.mxu1 %vm730_vm1, %v724_v55  ;;  %5649 = vmatprep.mubr.msk.f32.mxu0 %vm730_vm1, %v4936_v56  ;;  %v5018_v55 = vld [vmem:[%s8489_s1 + $0x1a0] sm:$0xff] }
  0xfd   : > { %5661 = vmatpush3.msra.mxu1 %v6522_v40  ;;  %5689 = vmatpush3.msra.mxu0 %v6522_v40  ;;  %v5034_v56 = vld [vmem:[%s8489_s1 + $0x1e0] sm:$0xff] }
  0xfe   : > { %5622 = vmatmul.mubr.msk.f32.gmra.mxu1 %vm730_vm1, %v725_v57  ;;  %5650 = vmatmul.mubr.msk.f32.gmra.mxu0 %vm730_vm1, %v4937_v58  ;;  %v5019_v57 = vld [vmem:[%s8489_s1 + $0x1a8] sm:$0xff] }
  0xff   : > { %5662 = vmatprep.subr.mxu1 %v6528_v43  ;;  %5690 = vmatprep.subr.mxu0 %v6528_v43  ;;  %v5035_v58 = vld [vmem:[%s8489_s1 + $0x1e8] sm:$0xff] }
 0x100   : > { %5663 = vmatpush3.msra.mxu1 %v6528_v43  ;;  %5691 = vmatpush3.msra.mxu0 %v6528_v43 }
 0x101   : > { %5664 = vmatprep.subr.mxu1 %v6534_v46  ;;  %5692 = vmatprep.subr.mxu0 %v6534_v46 }
 0x102   : > { %5624 = vmatprep.mubr.msk.f32.mxu1 %vm730_vm1, %v726_v59  ;;  %5652 = vmatprep.mubr.msk.f32.mxu0 %vm730_vm1, %v4938_v60  ;;  %v5020_v59 = vld [vmem:[%s8489_s1 + $0x1b0] sm:$0xff] }
 0x103   : > { %5665 = vmatpush3.msra.mxu1 %v6534_v46  ;;  %5693 = vmatpush3.msra.mxu0 %v6534_v46  ;;  %v5036_v60 = vld [vmem:[%s8489_s1 + $0x1f0] sm:$0xff] }
 0x104   : > { %5625 = vmatmul.mubr.msk.f32.gmra.mxu1 %vm730_vm1, %v727_v61  ;;  %5653 = vmatmul.mubr.msk.f32.gmra.mxu0 %vm730_vm1, %v4939_v62  ;;  %v5021_v61 = vld [vmem:[%s8489_s1 + $0x1b8] sm:$0xff] }
 0x105   : > { %5666 = vmatprep.subr.mxu1 %v6540_v48  ;;  %5694 = vmatprep.subr.mxu0 %v6540_v48  ;;  %v5037_v62 = vld [vmem:[%s8489_s1 + $0x1f8] sm:$0xff] }
 0x106   : > { %5667 = vmatpush3.msra.mxu1 %v6540_v48  ;;  %5695 = vmatpush3.msra.mxu0 %v6540_v48 }
 0x107   : > { %5668 = vmatprep.subr.mxu1 %v6546_v50  ;;  %5696 = vmatprep.subr.mxu0 %v6546_v50 }
 0x108   : > { %5627 = vmatprep.mubr.msk.f32.mxu1 %vm730_vm1, %v728_v63  ;;  %5655 = vmatprep.mubr.msk.f32.mxu0 %vm730_vm1, %v4940_v0  ;;  %v5046_v63 = vld [vmem:[%s8489_s1 + $0x200] sm:$0xff]  ;;  %v5047_v0 = vld [vmem:[%s8489_s1 + $0x208] sm:$0xff] }
 0x109   : > { %5669 = vmatpush3.msra.mxu1 %v6546_v50  ;;  %5697 = vmatpush3.msra.mxu0 %v6546_v50 }
 0x10a   : > { %5628 = vmatmul.mubr.msk.f32.gmra.mxu1 %vm730_vm1, %v729_v1  ;;  %5656 = vmatmul.mubr.msk.f32.gmra.mxu0 %vm730_vm1, %v4941_v2  ;;  %v2179_v1 = vld [vmem:[%s8492_s4 + $0x18] sm:$0xff]  ;;  %v5048_v2 = vld [vmem:[%s8489_s1 + $0x210] sm:$0xff] }
 0x10b   : > { %5670 = vmatprep.subr.mxu1 %v6552_v51  ;;  %5698 = vmatprep.subr.mxu0 %v6552_v51 }
 0x10c   : > { %5671 = vmatpush3.msra.mxu1 %v6552_v51  ;;  %5699 = vmatpush3.msra.mxu0 %v6552_v51 }
 0x10d   : > { %5672 = vmatprep.subr.mxu1 %v6558_v52  ;;  %5700 = vmatprep.subr.mxu0 %v6558_v52 }
 0x10e   : > { %5673 = vmatpush3.msra.mxu1 %v6558_v52  ;;  %5674 = vmatprep.mubr.msk.f32.mxu1 %vm730_vm1, %v4950_v3  ;;  %v2178_v3 = vld [vmem:[%s8492_s4 + $0x10] sm:$0xff] }
 0x10f   : > { %5701 = vmatpush3.msra.mxu0 %v6558_v52  ;;  %5675 = vmatmul.mubr.msk.f32.vlgmr.msra.gmra.mxu1 %vm730_vm1, %v4951_v4  ;;  %v5049_v4 = vld [vmem:[%s8489_s1 + $0x218] sm:$0xff] }
 0x110   : > { %5702 = vmatprep.mubr.msk.f32.mxu0 %vm730_vm1, %v4966_v5  ;;  %5714 = vmatprep.subr.mxu1 %v6520_v36  ;;  %v2177_v5 = vld [vmem:[%s8492_s4 + $0x8] sm:$0xff] }
 0x111   : > { %5742 = vmatprep.subr.mxu0 %v6520_v36  ;;  %5703 = vmatmul.mubr.msk.f32.vlgmr.msra.gmra.mxu0 %vm730_vm1, %v4967_v6  ;;  %v5050_v6 = vld [vmem:[%s8489_s1 + $0x220] sm:$0xff] }
 0x112   : > { %5715 = vmatpush3.msra.mxu1 %v6520_v36  ;;  %5743 = vmatpush3.msra.mxu0 %v6520_v36 }
 0x113   : > { %5716 = vmatprep.subr.mxu1 %v6522_v40  ;;  %5744 = vmatprep.subr.mxu0 %v6522_v40 }
 0x114   : > { %5677 = vmatprep.mubr.msk.f32.mxu1 %vm730_vm1, %v4952_v7  ;;  %5717 = vmatpush3.msra.mxu1 %v6522_v40  ;;  %v2176_v7 = vld [vmem:[%s8492_s4] sm:$0xff] }
 0x115   : > { %5745 = vmatpush3.msra.mxu0 %v6522_v40  ;;  %5678 = vmatmul.mubr.msk.f32.gmra.mxu1 %vm730_vm1, %v4953_v8  ;;  %v5051_v8 = vld [vmem:[%s8489_s1 + $0x228] sm:$0xff] }
 0x116   : > { %5705 = vmatprep.mubr.msk.f32.mxu0 %vm730_vm1, %v4968_v9  ;;  %5718 = vmatprep.subr.mxu1 %v6528_v43  ;;  %v5052_v9 = vld [vmem:[%s8489_s1 + $0x230] sm:$0xff] }
 0x117   : > { %5746 = vmatprep.subr.mxu0 %v6528_v43  ;;  %5706 = vmatmul.mubr.msk.f32.gmra.mxu0 %vm730_vm1, %v4969_v10  ;;  %v5053_v10 = vld [vmem:[%s8489_s1 + $0x238] sm:$0xff] }
 0x118   : > { %5719 = vmatpush3.msra.mxu1 %v6528_v43  ;;  %5747 = vmatpush3.msra.mxu0 %v6528_v43 }
 0x119   : > { %5720 = vmatprep.subr.mxu1 %v6534_v46  ;;  %5748 = vmatprep.subr.mxu0 %v6534_v46 }
 0x11a   : > { %5680 = vmatprep.mubr.msk.f32.mxu1 %vm730_vm1, %v4954_v11  ;;  %5721 = vmatpush3.msra.mxu1 %v6534_v46  ;;  %v2183_v11 = vld [vmem:[%s8493_s5 + $0x18] sm:$0xff] }
 0x11b   : > { %5749 = vmatpush3.msra.mxu0 %v6534_v46  ;;  %5681 = vmatmul.mubr.msk.f32.gmra.mxu1 %vm730_vm1, %v4955_v12  ;;  %v2182_v12 = vld [vmem:[%s8493_s5 + $0x10] sm:$0xff] }
 0x11c   : > { %5708 = vmatprep.mubr.msk.f32.mxu0 %vm730_vm1, %v4970_v13  ;;  %5722 = vmatprep.subr.mxu1 %v6540_v48  ;;  %v2181_v13 = vld [vmem:[%s8493_s5 + $0x8] sm:$0xff] }
 0x11d   : > { %5750 = vmatprep.subr.mxu0 %v6540_v48  ;;  %5709 = vmatmul.mubr.msk.f32.gmra.mxu0 %vm730_vm1, %v4971_v14  ;;  %v2180_v14 = vld [vmem:[%s8493_s5] sm:$0xff] }
 0x11e   : > { %5723 = vmatpush3.msra.mxu1 %v6540_v48  ;;  %5751 = vmatpush3.msra.mxu0 %v6540_v48 }
 0x11f   : > { %5724 = vmatprep.subr.mxu1 %v6546_v50  ;;  %5752 = vmatprep.subr.mxu0 %v6546_v50 }
 0x120   : > { %5683 = vmatprep.mubr.msk.f32.mxu1 %vm730_vm1, %v4956_v15  ;;  %5725 = vmatpush3.msra.mxu1 %v6546_v50 }
 0x121   : > { %5753 = vmatpush3.msra.mxu0 %v6546_v50  ;;  %5684 = vmatmul.mubr.msk.f32.gmra.mxu1 %vm730_vm1, %v4957_v16 }
 0x122   : > { %5711 = vmatprep.mubr.msk.f32.mxu0 %vm730_vm1, %v4972_v18  ;;  %5726 = vmatprep.subr.mxu1 %v6552_v51 }
 0x123   : > { %5754 = vmatprep.subr.mxu0 %v6552_v51  ;;  %5712 = vmatmul.mubr.msk.f32.gmra.mxu0 %vm730_vm1, %v4973_v19 }
 0x124   : > { %5727 = vmatpush3.msra.mxu1 %v6552_v51  ;;  %5755 = vmatpush3.msra.mxu0 %v6552_v51 }
 0x125   : > { %5728 = vmatprep.subr.mxu1 %v6558_v52  ;;  %5756 = vmatprep.subr.mxu0 %v6558_v52 }
 0x126   : > { %5729 = vmatpush3.msra.mxu1 %v6558_v52  ;;  %5730 = vmatprep.mubr.msk.f32.mxu1 %vm730_vm1, %v4982_v22 }
 0x127   : > { %5757 = vmatpush3.msra.mxu0 %v6558_v52  ;;  %5731 = vmatmul.mubr.msk.f32.vlgmr.msra.gmra.mxu1 %vm730_vm1, %v4983_v24 }
 0x128   : > { %5758 = vmatprep.mubr.msk.f32.mxu0 %vm730_vm1, %v4998_v25  ;;  %5770 = vmatprep.subr.mxu1 %v6520_v36 }
 0x129   : > { %5798 = vmatprep.subr.mxu0 %v6520_v36  ;;  %5759 = vmatmul.mubr.msk.f32.vlgmr.msra.gmra.mxu0 %vm730_vm1, %v4999_v26 }
 0x12a   : > { %5771 = vmatpush3.msra.mxu1 %v6520_v36  ;;  %5799 = vmatpush3.msra.mxu0 %v6520_v36 }
 0x12b   : > { %5772 = vmatprep.subr.mxu1 %v6522_v40  ;;  %5800 = vmatprep.subr.mxu0 %v6522_v40 }
 0x12c   : > { %5733 = vmatprep.mubr.msk.f32.mxu1 %vm730_vm1, %v4984_v27  ;;  %5773 = vmatpush3.msra.mxu1 %v6522_v40 }
 0x12d   : > { %5801 = vmatpush3.msra.mxu0 %v6522_v40  ;;  %5734 = vmatmul.mubr.msk.f32.gmra.mxu1 %vm730_vm1, %v4985_v28 }
 0x12e   : > { %5774 = vmatprep.subr.mxu1 %v6528_v43  ;;  %5802 = vmatprep.subr.mxu0 %v6528_v43 }
 0x12f   : > { %5761 = vmatprep.mubr.msk.f32.mxu0 %vm730_vm1, %v5000_v29  ;;  %5775 = vmatpush3.msra.mxu1 %v6528_v43 }
 0x130   : > { %5803 = vmatpush3.msra.mxu0 %v6528_v43  ;;  %5776 = vmatprep.subr.mxu1 %v6534_v46 }
 0x131   : > { %5762 = vmatmul.mubr.msk.f32.gmra.mxu0 %vm730_vm1, %v5001_v30  ;;  %5804 = vmatprep.subr.mxu0 %v6534_v46 }
 0x132   : > { %5736 = vmatprep.mubr.msk.f32.mxu1 %vm730_vm1, %v4986_v31  ;;  %5777 = vmatpush3.msra.mxu1 %v6534_v46 }
 0x133   : > { %5805 = vmatpush3.msra.mxu0 %v6534_v46  ;;  %5737 = vmatmul.mubr.msk.f32.gmra.mxu1 %vm730_vm1, %v4987_v32 }
 0x134   : > { %5778 = vmatprep.subr.mxu1 %v6540_v48  ;;  %5806 = vmatprep.subr.mxu0 %v6540_v48 }
 0x135   : > { %5764 = vmatprep.mubr.msk.f32.mxu0 %vm730_vm1, %v5002_v33  ;;  %5779 = vmatpush3.msra.mxu1 %v6540_v48 }
 0x136   : > { %5807 = vmatpush3.msra.mxu0 %v6540_v48  ;;  %5780 = vmatprep.subr.mxu1 %v6546_v50 }
 0x137   : > { %5765 = vmatmul.mubr.msk.f32.gmra.mxu0 %vm730_vm1, %v5003_v34  ;;  %5808 = vmatprep.subr.mxu0 %v6546_v50 }
 0x138   : > { %5739 = vmatprep.mubr.msk.f32.mxu1 %vm730_vm1, %v4988_v35  ;;  %5781 = vmatpush3.msra.mxu1 %v6546_v50 }
 0x139   : > { %5809 = vmatpush3.msra.mxu0 %v6546_v50  ;;  %5740 = vmatmul.mubr.msk.f32.gmra.mxu1 %vm730_vm1, %v4989_v37 }
 0x13a   : > { %5782 = vmatprep.subr.mxu1 %v6552_v51  ;;  %5810 = vmatprep.subr.mxu0 %v6552_v51 }
 0x13b   : > { %5767 = vmatprep.mubr.msk.f32.mxu0 %vm730_vm1, %v5004_v38  ;;  %5783 = vmatpush3.msra.mxu1 %v6552_v51 }
 0x13c   : > { %5811 = vmatpush3.msra.mxu0 %v6552_v51  ;;  %5784 = vmatprep.subr.mxu1 %v6558_v52 }
 0x13d   : > { %5768 = vmatmul.mubr.msk.f32.gmra.mxu0 %vm730_vm1, %v5005_v39  ;;  %5812 = vmatprep.subr.mxu0 %v6558_v52 }
 0x13e   : > { %5785 = vmatpush3.msra.mxu1 %v6558_v52  ;;  %5786 = vmatprep.mubr.msk.f32.mxu1 %vm730_vm1, %v5014_v41 }
 0x13f   : > { %5813 = vmatpush3.msra.mxu0 %v6558_v52  ;;  %5787 = vmatmul.mubr.msk.f32.vlgmr.msra.gmra.mxu1 %vm730_vm1, %v5015_v42 }
 0x140   : > { %5826 = vmatprep.subr.mxu1 %v6520_v36  ;;  %5814 = vmatprep.mubr.msk.f32.mxu0 %vm730_vm1, %v5030_v44 }
 0x141   : > { %5827 = vmatpush3.msra.mxu1 %v6520_v36  ;;  %5815 = vmatmul.mubr.msk.f32.vlgmr.msra.gmra.mxu0 %vm730_vm1, %v5031_v45 }
 0x142   : > { %5828 = vmatprep.subr.mxu1 %v6522_v40  ;;  %5789 = vmatprep.mubr.msk.f32.mxu1 %vm730_vm1, %v5016_v47 }
 0x143   : > { %5829 = vmatpush3.msra.mxu1 %v6522_v40  ;;  %5817 = vmatprep.mubr.msk.f32.mxu0 %vm730_vm1, %v5032_v49 }
 0x144   : > { %5790 = vmatmul.mubr.msk.f32.gmra.mxu1 %vm730_vm1, %v5017_v53  ;;  %5830 = vmatprep.subr.mxu1 %v6528_v43 }
 0x145   : > { %5831 = vmatpush3.msra.mxu1 %v6528_v43  ;;  %5818 = vmatmul.mubr.msk.f32.gmra.mxu0 %vm730_vm1, %v5033_v54 }
 0x146   : > { %5832 = vmatprep.subr.mxu1 %v6534_v46  ;;  %5792 = vmatprep.mubr.msk.f32.mxu1 %vm730_vm1, %v5018_v55 }
 0x147   : > { %5833 = vmatpush3.msra.mxu1 %v6534_v46  ;;  %5820 = vmatprep.mubr.msk.f32.mxu0 %vm730_vm1, %v5034_v56 }
 0x148   : > { %5793 = vmatmul.mubr.msk.f32.gmra.mxu1 %vm730_vm1, %v5019_v57  ;;  %5834 = vmatprep.subr.mxu1 %v6540_v48 }
 0x149   : > { %5835 = vmatpush3.msra.mxu1 %v6540_v48  ;;  %5821 = vmatmul.mubr.msk.f32.gmra.mxu0 %vm730_vm1, %v5035_v58 }
 0x14a   : > { %5836 = vmatprep.subr.mxu1 %v6546_v50  ;;  %5795 = vmatprep.mubr.msk.f32.mxu1 %vm730_vm1, %v5020_v59 }
 0x14b   : > { %5837 = vmatpush3.msra.mxu1 %v6546_v50  ;;  %5823 = vmatprep.mubr.msk.f32.mxu0 %vm730_vm1, %v5036_v60 }
 0x14c   : > { %5796 = vmatmul.mubr.msk.f32.gmra.mxu1 %vm730_vm1, %v5021_v61  ;;  %5838 = vmatprep.subr.mxu1 %v6552_v51 }
 0x14d   : > { %5839 = vmatpush3.msra.mxu1 %v6552_v51  ;;  %5824 = vmatmul.mubr.msk.f32.gmra.mxu0 %vm730_vm1, %v5037_v62 }
 0x14e   : > { %5840 = vmatprep.subr.mxu1 %v6558_v52  ;;  %5842 = vmatprep.mubr.msk.f32.mxu1 %vm730_vm1, %v5046_v63 }
 0x14f   : > { %5841 = vmatpush3.msra.mxu1 %v6558_v52  ;;  %5854 = vmatprep.subr.mxu0 %v2183_v11 }
 0x150   : > { %5843 = vmatmul.mubr.msk.f32.vlgmr.msra.gmra.mxu1 %vm730_vm1, %v5047_v0  ;;  %5874 = vmatprep.subr.mxu1 %v2179_v1 }
 0x151   : > { %5845 = vmatprep.mubr.msk.f32.mxu1 %vm730_vm1, %v5048_v2  ;;  %5875 = vmatpush3.msra.mxu1 %v2179_v1  ;;  %v720_v2 = vld [vmem:[%s8491_s3] sm:$0xff] }
 0x152   : > { %5876 = vmatprep.subr.mxu1 %v2178_v3  ;;  %5855 = vmatpush3.msra.mxu0 %v2183_v11 }
 0x153   : > { %5877 = vmatpush3.msra.mxu1 %v2178_v3  ;;  %5856 = vmatprep.subr.mxu0 %v2182_v12  ;;  %v7050_v3 = vsub.s32 2, %v6503_v17 }
 0x154   : > { %5846 = vmatmul.mubr.msk.f32.gmra.mxu1 %vm730_vm1, %v5049_v4  ;;  %5878 = vmatprep.subr.mxu1 %v2177_v5  ;;  %v1336_v4 = vsub.s32 3, %v6503_v17 }
 0x155   : > { %5848 = vmatprep.mubr.msk.f32.mxu1 %vm730_vm1, %v5050_v6  ;;  %5879 = vmatpush3.msra.mxu1 %v2177_v5 }
 0x156   : > { %5880 = vmatprep.subr.mxu1 %v2176_v7  ;;  %5857 = vmatpush3.msra.mxu0 %v2182_v12  ;;  %v7064_v12 = vrot.slane %v720_v2, %v7050_v3 }
 0x157   : > { %5881 = vmatpush3.msra.mxu1 %v2176_v7  ;;  %5858 = vmatprep.subr.mxu0 %v2181_v13  ;;  %v8518_v7 = vsub.s32 4, %v6503_v17 }
 0x158   : > { %5849 = vmatmul.mubr.msk.f32.gmra.mxu1 %vm730_vm1, %v5051_v8  ;;  %5859 = vmatpush3.msra.mxu0 %v2181_v13  ;;  %v8519_v8 = vsub.s32 5, %v6503_v17  ;;  %v7066_v13 = vrot.slane %v720_v2, %v1336_v4 }
 0x159   : > { %5851 = vmatprep.mubr.msk.f32.mxu1 %vm730_vm1, %v5052_v9  ;;  %5860 = vmatprep.subr.mxu0 %v2180_v14  ;;  %v863_v9 = vrot.slane %v720_v2, %v6506_v20 }
 0x15a   : > { %5861 = vmatpush3.msra.mxu0 %v2180_v14  ;;  %v7069_v14 = vrot.slane %v6511_v21, %v1336_v4 }
 0x15c   : > { %5852 = vmatmul.mubr.msk.f32.gmra.mxu1 %vm730_vm1, %v5053_v10  ;;  %v1021_v10 = vrot.slane %v720_v2, %v6514_v23  ;;  %8553 = vst [vmem:[#allocation17_spill] sm:$0xff] %v7069_v14 }
 0x15d   : > { %5882 = vmatprep.mubr.msk.f32.mxu1 %vm558_vm0, %v6558_v52 }
 0x160   : > { %5883 = vmatmul.mubr.msk.f32.vlgmr.msra.gmra.mxu1 %vm558_vm0, %v6552_v51 }
 0x161   : > { %5885 = vmatprep.mubr.msk.f32.mxu1 %vm558_vm0, %v6546_v50 }
 0x164   : > { %5886 = vmatmul.mubr.msk.f32.gmra.mxu1 %vm558_vm0, %v6540_v48 }
 0x165   : > { %5888 = vmatprep.mubr.msk.f32.mxu1 %vm558_vm0, %v6534_v46 }
 0x168   : > { %5889 = vmatmul.mubr.msk.f32.gmra.mxu1 %vm558_vm0, %v6528_v43  ;;  %v7079_v43 = vrot.slane %v720_v2, %v8519_v8 }
 0x169   : > { %5891 = vmatprep.mubr.msk.f32.mxu1 %vm558_vm0, %v6522_v40  ;;  %v7075_v40 = vrot.slane %v720_v2, %v8518_v7 }
 0x16c   : > { %5892 = vmatmul.mubr.msk.f32.gmra.mxu1 %vm558_vm0, %v6520_v36 }
 0x1b8   : > { %v5620_v15 = vpop.f32.mrf.mxu1  ;;  %v5648_v16 = vpop.f32.mrf.mxu0 }
 0x1b9   : > { %v865_v50 = vmul.f32 %v5620_v15, %v863_v9  ;;  %v1023_v51 = vmul.f32 %v5648_v16, %v1021_v10  ;;  %v8555_v16 = vsub.s32 6, %v6503_v17 }
 0x1ba   : > { %v821_v18 = vpop.f32.mrf.mxu1  ;;  %v979_v19 = vpop.f32.mrf.mxu0 }
 0x1bb   : > { %v864_v52 = vmul.f32 %v863_v9, %v821_v18  ;;  %v1022_v23 = vmul.f32 %v1021_v10, %v979_v19  ;;  %v7092_v18 = vrot.slane %v720_v2, %v8555_v16  ;;  %v1031_v19 = vadd.f32 %v1023_v51, %v865_v50 }
 0x1be   : > { %v5623_v22 = vpop.f32.mrf.mxu1  ;;  %v5651_v24 = vpop.f32.mrf.mxu0 }
 0x1bf   : > { %v867_v14 = vmul.f32 %v5623_v22, %v863_v9 }
 0x1c0   : > { %v831_v25 = vpop.f32.mrf.mxu1  ;;  %v989_v26 = vpop.f32.mrf.mxu0 }
 0x1c1   : > { %v866_v7 = vmul.f32 %v863_v9, %v831_v25  ;;  %v8556_v25 = vsub.s32 7, %v6503_v17 }
 0x1c4   : > { %v5626_v27 = vpop.f32.mrf.mxu1  ;;  %v5654_v28 = vpop.f32.mrf.mxu0 }
 0x1c6   : > { %v841_v29 = vpop.f32.mrf.mxu1  ;;  %v999_v30 = vpop.f32.mrf.mxu0 }
 0x1c7   : > { %v868_v8 = vmul.f32 %v863_v9, %v841_v29 }
 0x1ca   : > { %v5629_v31 = vpop.f32.mrf.mxu1  ;;  %v5657_v32 = vpop.f32.mrf.mxu0 }
 0x1cb   : > { %v871_v46 = vmul.f32 %v5629_v31, %v863_v9  ;;  %v1029_v48 = vmul.f32 %v5657_v32, %v1021_v10 }
 0x1cc   : > { %v7000_v33 = vpop.f32.mrf.mxu1  ;;  %v7002_v34 = vpop.f32.mrf.mxu0 }
 0x1cd   : > { %v1037_v16 = vadd.f32 %v1029_v48, %v871_v46 }
 0x1cf   : > { %v5676_v35 = vpop.f32.mrf.mxu1 }
 0x1d0   : > { %v1181_v15 = vmul.f32 %v5676_v35, %v7064_v12 }
 0x1d1   : > { %v1137_v37 = vpop.f32.mrf.mxu1  ;;  %v7004_v38 = vpop.f32.mrf.mxu0 }
 0x1d2   : > { %v1180_v22 = vmul.f32 %v7064_v12, %v1137_v37 }
 0x1d3   : > { %v7006_v39 = vpop.f32.mrf.mxu0 }
 0x1d4   : > { %v1338_v46 = vmul.f32 %v7066_v13, %v7006_v39 }
 0x1d5   : > { %v7008_v41 = vpop.f32.mrf.mxu1 }
 0x1d6   : > { %v1183_v31 = vmul.f32 %v7008_v41, %v7064_v12  ;;  %v1028_v41 = vmul.f32 %v1021_v10, %v7002_v34 }
 0x1d7   : > { %v7010_v42 = vpop.f32.mrf.mxu1  ;;  %v7012_v44 = vpop.f32.mrf.mxu0 }
 0x1d8   : > { %v1182_v51 = vmul.f32 %v7064_v12, %v7010_v42  ;;  %v1341_v48 = vmul.f32 %v7012_v44, %v7066_v13 }
 0x1d9   : > { %v7014_v45 = vpop.f32.mrf.mxu0 }
 0x1da   : > { %v1340_v34 = vmul.f32 %v7066_v13, %v7014_v45 }
 0x1db   : > { %v7016_v47 = vpop.f32.mrf.mxu1 }
 0x1dc   : > { %v1185_v35 = vmul.f32 %v7016_v47, %v7064_v12 }
 0x1dd   : > { %v7018_v49 = vpop.f32.mrf.mxu1  ;;  %v7020_v53 = vpop.f32.mrf.mxu0 }
 0x1df   : > { %v7022_v54 = vpop.f32.mrf.mxu0 }
 0x1e0   : > { %v1342_v39 = vmul.f32 %v7066_v13, %v7022_v54 }
 0x1e1   : > { %v7024_v55 = vpop.f32.mrf.mxu1 }
 0x1e2   : > { %v1187_v42 = vmul.f32 %v7024_v55, %v7064_v12  ;;  %v1343_v55 = vmul.f32 %v7020_v53, %v7066_v13 }
 0x1e3   : > { %v7026_v56 = vpop.f32.mrf.mxu1  ;;  %v7028_v57 = vpop.f32.mrf.mxu0 }
 0x1e4   : > { %v1186_v44 = vmul.f32 %v7064_v12, %v7026_v56 }
 0x1e5   : > { %v7030_v58 = vpop.f32.mrf.mxu0 }
 0x1e6   : > { %8548 = vst [vmem:[#allocation12_spill] sm:$0xff] %v7030_v58  ;;  %v1027_v58 = vmul.f32 %v5654_v28, %v1021_v10  ;;  %v1030_v28 = vadd.f32 %v1022_v23, %v864_v52  ;;  %v1339_v23 = vmul.f32 %v7004_v38, %v7066_v13  ;;  %v870_v52 = vmul.f32 %v863_v9, %v7000_v33 }
 0x1e7   : > { %v7032_v59 = vpop.f32.mrf.mxu1 }
 0x1e8   : > { %v1497_v38 = vmul.f32 %v7032_v59, %v7075_v40  ;;  %v1195_v59 = vadd.f32 %v1187_v42, %v1037_v16 }
 0x1e9   : > { %v7034_v60 = vpop.f32.mrf.mxu1  ;;  %v7036_v61 = vpop.f32.mrf.mxu0 }
 0x1ea   : > { %v1496_v45 = vmul.f32 %v7075_v40, %v7034_v60 }
 0x1eb   : > { %v7040_v63 = vpop.f32.mrf.mxu0 }
 0x1ec   : > { %8549 = vst [vmem:[#allocation13_spill] sm:$0xff] %v7040_v63  ;;  %v1026_v63 = vmul.f32 %v1021_v10, %v999_v30 }
 0x1ed   : > { %v7038_v62 = vpop.f32.mrf.mxu1 }
 0x1ee   : > { %v1034_v50 = vadd.f32 %v1026_v63, %v868_v8  ;;  %v1499_v54 = vmul.f32 %v7038_v62, %v7075_v40 }
 0x1ef   : > { %v7042_v0 = vpop.f32.mrf.mxu1 }
 0x1f1   : > { %v7044_v1 = vpop.f32.mrf.mxu0 }
 0x1f2   : > { %8550 = vst [vmem:[#allocation14_spill] sm:$0xff] %v7044_v1  ;;  %v869_v1 = vmul.f32 %v5626_v27, %v863_v9  ;;  %v7103_v27 = vrot.slane %v6511_v21, %v7050_v3  ;;  %v1189_v21 = vadd.f32 %v1181_v15, %v1031_v19 }
 0x1f3   : > { %v7053_v5 = vpop.f32.mrf.mxu1  ;;  %v7055_v6 = vpop.f32.mrf.mxu0  ;;  %v8558_v62 = vld [vmem:[#allocation13_spill] sm:$0xff] }
 0x1f4   : > { %8551 = vst [vmem:[#allocation15_spill] sm:$0xff] %v7055_v6  ;;  %v1024_v6 = vmul.f32 %v1021_v10, %v989_v26  ;;  %v7099_v26 = vrot.slane %v720_v2, %v8556_v25  ;;  %v1035_v32 = vadd.f32 %v1027_v58, %v869_v1  ;;  %v1188_v58 = vadd.f32 %v1180_v22, %v1030_v28 }
 0x1f5   : > { %v7061_v11 = vpop.f32.mrf.mxu1  ;;  %v1655_v22 = vmul.f32 %v7036_v61, %v7079_v43  ;;  %v1501_v60 = vmul.f32 %v7053_v5, %v7075_v40  ;;  %v1654_v16 = vmul.f32 %v7079_v43, %v8558_v62 }
 0x1f6   : > { %8552 = vst [vmem:[#allocation16_spill] sm:$0xff] %v7061_v11  ;;  %v1032_v30 = vadd.f32 %v1024_v6, %v866_v7  ;;  %v1193_v33 = vadd.f32 %v1185_v35, %v1035_v32  ;;  %v1347_v7 = vadd.f32 %v1339_v23, %v1189_v21  ;;  %v1346_v53 = vadd.f32 %v1338_v46, %v1188_v58  ;;  %v8559_v23 = vld [vmem:[#allocation12_spill] sm:$0xff] }
 0x1f7   : > { %v7071_v36 = vpop.f32.mrf.mxu0 }
 0x1f8   : > { %8554 = vst [vmem:[#allocation18_spill] sm:$0xff] %v7071_v36  ;;  %v1025_v36 = vmul.f32 %v5651_v24, %v1021_v10  ;;  %v1036_v10 = vadd.f32 %v1028_v41, %v870_v52  ;;  %v1505_v19 = vadd.f32 %v1497_v38, %v1347_v7  ;;  %v1351_v28 = vadd.f32 %v1343_v55, %v1193_v33 }
 0x1f9   : > { %v7083_v4 = vpop.f32.mrf.mxu1  ;;  %v7085_v20 = vpop.f32.mrf.mxu0  ;;  %v1504_v35 = vadd.f32 %v1496_v45, %v1346_v53  ;;  %v8560_v41 = vld [vmem:[#allocation14_spill] sm:$0xff]  ;;  %v7173_v53 = vld [vmem:[%s8491_s3 + $0x8] ss:$0 sm:$0xff] }
 0x1fa   : > { %v1033_v29 = vadd.f32 %v1025_v36, %v867_v14  ;;  %v1184_v36 = vmul.f32 %v7064_v12, %v7018_v49  ;;  %v1190_v49 = vadd.f32 %v1182_v51, %v1032_v30  ;;  %v1345_v14 = vmul.f32 %v7028_v57, %v7066_v13 }
 0x1fb   : > { %v7087_v11 = vpop.f32.mrf.mxu1  ;;  %v1657_v58 = vmul.f32 %v8560_v41, %v7079_v43  ;;  %v1658_v55 = vmul.f32 %v7079_v43, %v7085_v20 }
 0x1fc   : > { %v1191_v1 = vadd.f32 %v1183_v31, %v1033_v29  ;;  %v1192_v8 = vadd.f32 %v1184_v36, %v1034_v50  ;;  %v1348_v12 = vadd.f32 %v1340_v34, %v1190_v49  ;;  %v1498_v29 = vmul.f32 %v7075_v40, %v7042_v0 }
 0x1fd   : > { %v7095_v24 = vpop.f32.mrf.mxu0  ;;  %v1194_v31 = vadd.f32 %v1186_v44, %v1036_v10  ;;  %v8557_v32 = vld [vmem:[#allocation16_spill] sm:$0xff]  ;;  %v1353_v51 = vadd.f32 %v1345_v14, %v1195_v59  ;;  %v1344_v0 = vmul.f32 %v7066_v13, %v8559_v23  ;;  %v1663_v36 = vadd.f32 %v1655_v22, %v1505_v19 }
 0x1fe   : > { %v1349_v56 = vadd.f32 %v1341_v48, %v1191_v1  ;;  %v1350_v30 = vadd.f32 %v1342_v39, %v1192_v8  ;;  %v1500_v50 = vmul.f32 %v7075_v40, %v8557_v32  ;;  %v1506_v42 = vadd.f32 %v1498_v29, %v1348_v12  ;;  %v8561_v1 = vld [vmem:[#allocation15_spill] sm:$0xff] }
 0x1ff   : > { %v7111_v37 = vpop.f32.mrf.mxu0  ;;  %v5788_v2 = vpop.f32.mrf.mxu1  ;;  %v1656_v46 = vmul.f32 %v7079_v43, %v8561_v1  ;;  %v1503_v48 = vmul.f32 %v7083_v4, %v7075_v40  ;;  %v8562_v13 = vld [vmem:[#allocation18_spill] sm:$0xff]  ;;  %v1662_v8 = vadd.f32 %v1654_v16, %v1504_v35  ;;  %v1352_v59 = vadd.f32 %v1344_v0, %v1194_v31 }
 0x200   : > { %v1813_v21 = vmul.f32 %v5788_v2, %v7092_v18  ;;  %v1507_v52 = vadd.f32 %v1499_v54, %v1349_v56  ;;  %v1509_v2 = vadd.f32 %v1501_v60, %v1351_v28  ;;  %v1508_v33 = vadd.f32 %v1500_v50, %v1350_v30 }
 0x201   : > { %v1769_v47 = vpop.f32.mrf.mxu1  ;;  %v5816_v63 = vpop.f32.mrf.mxu0  ;;  %v1659_v34 = vmul.f32 %v8562_v13, %v7079_v43  ;;  %v1511_v20 = vadd.f32 %v1503_v48, %v1353_v51  ;;  %v1661_v19 = vmul.f32 %v7095_v24, %v7079_v43  ;;  %v1664_v54 = vadd.f32 %v1656_v46, %v1506_v42  ;;  %v8563_v46 = vld [vmem:[#allocation17_spill] sm:$0xff] }
 0x202   : > { %v1812_v38 = vmul.f32 %v7092_v18, %v1769_v47  ;;  %v1821_v39 = vadd.f32 %v1813_v21, %v1663_v36  ;;  %v1971_v44 = vmul.f32 %v5816_v63, %v7099_v26  ;;  %v1665_v4 = vadd.f32 %v1657_v58, %v1507_v52 }
 0x203   : > { %v1927_v6 = vpop.f32.mrf.mxu0  ;;  %v1502_v47 = vmul.f32 %v7075_v40, %v7087_v11  ;;  %v1667_v56 = vadd.f32 %v1659_v34, %v1509_v2  ;;  %v1666_v12 = vadd.f32 %v1658_v55, %v1508_v33  ;;  %v1669_v50 = vadd.f32 %v1661_v19, %v1511_v20 }
 0x204   : > { %v5791_v9 = vpop.f32.mrf.mxu1  ;;  %v1820_v63 = vadd.f32 %v1812_v38, %v1662_v8  ;;  %v1660_v16 = vmul.f32 %v7079_v43, %v7111_v37 }
 0x205   : > { %v5819_v15 = vpop.f32.mrf.mxu0  ;;  %v1815_v10 = vmul.f32 %v5791_v9, %v7092_v18  ;;  %v1970_v9 = vmul.f32 %v7099_v26, %v1927_v6  ;;  %v1510_v31 = vadd.f32 %v1502_v47, %v1352_v59 }
 0x206   : > { %v1779_v25 = vpop.f32.mrf.mxu1  ;;  %v1973_v29 = vmul.f32 %v5819_v15, %v7099_v26 }
 0x207   : > { %v1937_v57 = vpop.f32.mrf.mxu0  ;;  %v1814_v14 = vmul.f32 %v7092_v18, %v1779_v25  ;;  %v1979_v25 = vadd.f32 %v1971_v44, %v1821_v39  ;;  %v1823_v28 = vadd.f32 %v1815_v10, %v1665_v4  ;;  %v1978_v51 = vadd.f32 %v1970_v9, %v1820_v63 }
 0x208   : > { %v5794_v61 = vpop.f32.mrf.mxu1  ;;  %v1972_v24 = vmul.f32 %v7099_v26, %v1937_v57  ;;  %v1668_v33 = vadd.f32 %v1660_v16, %v1510_v31 }
 0x209   : > { %v5822_v49 = vpop.f32.mrf.mxu0  ;;  %v1817_v40 = vmul.f32 %v5794_v61, %v7092_v18  ;;  %v1822_v60 = vadd.f32 %v1814_v14, %v1664_v54  ;;  %v1981_v57 = vadd.f32 %v1973_v29, %v1823_v28 }
 0x20a   : > { %v1789_v5 = vpop.f32.mrf.mxu1  ;;  %v1975_v15 = vmul.f32 %v5822_v49, %v7099_v26 }
 0x20b   : > { %v1947_v22 = vpop.f32.mrf.mxu0  ;;  %v1816_v32 = vmul.f32 %v7092_v18, %v1789_v5  ;;  %v1825_v21 = vadd.f32 %v1817_v40, %v1667_v56  ;;  %v1980_v58 = vadd.f32 %v1972_v24, %v1822_v60 }
 0x20c   : > { %v5797_v7 = vpop.f32.mrf.mxu1  ;;  %v1974_v42 = vmul.f32 %v7099_v26, %v1947_v22 }
 0x20d   : > { %v5825_v35 = vpop.f32.mrf.mxu0  ;;  %v1819_v23 = vmul.f32 %v5797_v7, %v7092_v18  ;;  %v1824_v5 = vadd.f32 %v1816_v32, %v1666_v12  ;;  %v1983_v13 = vadd.f32 %v1975_v15, %v1825_v21  ;;  %v2475_v21 = vld [vmem:[%s8494_s6 + $0x8] sm:$0xff]  ;;  %v2474_v15 = vld [vmem:[%s8494_s6] sm:$0xff] }
 0x20e   : > { %v1799_v45 = vpop.f32.mrf.mxu1  ;;  %5894 = vmatprep.subr.mxu0 %v2475_v21 }
 0x20f   : > { %v1818_v1 = vmul.f32 %v7092_v18, %v1799_v45  ;;  %v1957_v37 = vpop.f32.mrf.mxu0  ;;  %v1827_v34 = vadd.f32 %v1819_v23, %v1669_v50  ;;  %v1977_v18 = vmul.f32 %v5825_v35, %v7099_v26  ;;  %v1982_v10 = vadd.f32 %v1974_v42, %v1824_v5 }
 0x210   : > { %v5844_v11 = vpop.f32.mrf.mxu1  ;;  %v1976_v4 = vmul.f32 %v7099_v26, %v1957_v37 }
 0x211   : > { %v2129_v30 = vmul.f32 %v5844_v11, %v7173_v53  ;;  %v1826_v59 = vadd.f32 %v1818_v1, %v1668_v33  ;;  %v1985_v9 = vadd.f32 %v1977_v18, %v1827_v34 }
 0x212   : > { %v2085_v6 = vpop.f32.mrf.mxu1 }
 0x213   : > { %v2137_v62 = vadd.f32 %v2129_v30, %v1979_v25  ;;  %v2128_v61 = vmul.f32 %v7173_v53, %v2085_v6  ;;  %v1984_v11 = vadd.f32 %v1976_v4, %v1826_v59 }
 0x214   : > { %v5847_v0 = vpop.f32.mrf.mxu1 }
 0x215   : > { %v2149_v36 = vmul.f32 %v7103_v27, %v2137_v62  ;;  %v2136_v52 = vadd.f32 %v2128_v61, %v1978_v51  ;;  %v2131_v41 = vmul.f32 %v5847_v0, %v7173_v53 }
 0x216   : > { %v2095_v43 = vpop.f32.mrf.mxu1 }
 0x217   : > { %v2161_v48 = vadd.f32 %v8563_v46, %v2149_v36  ;;  %v2148_v38 = vmul.f32 %v7103_v27, %v2136_v52  ;;  %v2139_v49 = vadd.f32 %v2131_v41, %v1981_v57  ;;  %v2130_v2 = vmul.f32 %v7173_v53, %v2095_v43  ;;  %v544_v36 = vld [vmem:[%s8500_s12] sm:$0x3]  ;;  %v8573_v43 = vld [vmem:[#allocation3_spill] sm:$0xff] }
 0x218   : > { %v5850_v55 = vpop.f32.mrf.mxu1  ;;  %v8572_v41 = vld [vmem:[#allocation2_spill] sm:$0xff]  ;;  %v2457_v37 = vrot.slane %v544_v36, %v8573_v43 }
 0x219   : > { %v7202_v7 = vmax.f32 %v2161_v48, 0.0  ;;  %v2160_v8 = vadd.f32 %v8563_v46, %v2148_v38  ;;  %v2151_v39 = vmul.f32 %v7103_v27, %v2139_v49  ;;  %v2138_v44 = vadd.f32 %v2130_v2, %v1980_v58 }
 0x21a   : > { %v2133_v47 = vmul.f32 %v5850_v55, %v7173_v53  ;;  %v2105_v14 = vpop.f32.mrf.mxu1  ;;  %v2445_v58 = vrot.slane %v544_v36, %v8572_v41  ;;  %v2611_v36 = vld [vmem:[%s8496_s8 + $0x8] sm:$0xff] }
 0x21b   : > { %8564 = vst [vmem:[#allocation16_spill] sm:$0xff] %v7202_v7  ;;  %4755 = vst.msk [vmem:[%s7199_s23 + $0x8] sm:$0xff] %vm558_vm0, %v7202_v7  ;;  %v7211_v45 = vmax.f32 %v2160_v8, 0.0  ;;  %v2163_v20 = vadd.f32 %v8563_v46, %v2151_v39  ;;  %v2150_v19 = vmul.f32 %v7103_v27, %v2138_v44  ;;  %v2132_v63 = vmul.f32 %v7173_v53, %v2105_v14 }
 0x21c   : > { %v2141_v22 = vadd.f32 %v2133_v47, %v1983_v13  ;;  %v5853_v54 = vpop.f32.mrf.mxu1 }
 0x21d   : > { %8565 = vst [vmem:[#allocation13_spill] sm:$0xff] %v7211_v45  ;;  %4754 = vst.msk [vmem:[%s7199_s23] sm:$0xff] %vm558_vm0, %v7211_v45  ;;  %v7219_v26 = vmax.f32 %v2163_v20, 0.0  ;;  %v2162_v56 = vadd.f32 %v8563_v46, %v2150_v19  ;;  %v2140_v12 = vadd.f32 %v2132_v63, %v1982_v10  ;;  %v2135_v40 = vmul.f32 %v5853_v54, %v7173_v53 }
 0x21e   : > { %5862 = vmatprep.mubr.msk.f32.mxu0 %vm558_vm0, %v7211_v45  ;;  %v2153_v25 = vmul.f32 %v7103_v27, %v2141_v22  ;;  %v2115_v28 = vpop.f32.mrf.mxu1 }
 0x21f   : > { %8566 = vst [vmem:[#allocation12_spill] sm:$0xff] %v7219_v26  ;;  %5863 = vmatmul.mubr.msk.f32.vlgmr.msra.gmra.mxu0 %vm558_vm0, %v7202_v7  ;;  %4757 = vst.msk [vmem:[%s7199_s23 + $0x18] sm:$0xff] %vm558_vm0, %v7219_v26  ;;  %v7231_v29 = vmax.f32 %v2162_v56, 0.0  ;;  %v2152_v30 = vmul.f32 %v7103_v27, %v2140_v12  ;;  %v2143_v31 = vadd.f32 %v2135_v40, %v1985_v9 }
 0x220   : > { %v2134_v60 = vmul.f32 %v7173_v53, %v2115_v28  ;;  %v2165_v24 = vadd.f32 %v8563_v46, %v2153_v25  ;;  %5895 = vmatpush3.msra.mxu0 %v2475_v21  ;;  %v5884_v23 = vpop.f32.mrf.mxu1 }
 0x221   : > { %8567 = vst [vmem:[#allocation14_spill] sm:$0xff] %v7231_v29  ;;  %4756 = vst.msk [vmem:[%s7199_s23 + $0x10] sm:$0xff] %vm558_vm0, %v7231_v29  ;;  %v2164_v32 = vadd.f32 %v8563_v46, %v2152_v30  ;;  %v2155_v6 = vmul.f32 %v7103_v27, %v2143_v31  ;;  %5865 = vmatprep.mubr.msk.f32.mxu0 %vm558_vm0, %v7231_v29  ;;  %5896 = vmatprep.subr.mxu0 %v2474_v15 }
 0x222   : > { %v2142_v50 = vadd.f32 %v2134_v60, %v1984_v11  ;;  %v7243_v51 = vmax.f32 %v2165_v24, 0.0  ;;  %5897 = vmatpush3.msra.mxu0 %v2474_v15  ;;  %v2403_v0 = vpop.f32.mrf.mxu1  ;;  %v6368_v15 = vmov 0.0  }
 0x223   : > { %5866 = vmatmul.mubr.msk.f32.gmra.mxu0 %vm558_vm0, %v7219_v26  ;;  %v7247_v53 = vmax.f32 %v2164_v32, 0.0  ;;  %v2167_v35 = vadd.f32 %v8563_v46, %v2155_v6  ;;  %5910 = vmatprep.subr.mxu1 %v6368_v15 }
 0x224   : > { %8568 = vst [vmem:[#allocation15_spill] sm:$0xff] %v7243_v51  ;;  %v2154_v62 = vmul.f32 %v7103_v27, %v2142_v50  ;;  %4759 = vst.msk [vmem:[%s7199_s23 + $0x28] sm:$0xff] %vm558_vm0, %v7243_v51  ;;  %v5887_v57 = vpop.f32.mrf.mxu1  ;;  %5928 = vmatprep.subr.mxu0 %v6368_v15  ;;  %5920 = vmatprep.mubr.msk.f32.mxu1 %vm6369_vm4, %v6368_v15 }
 0x225   : > { %8569 = vst [vmem:[#allocation18_spill] sm:$0xff] %v7247_v53  ;;  %4758 = vst.msk [vmem:[%s7199_s23 + $0x20] sm:$0xff] %vm558_vm0, %v7247_v53  ;;  %v7257_v61 = vmax.f32 %v2167_v35, 0.0  ;;  %5868 = vmatprep.mubr.msk.f32.mxu0 %vm558_vm0, %v7247_v53 }
 0x226   : > { %v2166_v16 = vadd.f32 %v8563_v46, %v2154_v62  ;;  %v2413_v52 = vpop.f32.mrf.mxu1 }
 0x227   : > { %8570 = vst [vmem:[#allocation17_spill] sm:$0xff] %v7257_v61  ;;  %5869 = vmatmul.mubr.msk.f32.gmra.mxu0 %vm558_vm0, %v7243_v51  ;;  %4761 = vst.msk [vmem:[%s7199_s23 + $0x38] sm:$0xff] %vm558_vm0, %v7257_v61 }
 0x228   : > { %v7267_v27 = vmax.f32 %v2166_v16, 0.0  ;;  %v5890_v1 = vpop.f32.mrf.mxu1 }
 0x22a   : > { %8571 = vst [vmem:[#allocation19_spill] sm:$0xff] %v7267_v27  ;;  %4760 = vst.msk [vmem:[%s7199_s23 + $0x30] sm:$0xff] %vm558_vm0, %v7267_v27  ;;  %5871 = vmatprep.mubr.msk.f32.mxu0 %vm558_vm0, %v7267_v27  ;;  %v2423_v13 = vpop.f32.mrf.mxu1 }
 0x22b   : > { %5872 = vmatmul.mubr.msk.f32.gmra.mxu0 %vm558_vm0, %v7257_v61 }
 0x22c   : > { %v5893_v47 = vpop.f32.mrf.mxu1 }
 0x22e   : > { %v2433_v11 = vpop.f32.mrf.mxu1 }
 0x2df   : > { %v5864_v5 = vpop.f32.mrf.mxu0 }
 0x2e0   : > { %v2409_v42 = vadd.f32 %v5884_v23, %v5864_v5  ;;  %v2614_v23 = vld [vmem:[%s8496_s8 + $0x20] sm:$0xf] }
 0x2e1   : > { %v2274_v46 = vpop.f32.mrf.mxu0  ;;  %5911 = vmatpush3.msk.msra.mxu1 %vm2641_vm3, %v2614_v23 }
 0x2e2   : > { %v2447_v48 = vmul.f32 %v2445_v58, %v2409_v42  ;;  %v2404_v38 = vadd.f32 %v2403_v0, %v2274_v46  ;;  %5912 = vmatprep.subr.mxu1 %v6368_v15  ;;  %v2613_v0 = vld [vmem:[%s8496_s8 + $0x18] sm:$0xff] }
 0x2e3   : > { %v5867_v49 = vpop.f32.mrf.mxu0  ;;  %5913 = vmatpush3.msra.mxu1 %v2613_v0 }
 0x2e4   : > { %v2446_v2 = vmul.f32 %v2445_v58, %v2404_v38  ;;  %v2419_v33 = vadd.f32 %v5887_v57, %v5867_v49  ;;  %v2459_v34 = vadd.f32 %v2457_v37, %v2447_v48  ;;  %5914 = vmatprep.subr.mxu1 %v6368_v15  ;;  %v2612_v57 = vld [vmem:[%s8496_s8 + $0x10] sm:$0xff] }
 0x2e5   : > { %v2284_v18 = vpop.f32.mrf.mxu0  ;;  %5915 = vmatpush3.msra.mxu1 %v2612_v57 }
 0x2e6   : > { %v2458_v55 = vadd.f32 %v2457_v37, %v2446_v2  ;;  %v2449_v8 = vmul.f32 %v2445_v58, %v2419_v33  ;;  %v2414_v39 = vadd.f32 %v2413_v52, %v2284_v18  ;;  %v2467_v14 = vmax.f32 %v2459_v34, 0.0  ;;  %5916 = vmatprep.subr.mxu1 %v6368_v15  ;;  %v2610_v52 = vld [vmem:[%s8496_s8] sm:$0xff] }
 0x2e7   : > { %v5870_v44 = vpop.f32.mrf.mxu0  ;;  %5917 = vmatpush3.msra.mxu1 %v2611_v36 }
 0x2e8   : > { %v2466_v10 = vmax.f32 %v2458_v55, 0.0  ;;  %v2448_v59 = vmul.f32 %v2445_v58, %v2414_v39  ;;  %v2429_v4 = vadd.f32 %v5890_v1, %v5870_v44  ;;  %v2461_v20 = vadd.f32 %v2457_v37, %v2449_v8  ;;  %5918 = vmatprep.subr.mxu1 %v6368_v15 }
 0x2e9   : > { %v2294_v19 = vpop.f32.mrf.mxu0  ;;  %5919 = vmatpush3.msra.mxu1 %v2610_v52 }
 0x2ea   : > { %v2460_v63 = vadd.f32 %v2457_v37, %v2448_v59  ;;  %v2451_v9 = vmul.f32 %v2445_v58, %v2429_v4  ;;  %v2424_v22 = vadd.f32 %v2423_v13, %v2294_v19  ;;  %5898 = vmatprep.mubr.msk.f32.mxu0 %vm2480_vm2, %v2466_v10  ;;  %v2469_v25 = vmax.f32 %v2461_v20, 0.0  ;;  %5923 = vmatprep.subr.mxu1 %v6368_v15 }
 0x2eb   : > { %v5873_v54 = vpop.f32.mrf.mxu0  ;;  %5899 = vmatmul.mubr.msk.f32.vlgmr.msra.gmra.mxu0 %vm2480_vm2, %v2467_v14 }
 0x2ec   : > { %v2468_v56 = vmax.f32 %v2460_v63, 0.0  ;;  %v2450_v12 = vmul.f32 %v2445_v58, %v2424_v22  ;;  %v2439_v40 = vadd.f32 %v5893_v47, %v5873_v54  ;;  %v2463_v28 = vadd.f32 %v2457_v37, %v2451_v9  ;;  %5929 = vmatpush3.msk.msra.mxu0 %vm2641_vm3, %v2614_v23 }
 0x2ed   : > { %v2304_v30 = vpop.f32.mrf.mxu0  ;;  %5930 = vmatprep.subr.mxu0 %v6368_v15 }
 0x2ee   : > { %v2462_v31 = vadd.f32 %v2457_v37, %v2450_v12  ;;  %v2453_v60 = vmul.f32 %v2445_v58, %v2439_v40  ;;  %v2434_v24 = vadd.f32 %v2433_v11, %v2304_v30  ;;  %5901 = vmatprep.mubr.msk.f32.mxu0 %vm2480_vm2, %v2468_v56  ;;  %v2471_v50 = vmax.f32 %v2463_v28, 0.0  ;;  %5931 = vmatpush3.msra.mxu0 %v2613_v0 }
 0x2ef   : > { %5902 = vmatmul.mubr.msk.f32.gmra.mxu0 %vm2480_vm2, %v2469_v25  ;;  %5932 = vmatprep.subr.mxu0 %v6368_v15 }
 0x2f0   : > { %v2470_v32 = vmax.f32 %v2462_v31, 0.0  ;;  %v2452_v6 = vmul.f32 %v2445_v58, %v2434_v24  ;;  %v2465_v35 = vadd.f32 %v2457_v37, %v2453_v60  ;;  %5933 = vmatpush3.msra.mxu0 %v2612_v57  ;;  %v7330_v58 = vld [vmem:[%s8501_s13] sm:$0x7] }
 0x2f1   : > { %5934 = vmatprep.subr.mxu0 %v6368_v15  ;;  %v2479_v5 = vrot.slane %v7330_v58, %v8572_v41 }
 0x2f2   : > { %v2464_v62 = vadd.f32 %v2457_v37, %v2452_v6  ;;  %5904 = vmatprep.mubr.msk.f32.mxu0 %vm2480_vm2, %v2470_v32  ;;  %v2473_v21 = vmax.f32 %v2465_v35, 0.0  ;;  %5935 = vmatpush3.msra.mxu0 %v2611_v36  ;;  %v2615_v32 = vld [vmem:[%s8497_s9] sm:$0xf] }
 0x2f3   : > { %5905 = vmatmul.mubr.msk.f32.gmra.mxu0 %vm2480_vm2, %v2471_v50  ;;  %5936 = vmatprep.subr.mxu0 %v6368_v15 }
 0x2f4   : > { %v2472_v16 = vmax.f32 %v2464_v62, 0.0  ;;  %5937 = vmatpush3.msra.mxu0 %v2610_v52 }
 0x2f6   : > { %5907 = vmatprep.mubr.msk.f32.mxu0 %vm2480_vm2, %v2472_v16 }
 0x2f7   : > { %5908 = vmatmul.mubr.msk.f32.gmra.mxu0 %vm2480_vm2, %v2473_v21 }
 0x2f8   : > { %5938 = vmatprep.mubr.msk.f32.mxu0 %vm6369_vm4, %v6368_v15 }
 0x3ab   : > { %v5900_v42 = vpop.f32.mrf.mxu0 }
 0x3ac   : > { %v2577_v37 = vadd.f32 %v5900_v42, %v2479_v5 }
 0x3ad   : > { %v2571_v1 = vpop.f32.mrf.mxu0 }
 0x3ae   : > { %v2572_v46 = vadd.f32 %v2571_v1, %v2479_v5  ;;  %v2618_v2 = vsel %vm2616_vm5, %v2577_v37, 0.0 }
 0x3af   : > { %v5903_v48 = vpop.f32.mrf.mxu0 }
 0x3b0   : > { %v2617_v38 = vsel %vm2616_vm5, %v2572_v46, 0.0  ;;  %v2587_v33 = vadd.f32 %v5903_v48, %v2479_v5 }
 0x3b1   : > { %v2581_v49 = vpop.f32.mrf.mxu0  ;;  %v2619_v34 = vadd.f32 %v2618_v2, %v2617_v38 }
 0x3b2   : > { %v2582_v13 = vadd.f32 %v2581_v49, %v2479_v5  ;;  %v2622_v44 = vsel %vm2616_vm5, %v2587_v33, 0.0 }
 0x3b3   : > { %v5906_v18 = vpop.f32.mrf.mxu0 }
 0x3b4   : > { %v2620_v55 = vsel %vm2616_vm5, %v2582_v13, 0.0  ;;  %v2597_v10 = vadd.f32 %v5906_v18, %v2479_v5 }
 0x3b5   : > { %v2621_v8 = vadd.f32 %v2620_v55, %v2619_v34  ;;  %v2591_v39 = vpop.f32.mrf.mxu0 }
 0x3b6   : > { %v2592_v59 = vadd.f32 %v2591_v39, %v2479_v5  ;;  %v2626_v63 = vsel %vm2616_vm5, %v2597_v10, 0.0 }
 0x3b7   : > { %v2623_v4 = vadd.f32 %v2622_v44, %v2621_v8  ;;  %v5909_v47 = vpop.f32.mrf.mxu0 }
 0x3b8   : > { %v2624_v14 = vsel %vm2616_vm5, %v2592_v59, 0.0  ;;  %v2607_v9 = vadd.f32 %v5909_v47, %v2479_v5 }
 0x3b9   : > { %v2625_v20 = vadd.f32 %v2624_v14, %v2623_v4  ;;  %v2601_v19 = vpop.f32.mrf.mxu0 }
 0x3ba   : > { %v2602_v22 = vadd.f32 %v2601_v19, %v2479_v5  ;;  %v2630_v40 = vsel %vm2616_vm5, %v2607_v9, 0.0 }
 0x3bb   : > { %v2627_v54 = vadd.f32 %v2626_v63, %v2625_v20 }
 0x3bc   : > { %v2628_v56 = vsel %vm2616_vm5, %v2602_v22, 0.0 }
 0x3bd   : > { %v2629_v12 = vadd.f32 %v2628_v56, %v2627_v54 }
 0x3bf   : > { %v2631_v11 = vadd.f32 %v2630_v40, %v2629_v12 }
 0x3c1   : > { %v2632_v25 = vrot.slane %v2631_v11, 4 }
 0x3c3   : > { %v2633_v28 = vadd.f32 %v2632_v25, %v2631_v11 }
 0x3c5   : > { %v2634_v30 = vrot.slane %v2633_v28, 2 }
 0x3c7   : > { %v2635_v31 = vadd.f32 %v2634_v30, %v2633_v28 }
 0x3c9   : > { %v2636_v60 = vrot.slane %v2635_v31, 1 }
 0x3cb   : > { %v2637_v24 = vadd.f32 %v2636_v60, %v2635_v31  ;;  %v3031_v31 = vld [vmem:[%s8498_s10 + $0x68] sm:$0xf]  ;;  %v3030_v60 = vld [vmem:[%s8498_s10 + $0x60] sm:$0xf] }
 0x3cc   : > { %5095 = vmatprep.subr.msk.mxu0 %vm2641_vm3, %v3031_v31  ;;  %v8578_v31 = vld [vmem:[#allocation7_spill] sm:$0xff] }
 0x3cd   : > { %5921 = vmatmul.mubr.msk.f32.vlgmr.msra.gmra.mxu1 %vm2616_vm5, %v2637_v24  ;;  %v3032_v24 = vld [vmem:[%s8498_s10 + $0x70] sm:$0xf] }
 0x3ce   : > { %5925 = vmatprep.mubr.msk.f32.mxu1 %vm6369_vm4, %v6368_v15  ;;  %5924 = vmatpush3.msk.msra.mxu1 %vm2641_vm3, %v2615_v32 }
 0x3cf   : > { %5941 = vmatprep.subr.mxu1 %v6368_v15 }
 0x48d   : > { %v2711_v6 = vpop.f32.mrf.mxu1 }
 0x48e   : > { %v2715_v50 = vmul.f32 0.0017361111, %v2711_v6  ;;  %v3027_v6 = vld [vmem:[%s8498_s10 + $0x48] sm:$0xff] }
 0x48f   : > { %v5922_v35 = vpop.f32.mrf.mxu1 }
 0x490   : > { %5926 = vmatmul.mubr.msk.f32.vlgmr.msra.gmra.mxu1 %vm2716_vm6, %v2715_v50  ;;  %v3029_v50 = vld [vmem:[%s8498_s10 + $0x58] sm:$0xff] }
 0x491   : > { %5942 = vmatpush3.msk.msra.mxu1 %vm2641_vm3, %v2615_v32  ;;  %5943 = vmatprep.mubr.msk.f32.mxu1 %vm6369_vm4, %v6368_v15  ;;  %v3028_v32 = vld [vmem:[%s8498_s10 + $0x50] sm:$0xff]  ;;  %v3025_v35 = vld [vmem:[%s8498_s10 + $0x38] sm:$0xff] }
 0x492   : > { %5946 = vmatprep.subr.msk.mxu1 %vm2641_vm3, %v3032_v24 }
 0x550   : > { %v2789_v62 = vpop.f32.mrf.mxu1 }
 0x551   : > { %v2796_v16 = vrot.slane %v2789_v62, %v8572_v41  ;;  %v3024_v62 = vld [vmem:[%s8498_s10 + $0x30] sm:$0xff] }
 0x552   : > { %v5927_v21 = vpop.f32.mrf.mxu1 }
 0x553   : > { %v7355_v23 = vsub.f32 %v2572_v46, %v2796_v16  ;;  %v7357_v0 = vsub.f32 %v2577_v37, %v2796_v16  ;;  %v7359_v57 = vsub.f32 %v2582_v13, %v2796_v16  ;;  %v7361_v36 = vsub.f32 %v2587_v33, %v2796_v16  ;;  %v3022_v21 = vld [vmem:[%s8498_s10 + $0x20] sm:$0xff] }
 0x554   : > { %v7363_v52 = vsub.f32 %v2592_v59, %v2796_v16  ;;  %v7371_v48 = vsub.f32 %v2597_v10, %v2796_v16  ;;  %v7377_v2 = vsub.f32 %v2602_v22, %v2796_v16  ;;  %v7382_v18 = vsub.f32 %v2607_v9, %v2796_v16  ;;  %v3026_v16 = vld [vmem:[%s8498_s10 + $0x40] sm:$0xff] }
 0x555   : > { %v2805_v5 = vmul.f32 %v7355_v23, %v7355_v23  ;;  %v2806_v42 = vmul.f32 %v7357_v0, %v7357_v0  ;;  %v2807_v1 = vmul.f32 %v7359_v57, %v7359_v57  ;;  %v2808_v37 = vmul.f32 %v7361_v36, %v7361_v36 }
 0x556   : > { %v2809_v33 = vmul.f32 %v7363_v52, %v7363_v52  ;;  %v2810_v55 = vmul.f32 %v7371_v48, %v7371_v48  ;;  %v2811_v44 = vmul.f32 %v7377_v2, %v7377_v2  ;;  %v2812_v4 = vmul.f32 %v7382_v18, %v7382_v18 }
 0x557   : > { %v2813_v46 = vsel %vm2616_vm5, %v2805_v5, 0.0  ;;  %v2814_v38 = vsel %vm2616_vm5, %v2806_v42, 0.0  ;;  %v2816_v13 = vsel %vm2616_vm5, %v2807_v1, 0.0  ;;  %v2818_v8 = vsel %vm2616_vm5, %v2808_v37, 0.0  ;;  %v3021_v5 = vld [vmem:[%s8498_s10 + $0x18] sm:$0xff]  ;;  %v3023_v42 = vld [vmem:[%s8498_s10 + $0x28] sm:$0xff] }
 0x558   : > { %v2815_v49 = vadd.f32 %v2814_v38, %v2813_v46  ;;  %v2820_v10 = vsel %vm2616_vm5, %v2809_v33, 0.0  ;;  %v2822_v47 = vsel %vm2616_vm5, %v2810_v55, 0.0  ;;  %v2824_v20 = vsel %vm2616_vm5, %v2811_v44, 0.0  ;;  %v3019_v1 = vld [vmem:[%s8498_s10 + $0x8] sm:$0xff]  ;;  %v3018_v37 = vld [vmem:[%s8498_s10] sm:$0xff]  ;;  %v3020_v46 = vld [vmem:[%s8498_s10 + $0x10] sm:$0xff] }
 0x559   : > { %v2826_v63 = vsel %vm2616_vm5, %v2812_v4, 0.0  ;;  %v3287_v38 = vld [vmem:[%s8495_s7 + $0x18] sm:$0xff]  ;;  %v2997_v55 = vrot.slane %v7330_v58, %v8573_v43 }
 0x55a   : > { %v2817_v34 = vadd.f32 %v2816_v13, %v2815_v49 }
 0x55c   : > { %v2819_v39 = vadd.f32 %v2818_v8, %v2817_v34 }
 0x55e   : > { %v2821_v59 = vadd.f32 %v2820_v10, %v2819_v39  ;;  %v3009_v39 = vrot.slane %v7330_v58, %v7050_v3 }
 0x560   : > { %v2823_v14 = vadd.f32 %v2822_v47, %v2821_v59 }
 0x562   : > { %v2825_v19 = vadd.f32 %v2824_v20, %v2823_v14 }
 0x564   : > { %v2827_v9 = vadd.f32 %v2826_v63, %v2825_v19 }
 0x566   : > { %v2828_v22 = vrot.slane %v2827_v9, 4 }
 0x568   : > { %v2829_v54 = vadd.f32 %v2828_v22, %v2827_v9 }
 0x56a   : > { %v2830_v56 = vrot.slane %v2829_v54, 2 }
 0x56c   : > { %v2831_v12 = vadd.f32 %v2830_v56, %v2829_v54  ;;  %v3284_v54 = vld [vmem:[%s8495_s7] sm:$0xff] }
 0x56e   : > { %v2832_v40 = vrot.slane %v2831_v12, 1 }
 0x570   : > { %v2833_v11 = vadd.f32 %v2832_v40, %v2831_v12 }
 0x572   : > { %5939 = vmatmul.mubr.msk.f32.vlgmr.msra.gmra.mxu0 %vm2616_vm5, %v2833_v11  ;;  %v8574_v11 = vld [vmem:[#allocation11_spill] sm:$0xff] }
 0x573   : > { %3130 = vmatprep.mubr.f32.mxu0 %v6368_v15  ;;  %5096 = vmatpush1.msk.msra.mxu0 %vm2641_vm3, %v3030_v60  ;;  %v8579_v60 = vld [vmem:[#allocation6_spill] sm:$0xff] }
 0x574   : > { %3090 = vmatprep.subr.mxu0 %v3028_v32  ;;  %v8581_v32 = vld [vmem:[#allocation4_spill] sm:$0xff] }
 0x575   : > { %3091 = vmatpush1.msra.mxu0 %v3027_v6  ;;  %v6287_v6 = vld [vmem:[%s8489_s1] sm:$0xff] }
 0x576   : > { %3092 = vmatprep.subr.mxu0 %v3025_v35 }
 0x577   : > { %3093 = vmatpush1.msra.mxu0 %v3024_v62 }
 0x578   : > { %3094 = vmatprep.subr.mxu0 %v3022_v21 }
 0x579   : > { %3095 = vmatpush1.msra.mxu0 %v3021_v5 }
 0x57a   : > { %3096 = vmatprep.subr.mxu0 %v3019_v1 }
 0x57b   : > { %3097 = vmatpush1.msra.mxu0 %v3018_v37 }
 0x632   : > { %v2903_v25 = vpop.f32.mrf.mxu0 }
 0x633   : > { %v2907_v28 = vmul.f32 0.0017361111, %v2903_v25  ;;  %v8575_v25 = vld [vmem:[#allocation10_spill] sm:$0xff] }
 0x634   : > { %v5940_v30 = vpop.f32.mrf.mxu0 }
 0x635   : > { %5944 = vmatmul.mubr.msk.f32.vlgmr.msra.gmra.mxu1 %vm2716_vm6, %v2907_v28  ;;  %v8576_v28 = vld [vmem:[#allocation9_spill] sm:$0xff]  ;;  %v8577_v30 = vld [vmem:[#allocation8_spill] sm:$0xff] }
 0x636   : > { %5947 = vmatpush3.msk.msra.mxu1 %vm2641_vm3, %v3032_v24  ;;  %v8580_v24 = vld [vmem:[#allocation5_spill] sm:$0xff] }
 0x637   : > { %5948 = vmatprep.subr.mxu1 %v3029_v50 }
 0x638   : > { %5949 = vmatpush3.msra.mxu1 %v3029_v50  ;;  %v6288_v50 = vld [vmem:[%s8489_s1 + $0x40] sm:$0xff] }
 0x639   : > { %5950 = vmatprep.subr.mxu1 %v3026_v16 }
 0x63a   : > { %5951 = vmatpush3.msra.mxu1 %v3026_v16 }
 0x63b   : > { %5952 = vmatprep.subr.mxu1 %v3023_v42 }
 0x63c   : > { %5953 = vmatpush3.msra.mxu1 %v3023_v42 }
 0x63d   : > { %5954 = vmatprep.subr.mxu1 %v3020_v46 }
 0x63e   : > { %5955 = vmatpush3.msra.mxu1 %v3020_v46 }
 0x63f   : > { %5968 = vmatprep.subr.mxu1 %v3287_v38 }
 0x6f5   : > { %v2977_v49 = vpop.f32.mrf.mxu1 }
 0x6f6   : > { %v2978_v33 = vadd.f32 1e-05, %v2977_v49 }
 0x6f7   : > { %v5945_v13 = vpop.f32.mrf.mxu1 }
 0x6f8   : > { %6253 = vrsqrt.f32 %v2978_v33 }
 0x705   : > { %v6254_v34 = vpop.eup %6253 }
 0x706   : > { %v2985_v8 = vrot.slane %v6254_v34, %v8572_v41 }
 0x708   : > { %v2986_v44 = vmul.f32 %v2985_v8, %v7355_v23  ;;  %v2987_v10 = vmul.f32 %v2985_v8, %v7357_v0  ;;  %v2988_v59 = vmul.f32 %v2985_v8, %v7359_v57  ;;  %v2989_v4 = vmul.f32 %v2985_v8, %v7361_v36  ;;  %v3286_v0 = vld [vmem:[%s8495_s7 + $0x10] sm:$0xff] }
 0x709   : > { %v2990_v19 = vmul.f32 %v2985_v8, %v7363_v52  ;;  %v2991_v41 = vmul.f32 %v2985_v8, %v7371_v48  ;;  %v2992_v23 = vmul.f32 %v2985_v8, %v7377_v2  ;;  %v2993_v52 = vmul.f32 %v2985_v8, %v7382_v18  ;;  %v3285_v48 = vld [vmem:[%s8495_s7 + $0x8] sm:$0xff] }
 0x70a   : > { %v2998_v47 = vmul.f32 %v2997_v55, %v2986_v44  ;;  %v2999_v14 = vmul.f32 %v2997_v55, %v2987_v10  ;;  %v3000_v20 = vmul.f32 %v2997_v55, %v2988_v59  ;;  %v3001_v9 = vmul.f32 %v2997_v55, %v2989_v4  ;;  %v7578_v59 = vld [vmem:[%s8499_s11] sm:$0xff] }
 0x70b   : > { %v3002_v58 = vmul.f32 %v2997_v55, %v2990_v19  ;;  %v3003_v36 = vmul.f32 %v2997_v55, %v2991_v41  ;;  %v3004_v22 = vmul.f32 %v2997_v55, %v2992_v23  ;;  %v3005_v56 = vmul.f32 %v2997_v55, %v2993_v52 }
 0x70c   : > { %v3010_v63 = vadd.f32 %v3009_v39, %v2998_v47  ;;  %v3011_v43 = vadd.f32 %v3009_v39, %v2999_v14  ;;  %v3012_v3 = vadd.f32 %v3009_v39, %v3000_v20  ;;  %v3013_v57 = vadd.f32 %v3009_v39, %v3001_v9 }
 0x70d   : > { %v3014_v2 = vadd.f32 %v3009_v39, %v3002_v58  ;;  %v3015_v18 = vadd.f32 %v3009_v39, %v3003_v36  ;;  %v3016_v12 = vadd.f32 %v3009_v39, %v3004_v22  ;;  %v3017_v40 = vadd.f32 %v3009_v39, %v3005_v56 }
 0x70e   : > { %5097 = vmatmul.mubr.msk.f32.vlgmr.msra.gmra.mxu0 %vm2616_vm5, %v3010_v63  ;;  %5956 = vmatprep.mubr.msk.f32.mxu1 %vm2616_vm5, %v3010_v63  ;;  %v8593_v4 = vsub.s32 4, %v6503_v17  ;;  %v8594_v20 = vsub.s32 5, %v6503_v17 }
 0x70f   : > { %5957 = vmatmul.mubr.msk.f32.vlgmr.msra.gmra.mxu1 %vm2616_vm5, %v3011_v43  ;;  %3136 = vmatprep.mubr.f32.mxu0 %v6368_v15 }
 0x710   : > { %5959 = vmatprep.mubr.msk.f32.mxu1 %vm2616_vm5, %v3012_v3  ;;  %5969 = vmatpush3.msra.mxu1 %v3287_v38  ;;  %v3396_v47 = vrot.slane %v7578_v59, %v8593_v4  ;;  %v3408_v19 = vrot.slane %v7578_v59, %v8594_v20  ;;  %v6302_v4 = vld [vmem:[%s8489_s1 + $0x38] sm:$0xff]  ;;  %v6304_v20 = vld [vmem:[%s8489_s1 + $0x80] sm:$0xff] }
 0x711   : > { %5970 = vmatprep.subr.mxu1 %v3286_v0 }
 0x712   : > { %5098 = vmatmul.mubr.msk.f32.gmra.mxu0 %vm2616_vm5, %v3011_v43  ;;  %5971 = vmatpush3.msra.mxu1 %v3286_v0 }
 0x713   : > { %5960 = vmatmul.mubr.msk.f32.gmra.mxu1 %vm2616_vm5, %v3013_v57  ;;  %3142 = vmatprep.mubr.f32.mxu0 %v6368_v15 }
 0x714   : > { %5962 = vmatprep.mubr.msk.f32.mxu1 %vm2616_vm5, %v3014_v2  ;;  %5972 = vmatprep.subr.mxu1 %v3285_v48 }
 0x715   : > { %5973 = vmatpush3.msra.mxu1 %v3285_v48 }
 0x716   : > { %5099 = vmatmul.mubr.msk.f32.gmra.mxu0 %vm2616_vm5, %v3012_v3  ;;  %5974 = vmatprep.subr.mxu1 %v3284_v54 }
 0x717   : > { %5963 = vmatmul.mubr.msk.f32.gmra.mxu1 %vm2616_vm5, %v3015_v18  ;;  %3148 = vmatprep.mubr.f32.mxu0 %v6368_v15 }
 0x718   : > { %5965 = vmatprep.mubr.msk.f32.mxu1 %vm2616_vm5, %v3016_v12  ;;  %5975 = vmatpush3.msra.mxu1 %v3284_v54 }
 0x71a   : > { %5100 = vmatmul.mubr.msk.f32.gmra.mxu0 %vm2616_vm5, %v3013_v57 }
 0x71b   : > { %5966 = vmatmul.mubr.msk.f32.gmra.mxu1 %vm2616_vm5, %v3017_v40  ;;  %3154 = vmatprep.mubr.f32.mxu0 %v6368_v15 }
 0x71c   : > { %5976 = vmatprep.mubr.msk.f32.mxu1 %vm558_vm0, %v8574_v11 }
 0x71e   : > { %5101 = vmatmul.mubr.msk.f32.gmra.mxu0 %vm2616_vm5, %v3014_v2 }
 0x71f   : > { %5977 = vmatmul.mubr.msk.f32.vlgmr.msra.gmra.mxu1 %vm558_vm0, %v8575_v25  ;;  %3160 = vmatprep.mubr.f32.mxu0 %v6368_v15  ;;  %v6290_v25 = vld [vmem:[%s8489_s1 + $0x8] sm:$0xff] }
 0x720   : > { %5979 = vmatprep.mubr.msk.f32.mxu1 %vm558_vm0, %v8576_v28  ;;  %v6291_v28 = vld [vmem:[%s8489_s1 + $0x48] sm:$0xff] }
 0x722   : > { %5102 = vmatmul.mubr.msk.f32.gmra.mxu0 %vm2616_vm5, %v3015_v18 }
 0x723   : > { %5980 = vmatmul.mubr.msk.f32.gmra.mxu1 %vm558_vm0, %v8577_v30  ;;  %3166 = vmatprep.mubr.f32.mxu0 %v6368_v15 }
 0x724   : > { %5982 = vmatprep.mubr.msk.f32.mxu1 %vm558_vm0, %v8578_v31  ;;  %v6292_v31 = vld [vmem:[%s8489_s1 + $0x10] sm:$0xff] }
 0x726   : > { %5103 = vmatmul.mubr.msk.f32.gmra.mxu0 %vm2616_vm5, %v3016_v12 }
 0x727   : > { %5983 = vmatmul.mubr.msk.f32.gmra.mxu1 %vm558_vm0, %v8579_v60  ;;  %3172 = vmatprep.mubr.f32.mxu0 %v6368_v15  ;;  %v6293_v60 = vld [vmem:[%s8489_s1 + $0x50] sm:$0xff] }
 0x728   : > { %5985 = vmatprep.mubr.msk.f32.mxu1 %vm558_vm0, %v8580_v24  ;;  %v6294_v24 = vld [vmem:[%s8489_s1 + $0x18] sm:$0xff] }
 0x72a   : > { %5104 = vmatmul.mubr.msk.f32.gmra.mxu0 %vm2616_vm5, %v3017_v40 }
 0x72b   : > { %5986 = vmatmul.mubr.msk.f32.gmra.mxu1 %vm558_vm0, %v8581_v32  ;;  %6004 = vmatprep.mubr.msk.f32.mxu0 %vm730_vm1, %v6287_v6  ;;  %v6295_v32 = vld [vmem:[%s8489_s1 + $0x58] sm:$0xff]  ;;  %v6296_v6 = vld [vmem:[%s8489_s1 + $0x20] sm:$0xff] }
 0x72c   : > { %6032 = vmatprep.mubr.msk.f32.mxu1 %vm730_vm1, %v6288_v50  ;;  %v6297_v50 = vld [vmem:[%s8489_s1 + $0x60] sm:$0xff] }
 0x7ce   : > { %v7519_v15 = vpop.f32.mrf.mxu0 }
 0x7cf   : > { %3796 = vrot.lane.b32.xlu1 %v7519_v15, %s6370_s26  ;;  %3651 = vrot.lane.b32.xlu0 %v7519_v15, %s6371_s27  ;;  %v7525_v35 = vpop.f32.mrf.mxu1 }
 0x7d0   : > { %8582 = vst [vmem:[#allocation2_spill] sm:$0xff] %v7525_v35  ;;  %v7529_v16 = vpop.f32.mrf.mxu0 }
 0x7d1   : > { %v7527_v62 = vpop.f32.mrf.mxu1  ;;  %8584 = vst [vmem:[#allocation11_spill] sm:$0xff] %v7529_v16 }
 0x7d2   : > { %8583 = vst [vmem:[#allocation3_spill] sm:$0xff] %v7527_v62  ;;  %v7539_v42 = vpop.f32.mrf.mxu0 }
 0x7d3   : > { %3941 = vrot.lane.b32.xlu1 %v7519_v15, %s6372_s28  ;;  %4505 = vrot.lane.b32.xlu0 %v7529_v16, %s6372_s28  ;;  %v7535_v21 = vpop.f32.mrf.mxu1 }
 0x7d4   : > { %8585 = vst [vmem:[#allocation10_spill] sm:$0xff] %v7535_v21  ;;  %v7557_v49 = vpop.f32.mrf.mxu0 }
 0x7d5   : > { %v7537_v5 = vpop.f32.mrf.mxu1  ;;  %8591 = vst [vmem:[#allocation4_spill] sm:$0xff] %v7557_v49 }
 0x7d6   : > { %8586 = vst [vmem:[#allocation9_spill] sm:$0xff] %v7537_v5  ;;  %v7563_v34 = vpop.f32.mrf.mxu0 }
 0x7d7   : > { %4215 = vrot.lane.b32.xlu1 %v7529_v16, %s6371_s27  ;;  %3653 = vrot.lane.b32.xlu0 %v7539_v42, %s6371_s27  ;;  %v7545_v1 = vpop.f32.mrf.mxu1 }
 0x7d8   : > { %8587 = vst [vmem:[#allocation8_spill] sm:$0xff] %v7545_v1  ;;  %v7573_v10 = vpop.f32.mrf.mxu0 }
 0x7d9   : > { %v7547_v37 = vpop.f32.mrf.mxu1  ;;  %8592 = vst [vmem:[#allocation20_spill] sm:$0xff] %v7573_v10 }
 0x7da   : > { %8588 = vst [vmem:[#allocation7_spill] sm:$0xff] %v7547_v37  ;;  %v7590_v9 = vpop.f32.mrf.mxu0 }
 0x7db   : > { %4360 = vrot.lane.b32.xlu1 %v7529_v16, %s6370_s26  ;;  %3798 = vrot.lane.b32.xlu0 %v7539_v42, %s6370_s26  ;;  %v7553_v46 = vpop.f32.mrf.mxu1 }
 0x7dc   : > { %8589 = vst [vmem:[#allocation6_spill] sm:$0xff] %v7553_v46  ;;  %v7604_v57 = vpop.f32.mrf.mxu0 }
 0x7dd   : > { %v7555_v38 = vpop.f32.mrf.mxu1  ;;  %8595 = vst [vmem:[#allocation21_spill] sm:$0xff] %v7604_v57 }
 0x7de   : > { %8590 = vst [vmem:[#allocation5_spill] sm:$0xff] %v7555_v38  ;;  %v7622_v22 = vpop.f32.mrf.mxu0 }
 0x7df   : > { %3943 = vrot.lane.b32.xlu0 %v7539_v42, %s6372_s28  ;;  %4507 = vrot.lane.b32.xlu1 %v7557_v49, %s6372_s28  ;;  %v5978_v33 = vpop.f32.mrf.mxu1 }
 0x7e0   : > { %v3398_v18 = vmul.f32 %v5978_v33, %v3396_v47  ;;  %v7676_v30 = vpop.f32.mrf.mxu0  ;;  %v6298_v33 = vld [vmem:[%s8489_s1 + $0x28] sm:$0xff] }
 0x7e1   : > { %v3354_v13 = vpop.f32.mrf.mxu1  ;;  %8596 = vst [vmem:[#allocation22_spill] sm:$0xff] %v7676_v30 }
 0x7e2   : > { %v3397_v12 = vmul.f32 %v3396_v47, %v3354_v13  ;;  %v7642_v40 = vadd.f32 %v3408_v19, %v3398_v18  ;;  %v6299_v13 = vld [vmem:[%s8489_s1 + $0x68] sm:$0xff]  ;;  %v6312_v18 = vld [vmem:[%s8489_s1 + $0xa0] sm:$0xff] }
 0x7e3   : > { %4217 = vrot.lane.b32.xlu0 %v7557_v49, %s6371_s27  ;;  %3655 = vrot.lane.b32.xlu1 %v7563_v34, %s6371_s27  ;;  %v5981_v55 = vpop.f32.mrf.mxu1 }
 0x7e4   : > { %v3400_v52 = vmul.f32 %v5981_v55, %v3396_v47  ;;  %v7650_v11 = vadd.f32 %v3408_v19, %v3397_v12  ;;  %v7732_v55 = vpop.f32.mrf.mxu0  ;;  %v6313_v12 = vld [vmem:[%s8489_s1 + $0xe0] sm:$0xff] }
 0x7e5   : > { %v3364_v8 = vpop.f32.mrf.mxu1 }
 0x7e6   : > { %v3399_v2 = vmul.f32 %v3396_v47, %v3364_v8  ;;  %v7626_v54 = vadd.f32 %v3408_v19, %v3400_v52  ;;  %v6300_v8 = vld [vmem:[%s8489_s1 + $0x30] sm:$0xff]  ;;  %v6311_v52 = vld [vmem:[%s8489_s1 + $0xd8] sm:$0xff] }
 0x7e7   : > { %4362 = vrot.lane.b32.xlu0 %v7557_v49, %s6370_s26  ;;  %3945 = vrot.lane.b32.xlu1 %v7563_v34, %s6372_s28  ;;  %v5984_v39 = vpop.f32.mrf.mxu1 }
 0x7e8   : > { %v3402_v58 = vmul.f32 %v5984_v39, %v3396_v47  ;;  %v7634_v56 = vadd.f32 %v3408_v19, %v3399_v2  ;;  %v6301_v39 = vld [vmem:[%s8489_s1 + $0x70] sm:$0xff] }
 0x7e9   : > { %v3374_v44 = vpop.f32.mrf.mxu1 }
 0x7ea   : > { %v3401_v0 = vmul.f32 %v3396_v47, %v3374_v44  ;;  %v7608_v36 = vadd.f32 %v3408_v19, %v3402_v58  ;;  %v7750_v44 = vpop.f32.mrf.mxu0  ;;  %v6309_v58 = vld [vmem:[%s8489_s1 + $0xd0] sm:$0xff] }
 0x7eb   : > { %3800 = vrot.lane.b32.xlu0 %v7563_v34, %s6370_s26  ;;  %4364 = vrot.lane.b32.xlu1 %v7573_v10, %s6370_s26  ;;  %v5987_v14 = vpop.f32.mrf.mxu1  ;;  %8597 = vst [vmem:[#allocation23_spill] sm:$0xff] %v7750_v44 }
 0x7ec   : > { %v3404_v63 = vmul.f32 %v5987_v14, %v3396_v47  ;;  %v7616_v48 = vadd.f32 %v3408_v19, %v3401_v0  ;;  %v7766_v14 = vpop.f32.mrf.mxu0  ;;  %v6310_v0 = vld [vmem:[%s8489_s1 + $0x98] sm:$0xff] }
 0x7ed   : > { %v3384_v43 = vpop.f32.mrf.mxu1 }
 0x7ee   : > { %v7592_v41 = vadd.f32 %v3408_v19, %v3404_v63  ;;  %v3403_v3 = vmul.f32 %v3396_v47, %v3384_v43  ;;  %v6303_v47 = vld [vmem:[%s8489_s1 + $0x78] sm:$0xff]  ;;  %v6306_v63 = vld [vmem:[%s8489_s1 + $0x88] sm:$0xff]  ;;  %v7824_v2 = vpop.f32.mrf.mxu0 }
 0x7ef   : > { %4219 = vrot.lane.b32.xlu0 %v7573_v10, %s6371_s27  ;;  %3657 = vrot.lane.b32.xlu1 %v7590_v9, %s6371_s27  ;;  %v6307_v43 = vld [vmem:[%s8489_s1 + $0xc8] sm:$0xff]  ;;  %8598 = vst [vmem:[#allocation24_spill] sm:$0xff] %v7824_v2 }
 0x7f0   : > { %v7598_v23 = vadd.f32 %v3408_v19, %v3403_v3  ;;  %5988 = vmatprep.subr.mxu0 %v7592_v41  ;;  %6016 = vmatprep.subr.mxu1 %v7592_v41  ;;  %v6305_v19 = vld [vmem:[%s8489_s1 + $0xc0] sm:$0xff]  ;;  %v6308_v3 = vld [vmem:[%s8489_s1 + $0x90] sm:$0xff] }
 0x7f1   : > { %5989 = vmatpush3.msra.mxu0 %v7592_v41  ;;  %6017 = vmatpush3.msra.mxu1 %v7592_v41 }
 0x7f2   : > { %5990 = vmatprep.subr.mxu0 %v7598_v23  ;;  %6018 = vmatprep.subr.mxu1 %v7598_v23 }
 0x7f3   : > { %4509 = vrot.lane.b32.xlu0 %v7573_v10, %s6372_s28  ;;  %4366 = vrot.lane.b32.xlu1 %v7604_v57, %s6370_s26 }
 0x7f4   : > { %5991 = vmatpush3.msra.mxu0 %v7598_v23  ;;  %6019 = vmatpush3.msra.mxu1 %v7598_v23 }
 0x7f5   : > { %5992 = vmatprep.subr.mxu0 %v7608_v36  ;;  %6020 = vmatprep.subr.mxu1 %v7608_v36 }
 0x7f6   : > { %5993 = vmatpush3.msra.mxu0 %v7608_v36  ;;  %6021 = vmatpush3.msra.mxu1 %v7608_v36 }
 0x7f7   : > { %5994 = vmatprep.subr.mxu0 %v7616_v48  ;;  %6022 = vmatprep.subr.mxu1 %v7616_v48 }
 0x7f8   : > { %3802 = vrot.lane.b32.xlu0 %v7590_v9, %s6370_s26  ;;  %3659 = vrot.lane.b32.xlu1 %v7622_v22, %s6371_s27 }
 0x7f9   : > { %5995 = vmatpush3.msra.mxu0 %v7616_v48  ;;  %6023 = vmatpush3.msra.mxu1 %v7616_v48 }
 0x7fa   : > { %5996 = vmatprep.subr.mxu0 %v7626_v54  ;;  %6024 = vmatprep.subr.mxu1 %v7626_v54 }
 0x7fb   : > { %5997 = vmatpush3.msra.mxu0 %v7626_v54  ;;  %6025 = vmatpush3.msra.mxu1 %v7626_v54 }
 0x7fc   : > { %5998 = vmatprep.subr.mxu0 %v7634_v56  ;;  %6026 = vmatprep.subr.mxu1 %v7634_v56 }
 0x7fd   : > { %3947 = vrot.lane.b32.xlu0 %v7590_v9, %s6372_s28  ;;  %3804 = vrot.lane.b32.xlu1 %v7622_v22, %s6370_s26 }
 0x7fe   : > { %5999 = vmatpush3.msra.mxu0 %v7634_v56  ;;  %6027 = vmatpush3.msra.mxu1 %v7634_v56 }
 0x7ff   : > { %6000 = vmatprep.subr.mxu0 %v7642_v40  ;;  %6028 = vmatprep.subr.mxu1 %v7642_v40 }
 0x800   : > { %6001 = vmatpush3.msra.mxu0 %v7642_v40  ;;  %6029 = vmatpush3.msra.mxu1 %v7642_v40 }
 0x801   : > { %6002 = vmatprep.subr.mxu0 %v7650_v11  ;;  %6030 = vmatprep.subr.mxu1 %v7650_v11 }
 0x802   : > { %4221 = vrot.lane.b32.xlu0 %v7604_v57, %s6371_s27  ;;  %3949 = vrot.lane.b32.xlu1 %v7622_v22, %s6372_s28 }
 0x803   : > { %6003 = vmatpush3.msra.mxu0 %v7650_v11  ;;  %6031 = vmatpush3.msra.mxu1 %v7650_v11 }
 0x804   : > { %6005 = vmatmul.mubr.msk.f32.vlgmr.msra.gmra.mxu0 %vm730_vm1, %v6290_v25  ;;  %6033 = vmatmul.mubr.msk.f32.vlgmr.msra.gmra.mxu1 %vm730_vm1, %v6291_v28  ;;  %v6314_v25 = vld [vmem:[%s8489_s1 + $0xa8] sm:$0xff] }
 0x805   : > { %6044 = vmatprep.subr.mxu0 %v7592_v41  ;;  %6072 = vmatprep.subr.mxu1 %v7592_v41  ;;  %v6315_v28 = vld [vmem:[%s8489_s1 + $0xe8] sm:$0xff] }
 0x806   : > { %6045 = vmatpush3.msra.mxu0 %v7592_v41  ;;  %6073 = vmatpush3.msra.mxu1 %v7592_v41 }
 0x807   : > { %6046 = vmatprep.subr.mxu0 %v7598_v23  ;;  %6074 = vmatprep.subr.mxu1 %v7598_v23 }
 0x808   : > { %4511 = vrot.lane.b32.xlu0 %v7604_v57, %s6372_s28  ;;  %4368 = vrot.lane.b32.xlu1 %v7676_v30, %s6370_s26 }
 0x809   : > { %6007 = vmatprep.mubr.msk.f32.mxu0 %vm730_vm1, %v6292_v31  ;;  %6035 = vmatprep.mubr.msk.f32.mxu1 %vm730_vm1, %v6293_v60  ;;  %v6316_v31 = vld [vmem:[%s8489_s1 + $0xb0] sm:$0xff] }
 0x80a   : > { %6047 = vmatpush3.msra.mxu0 %v7598_v23  ;;  %6075 = vmatpush3.msra.mxu1 %v7598_v23  ;;  %v6317_v60 = vld [vmem:[%s8489_s1 + $0xf0] sm:$0xff] }
 0x80b   : > { %6008 = vmatmul.mubr.msk.f32.gmra.mxu0 %vm730_vm1, %v6294_v24  ;;  %6036 = vmatmul.mubr.msk.f32.gmra.mxu1 %vm730_vm1, %v6295_v32  ;;  %v6318_v24 = vld [vmem:[%s8489_s1 + $0xb8] sm:$0xff] }
 0x80c   : > { %6048 = vmatprep.subr.mxu0 %v7608_v36  ;;  %6076 = vmatprep.subr.mxu1 %v7608_v36  ;;  %v6319_v32 = vld [vmem:[%s8489_s1 + $0xf8] sm:$0xff] }
 0x80d   : > { %6049 = vmatpush3.msra.mxu0 %v7608_v36  ;;  %6077 = vmatpush3.msra.mxu1 %v7608_v36 }
 0x80e   : > { %6050 = vmatprep.subr.mxu0 %v7616_v48  ;;  %6078 = vmatprep.subr.mxu1 %v7616_v48 }
 0x80f   : > { %4513 = vrot.lane.b32.xlu1 %v7676_v30, %s6372_s28  ;;  %4223 = vrot.lane.b32.xlu0 %v7676_v30, %s6371_s27 }
 0x810   : > { %6010 = vmatprep.mubr.msk.f32.mxu0 %vm730_vm1, %v6296_v6  ;;  %6038 = vmatprep.mubr.msk.f32.mxu1 %vm730_vm1, %v6297_v50  ;;  %v7882_v6 = vpop.f32.mrf.mxu0  ;;  %v6320_v50 = vld [vmem:[%s8489_s1 + $0x100] sm:$0xff] }
 0x811   : > { %6051 = vmatpush3.msra.mxu0 %v7616_v48  ;;  %6079 = vmatpush3.msra.mxu1 %v7616_v48 }
 0x812   : > { %6011 = vmatmul.mubr.msk.f32.gmra.mxu0 %vm730_vm1, %v6298_v33  ;;  %6039 = vmatmul.mubr.msk.f32.gmra.mxu1 %vm730_vm1, %v6299_v13  ;;  %v6321_v33 = vld [vmem:[%s8489_s1 + $0x140] sm:$0xff]  ;;  %v6322_v13 = vld [vmem:[%s8489_s1 + $0x108] sm:$0xff] }
 0x813   : > { %6052 = vmatprep.subr.mxu0 %v7626_v54  ;;  %6080 = vmatprep.subr.mxu1 %v7626_v54 }
 0x814   : > { %6053 = vmatpush3.msra.mxu0 %v7626_v54  ;;  %6081 = vmatpush3.msra.mxu1 %v7626_v54 }
 0x815   : > { %6054 = vmatprep.subr.mxu0 %v7634_v56  ;;  %6082 = vmatprep.subr.mxu1 %v7634_v56 }
 0x816   : > { %3951 = vrot.lane.b32.xlu1 %v7732_v55, %s6372_s28  ;;  %3661 = vrot.lane.b32.xlu0 %v7732_v55, %s6371_s27 }
 0x817   : > { %6013 = vmatprep.mubr.msk.f32.mxu0 %vm730_vm1, %v6300_v8  ;;  %6041 = vmatprep.mubr.msk.f32.mxu1 %vm730_vm1, %v6301_v39  ;;  %v6323_v8 = vld [vmem:[%s8489_s1 + $0x148] sm:$0xff]  ;;  %v6324_v39 = vld [vmem:[%s8489_s1 + $0x110] sm:$0xff] }
 0x818   : > { %6055 = vmatpush3.msra.mxu0 %v7634_v56  ;;  %6083 = vmatpush3.msra.mxu1 %v7634_v56 }
 0x819   : > { %6014 = vmatmul.mubr.msk.f32.gmra.mxu0 %vm730_vm1, %v6302_v4  ;;  %6042 = vmatmul.mubr.msk.f32.gmra.mxu1 %vm730_vm1, %v6303_v47  ;;  %v6325_v4 = vld [vmem:[%s8489_s1 + $0x150] sm:$0xff]  ;;  %v6326_v47 = vld [vmem:[%s8489_s1 + $0x118] sm:$0xff] }
 0x81a   : > { %6056 = vmatprep.subr.mxu0 %v7642_v40  ;;  %6084 = vmatprep.subr.mxu1 %v7642_v40 }
 0x81b   : > { %6057 = vmatpush3.msra.mxu0 %v7642_v40  ;;  %6085 = vmatpush3.msra.mxu1 %v7642_v40 }
 0x81c   : > { %6058 = vmatprep.subr.mxu0 %v7650_v11  ;;  %6086 = vmatprep.subr.mxu1 %v7650_v11 }
 0x81d   : > { %3806 = vrot.lane.b32.xlu0 %v7732_v55, %s6370_s26  ;;  %3663 = vrot.lane.b32.xlu1 %v7766_v14, %s6371_s27 }
 0x81e   : > { %6059 = vmatpush3.msra.mxu0 %v7650_v11  ;;  %6060 = vmatprep.mubr.msk.f32.mxu0 %vm730_vm1, %v6304_v20  ;;  %v6327_v20 = vld [vmem:[%s8489_s1 + $0x158] sm:$0xff] }
 0x81f   : > { %6087 = vmatpush3.msra.mxu1 %v7650_v11  ;;  %6088 = vmatprep.mubr.msk.f32.mxu1 %vm730_vm1, %v6305_v19  ;;  %v7940_v19 = vpop.f32.mrf.mxu0 }
 0x820   : > { %6061 = vmatmul.mubr.msk.f32.vlgmr.msra.gmra.mxu0 %vm730_vm1, %v6306_v63  ;;  %6089 = vmatmul.mubr.msk.f32.vlgmr.msra.gmra.mxu1 %vm730_vm1, %v6307_v43  ;;  %8599 = vst [vmem:[#allocation25_spill] sm:$0xff] %v7940_v19  ;;  %v6328_v63 = vld [vmem:[%s8489_s1 + $0x120] sm:$0xff] }
 0x821   : > { %6100 = vmatprep.subr.mxu0 %v7592_v41  ;;  %6128 = vmatprep.subr.mxu1 %v7592_v41  ;;  %v6329_v43 = vld [vmem:[%s8489_s1 + $0x160] sm:$0xff] }
 0x822   : > { %6101 = vmatpush3.msra.mxu0 %v7592_v41  ;;  %6129 = vmatpush3.msra.mxu1 %v7592_v41 }
 0x823   : > { %6102 = vmatprep.subr.mxu0 %v7598_v23  ;;  %6130 = vmatprep.subr.mxu1 %v7598_v23 }
 0x824   : > { %4225 = vrot.lane.b32.xlu0 %v7750_v44, %s6371_s27  ;;  %3953 = vrot.lane.b32.xlu1 %v7766_v14, %s6372_s28 }
 0x825   : > { %6063 = vmatprep.mubr.msk.f32.mxu0 %vm730_vm1, %v6308_v3  ;;  %6091 = vmatprep.mubr.msk.f32.mxu1 %vm730_vm1, %v6309_v58  ;;  %v6330_v3 = vld [vmem:[%s8489_s1 + $0x128] sm:$0xff] }
 0x826   : > { %6103 = vmatpush3.msra.mxu0 %v7598_v23  ;;  %6131 = vmatpush3.msra.mxu1 %v7598_v23  ;;  %v6331_v58 = vld [vmem:[%s8489_s1 + $0x168] sm:$0xff] }
 0x827   : > { %6064 = vmatmul.mubr.msk.f32.gmra.mxu0 %vm730_vm1, %v6310_v0  ;;  %6092 = vmatmul.mubr.msk.f32.gmra.mxu1 %vm730_vm1, %v6311_v52  ;;  %v6332_v0 = vld [vmem:[%s8489_s1 + $0x130] sm:$0xff] }
 0x828   : > { %6104 = vmatprep.subr.mxu0 %v7608_v36  ;;  %6132 = vmatprep.subr.mxu1 %v7608_v36  ;;  %v6333_v52 = vld [vmem:[%s8489_s1 + $0x170] sm:$0xff] }
 0x829   : > { %6105 = vmatpush3.msra.mxu0 %v7608_v36  ;;  %6133 = vmatpush3.msra.mxu1 %v7608_v36 }
 0x82a   : > { %6106 = vmatprep.subr.mxu0 %v7616_v48  ;;  %6134 = vmatprep.subr.mxu1 %v7616_v48 }
 0x82b   : > { %4370 = vrot.lane.b32.xlu0 %v7750_v44, %s6370_s26  ;;  %4227 = vrot.lane.b32.xlu1 %v7824_v2, %s6371_s27 }
 0x82c   : > { %6066 = vmatprep.mubr.msk.f32.mxu0 %vm730_vm1, %v6312_v18  ;;  %6094 = vmatprep.mubr.msk.f32.mxu1 %vm730_vm1, %v6313_v12  ;;  %v6334_v18 = vld [vmem:[%s8489_s1 + $0x138] sm:$0xff] }
 0x82d   : > { %6107 = vmatpush3.msra.mxu0 %v7616_v48  ;;  %6135 = vmatpush3.msra.mxu1 %v7616_v48  ;;  %v6335_v12 = vld [vmem:[%s8489_s1 + $0x178] sm:$0xff] }
 0x82e   : > { %6067 = vmatmul.mubr.msk.f32.gmra.mxu0 %vm730_vm1, %v6314_v25  ;;  %6095 = vmatmul.mubr.msk.f32.gmra.mxu1 %vm730_vm1, %v6315_v28  ;;  %v6336_v25 = vld [vmem:[%s8489_s1 + $0x180] sm:$0xff] }
 0x82f   : > { %6108 = vmatprep.subr.mxu0 %v7626_v54  ;;  %6136 = vmatprep.subr.mxu1 %v7626_v54  ;;  %v6337_v28 = vld [vmem:[%s8489_s1 + $0x1c0] sm:$0xff] }
 0x830   : > { %6109 = vmatpush3.msra.mxu0 %v7626_v54  ;;  %6137 = vmatpush3.msra.mxu1 %v7626_v54 }
 0x831   : > { %6110 = vmatprep.subr.mxu0 %v7634_v56  ;;  %6138 = vmatprep.subr.mxu1 %v7634_v56 }
 0x832   : > { %4515 = vrot.lane.b32.xlu0 %v7750_v44, %s6372_s28  ;;  %4372 = vrot.lane.b32.xlu1 %v7824_v2, %s6370_s26 }
 0x833   : > { %6069 = vmatprep.mubr.msk.f32.mxu0 %vm730_vm1, %v6316_v31  ;;  %6097 = vmatprep.mubr.msk.f32.mxu1 %vm730_vm1, %v6317_v60  ;;  %v6338_v31 = vld [vmem:[%s8489_s1 + $0x188] sm:$0xff] }
 0x834   : > { %6111 = vmatpush3.msra.mxu0 %v7634_v56  ;;  %6139 = vmatpush3.msra.mxu1 %v7634_v56  ;;  %v6339_v60 = vld [vmem:[%s8489_s1 + $0x1c8] sm:$0xff] }
 0x835   : > { %6070 = vmatmul.mubr.msk.f32.gmra.mxu0 %vm730_vm1, %v6318_v24  ;;  %6098 = vmatmul.mubr.msk.f32.gmra.mxu1 %vm730_vm1, %v6319_v32  ;;  %v6340_v24 = vld [vmem:[%s8489_s1 + $0x190] sm:$0xff] }
 0x836   : > { %6112 = vmatprep.subr.mxu0 %v7642_v40  ;;  %6140 = vmatprep.subr.mxu1 %v7642_v40  ;;  %v6341_v32 = vld [vmem:[%s8489_s1 + $0x1d0] sm:$0xff] }
 0x837   : > { %6113 = vmatpush3.msra.mxu0 %v7642_v40  ;;  %6141 = vmatpush3.msra.mxu1 %v7642_v40 }
 0x838   : > { %6114 = vmatprep.subr.mxu0 %v7650_v11  ;;  %6142 = vmatprep.subr.mxu1 %v7650_v11 }
 0x839   : > { %3808 = vrot.lane.b32.xlu0 %v7766_v14, %s6370_s26  ;;  %3665 = vrot.lane.b32.xlu1 %v7882_v6, %s6371_s27 }
 0x83a   : > { %6115 = vmatpush3.msra.mxu0 %v7650_v11  ;;  %6116 = vmatprep.mubr.msk.f32.mxu0 %vm730_vm1, %v6320_v50  ;;  %v6342_v50 = vld [vmem:[%s8489_s1 + $0x1d8] sm:$0xff] }
 0x83b   : > { %6143 = vmatpush3.msra.mxu1 %v7650_v11  ;;  %6144 = vmatprep.mubr.msk.f32.mxu1 %vm730_vm1, %v6321_v33  ;;  %v6345_v33 = vld [vmem:[%s8489_s1 + $0x1e0] sm:$0xff] }
 0x83c   : > { %6117 = vmatmul.mubr.msk.f32.vlgmr.msra.gmra.mxu0 %vm730_vm1, %v6322_v13  ;;  %6145 = vmatmul.mubr.msk.f32.vlgmr.msra.gmra.mxu1 %vm730_vm1, %v6323_v8  ;;  %v6347_v13 = vld [vmem:[%s8489_s1 + $0x1a8] sm:$0xff]  ;;  %v6349_v8 = vld [vmem:[%s8489_s1 + $0x1f0] sm:$0xff] }
 0x83d   : > { %6156 = vmatprep.subr.mxu0 %v7592_v41  ;;  %6184 = vmatprep.subr.mxu1 %v7592_v41 }
 0x83e   : > { %6157 = vmatpush3.msra.mxu0 %v7592_v41  ;;  %6185 = vmatpush3.msra.mxu1 %v7592_v41 }
 0x83f   : > { %6158 = vmatprep.subr.mxu0 %v7598_v23  ;;  %6186 = vmatprep.subr.mxu1 %v7598_v23 }
 0x840   : > { %3810 = vrot.lane.b32.xlu0 %v7882_v6, %s6370_s26  ;;  %3955 = vrot.lane.b32.xlu1 %v7882_v6, %s6372_s28 }
 0x841   : > { %6119 = vmatprep.mubr.msk.f32.mxu0 %vm730_vm1, %v6324_v39  ;;  %6147 = vmatprep.mubr.msk.f32.mxu1 %vm730_vm1, %v6325_v4  ;;  %v6351_v39 = vld [vmem:[%s8489_s1 + $0x1b8] sm:$0xff]  ;;  %v6353_v4 = vld [vmem:[%s8489_s1 + $0x208] sm:$0xff] }
 0x842   : > { %6159 = vmatpush3.msra.mxu0 %v7598_v23  ;;  %6187 = vmatpush3.msra.mxu1 %v7598_v23 }
 0x843   : > { %6120 = vmatmul.mubr.msk.f32.gmra.mxu0 %vm730_vm1, %v6326_v47  ;;  %6148 = vmatmul.mubr.msk.f32.gmra.mxu1 %vm730_vm1, %v6327_v20  ;;  %v6355_v47 = vld [vmem:[%s8489_s1 + $0x218] sm:$0xff]  ;;  %v6357_v20 = vld [vmem:[%s8489_s1 + $0x228] sm:$0xff] }
 0x844   : > { %6160 = vmatprep.subr.mxu0 %v7608_v36  ;;  %6188 = vmatprep.subr.mxu1 %v7608_v36 }
 0x845   : > { %6161 = vmatpush3.msra.mxu0 %v7608_v36  ;;  %6189 = vmatpush3.msra.mxu1 %v7608_v36 }
 0x846   : > { %6162 = vmatprep.subr.mxu0 %v7616_v48  ;;  %6190 = vmatprep.subr.mxu1 %v7616_v48 }
 0x847   : > { %4374 = vrot.lane.b32.xlu1 %v7940_v19, %s6370_s26  ;;  %4229 = vrot.lane.b32.xlu0 %v7940_v19, %s6371_s27  ;;  %s8441_s27 = scalar_lea.vmem %s8502_s14, %s6481_s0 }
 0x848   : > { %6122 = vmatprep.mubr.msk.f32.mxu0 %vm730_vm1, %v6328_v63  ;;  %6150 = vmatprep.mubr.msk.f32.mxu1 %vm730_vm1, %v6329_v43  ;;  %v6358_v63 = vld [vmem:[%s8489_s1 + $0x230] sm:$0xff]  ;;  %v6359_v43 = vld [vmem:[%s8489_s1 + $0x238] sm:$0xff] }
 0x849   : > { %6163 = vmatpush3.msra.mxu0 %v7616_v48  ;;  %6191 = vmatpush3.msra.mxu1 %v7616_v48 }
 0x84a   : > { %6123 = vmatmul.mubr.msk.f32.gmra.mxu0 %vm730_vm1, %v6330_v3  ;;  %6151 = vmatmul.mubr.msk.f32.gmra.mxu1 %vm730_vm1, %v6331_v58  ;;  %v8114_v3 = vpop.permute.xlu0 %3651  ;;  %v8116_v58 = vpop.permute.xlu1 %3796 }
 0x84b   : > { %6164 = vmatprep.subr.mxu0 %v7626_v54  ;;  %6192 = vmatprep.subr.mxu1 %v7626_v54 }
 0x84c   : > { %6165 = vmatpush3.msra.mxu0 %v7626_v54  ;;  %6193 = vmatpush3.msra.mxu1 %v7626_v54 }
 0x84d   : > { %6166 = vmatprep.subr.mxu0 %v7634_v56  ;;  %6194 = vmatprep.subr.mxu1 %v7634_v56 }
 0x84e   : > { %4519 = vrot.lane.b32.xlu1 %v7940_v19, %s6372_s28  ;;  %4517 = vrot.lane.b32.xlu0 %v7824_v2, %s6372_s28 }
 0x84f   : > { %6125 = vmatprep.mubr.msk.f32.mxu0 %vm730_vm1, %v6332_v0  ;;  %6153 = vmatprep.mubr.msk.f32.mxu1 %vm730_vm1, %v6333_v52  ;;  %v8118_v0 = vpop.permute.xlu0 %4505  ;;  %v8120_v52 = vpop.permute.xlu1 %3941 }
 0x850   : > { %6167 = vmatpush3.msra.mxu0 %v7634_v56  ;;  %6195 = vmatpush3.msra.mxu1 %v7634_v56  ;;  %8600 = vst [vmem:[#allocation26_spill] sm:$0xff] %v8118_v0 }
 0x851   : > { %6126 = vmatmul.mubr.msk.f32.gmra.mxu0 %vm730_vm1, %v6334_v18  ;;  %6154 = vmatmul.mubr.msk.f32.gmra.mxu1 %vm730_vm1, %v6335_v12 }
 0x852   : > { %6168 = vmatprep.subr.mxu0 %v7642_v40  ;;  %6196 = vmatprep.subr.mxu1 %v7642_v40 }
 0x853   : > { %6169 = vmatpush3.msra.mxu0 %v7642_v40  ;;  %6197 = vmatpush3.msra.mxu1 %v7642_v40  ;;  %v8122_v18 = vpop.permute.xlu0 %3653  ;;  %v8124_v12 = vpop.permute.xlu1 %4215 }
 0x854   : > { %6170 = vmatprep.subr.mxu0 %v7650_v11  ;;  %6198 = vmatprep.subr.mxu1 %v7650_v11  ;;  %8601 = vst [vmem:[#allocation27_spill] sm:$0xff] %v8124_v12 }
 0x855   : > { %6171 = vmatpush3.msra.mxu0 %v7650_v11  ;;  %6172 = vmatprep.mubr.msk.f32.mxu0 %vm730_vm1, %v6336_v25 }
 0x856   : > { %6199 = vmatpush3.msra.mxu1 %v7650_v11  ;;  %6200 = vmatprep.mubr.msk.f32.mxu1 %vm730_vm1, %v6337_v28 }
 0x857   : > { %6173 = vmatmul.mubr.msk.f32.vlgmr.msra.gmra.mxu0 %vm730_vm1, %v6338_v31  ;;  %6201 = vmatmul.mubr.msk.f32.vlgmr.msra.gmra.mxu1 %vm730_vm1, %v6339_v60  ;;  %v8126_v25 = vpop.permute.xlu0 %3798  ;;  %v8128_v28 = vpop.permute.xlu1 %4360 }
 0x858   : > { %6212 = vmatprep.subr.mxu0 %v7592_v41  ;;  %6175 = vmatprep.mubr.msk.f32.mxu0 %vm730_vm1, %v6340_v24  ;;  %8602 = vst [vmem:[#allocation28_spill] sm:$0xff] %v8128_v28 }
 0x859   : > { %6213 = vmatpush3.msra.mxu0 %v7592_v41  ;;  %6203 = vmatprep.mubr.msk.f32.mxu1 %vm730_vm1, %v6341_v32  ;;  %v6343_v41 = vld [vmem:[%s8489_s1 + $0x198] sm:$0xff] }
 0x85a   : > { %6214 = vmatprep.subr.mxu0 %v7598_v23 }
 0x85b   : > { %6215 = vmatpush3.msra.mxu0 %v7598_v23  ;;  %6204 = vmatmul.mubr.msk.f32.gmra.mxu1 %vm730_vm1, %v6342_v50  ;;  %v6344_v23 = vld [vmem:[%s8489_s1 + $0x1a0] sm:$0xff]  ;;  %v8130_v31 = vpop.permute.xlu0 %3943  ;;  %v8132_v60 = vpop.permute.xlu1 %4507 }
 0x85c   : > { %6176 = vmatmul.mubr.msk.f32.gmra.mxu0 %vm730_vm1, %v6343_v41  ;;  %6216 = vmatprep.subr.mxu0 %v7608_v36  ;;  %8603 = vst [vmem:[#allocation29_spill] sm:$0xff] %v8132_v60 }
 0x85d   : > { %6217 = vmatpush3.msra.mxu0 %v7608_v36  ;;  %6178 = vmatprep.mubr.msk.f32.mxu0 %vm730_vm1, %v6344_v23  ;;  %v6346_v36 = vld [vmem:[%s8489_s1 + $0x1e8] sm:$0xff] }
 0x85e   : > { %6218 = vmatprep.subr.mxu0 %v7616_v48  ;;  %6206 = vmatprep.mubr.msk.f32.mxu1 %vm730_vm1, %v6345_v33 }
 0x85f   : > { %6219 = vmatpush3.msra.mxu0 %v7616_v48  ;;  %6207 = vmatmul.mubr.msk.f32.gmra.mxu1 %vm730_vm1, %v6346_v36  ;;  %v6348_v48 = vld [vmem:[%s8489_s1 + $0x1b0] sm:$0xff]  ;;  %v8134_v24 = vpop.permute.xlu0 %4217  ;;  %v8136_v32 = vpop.permute.xlu1 %3655 }
 0x860   : > { %6179 = vmatmul.mubr.msk.f32.gmra.mxu0 %vm730_vm1, %v6347_v13  ;;  %6220 = vmatprep.subr.mxu0 %v7626_v54  ;;  %8604 = vst [vmem:[#allocation30_spill] sm:$0xff] %v8134_v24 }
 0x861   : > { %6221 = vmatpush3.msra.mxu0 %v7626_v54  ;;  %6181 = vmatprep.mubr.msk.f32.mxu0 %vm730_vm1, %v6348_v48  ;;  %v6350_v54 = vld [vmem:[%s8489_s1 + $0x1f8] sm:$0xff] }
 0x862   : > { %6222 = vmatprep.subr.mxu0 %v7634_v56  ;;  %6209 = vmatprep.mubr.msk.f32.mxu1 %vm730_vm1, %v6349_v8 }
 0x863   : > { %6223 = vmatpush3.msra.mxu0 %v7634_v56  ;;  %6210 = vmatmul.mubr.msk.f32.gmra.mxu1 %vm730_vm1, %v6350_v54  ;;  %v6352_v56 = vld [vmem:[%s8489_s1 + $0x200] sm:$0xff]  ;;  %v8138_v50 = vpop.permute.xlu0 %4362  ;;  %v8140_v41 = vpop.permute.xlu1 %3945 }
 0x864   : > { %6182 = vmatmul.mubr.msk.f32.gmra.mxu0 %vm730_vm1, %v6351_v39  ;;  %6224 = vmatprep.subr.mxu0 %v7642_v40  ;;  %8605 = vst [vmem:[#allocation31_spill] sm:$0xff] %v8138_v50  ;;  %8606 = vst [vmem:[#allocation32_spill] sm:$0xff] %v8140_v41 }
 0x865   : > { %6225 = vmatpush3.msra.mxu0 %v7642_v40  ;;  %6228 = vmatprep.mubr.msk.f32.mxu0 %vm730_vm1, %v6352_v56  ;;  %v6354_v40 = vld [vmem:[%s8489_s1 + $0x210] sm:$0xff] }
 0x866   : > { %6226 = vmatprep.subr.mxu0 %v7650_v11 }
 0x867   : > { %6227 = vmatpush3.msra.mxu0 %v7650_v11  ;;  %v6356_v11 = vld [vmem:[%s8489_s1 + $0x220] sm:$0xff]  ;;  %v8142_v23 = vpop.permute.xlu0 %3800  ;;  %v8144_v33 = vpop.permute.xlu1 %4364 }
 0x868   : > { %6229 = vmatmul.mubr.msk.f32.vlgmr.msra.gmra.mxu0 %vm730_vm1, %v6353_v4  ;;  %8607 = vst [vmem:[#allocation33_spill] sm:$0xff] %v8144_v33 }
 0x869   : > { %6231 = vmatprep.mubr.msk.f32.mxu0 %vm730_vm1, %v6354_v40 }
 0x86b   : > { %v8146_v36 = vpop.permute.xlu0 %4219  ;;  %v8148_v13 = vpop.permute.xlu1 %3657 }
 0x86c   : > { %6232 = vmatmul.mubr.msk.f32.gmra.mxu0 %vm730_vm1, %v6355_v47  ;;  %8608 = vst [vmem:[#allocation34_spill] sm:$0xff] %v8146_v36 }
 0x86d   : > { %6234 = vmatprep.mubr.msk.f32.mxu0 %vm730_vm1, %v6356_v11 }
 0x86f   : > { %v8154_v54 = vpop.permute.xlu0 %4509  ;;  %v8160_v4 = vpop.permute.xlu1 %4366 }
 0x870   : > { %6235 = vmatmul.mubr.msk.f32.gmra.mxu0 %vm730_vm1, %v6357_v20  ;;  %8609 = vst [vmem:[#allocation35_spill] sm:$0xff] %v8154_v54  ;;  %8610 = vst [vmem:[#allocation36_spill] sm:$0xff] %v8160_v4 }
 0x871   : > { %6237 = vmatprep.mubr.msk.f32.mxu0 %vm730_vm1, %v6358_v63 }
 0x873   : > { %v8166_v11 = vpop.permute.xlu0 %3802 }
 0x874   : > { %6238 = vmatmul.mubr.msk.f32.gmra.mxu0 %vm730_vm1, %v6359_v43  ;;  %v8172_v43 = vpop.permute.xlu1 %3659 }
 0x877   : > { %v8178_v53 = vpop.permute.xlu0 %3947 }
 0x878   : > { %v8184_v26 = vpop.permute.xlu1 %3804 }
 0x87b   : > { %v8190_v38 = vpop.permute.xlu0 %4221 }
 0x87c   : > { %8611 = vst [vmem:[#allocation37_spill] sm:$0xff] %v8190_v38  ;;  %v8196_v1 = vpop.permute.xlu1 %3949 }
 0x87d   : > { %8612 = vst [vmem:[#allocation38_spill] sm:$0xff] %v8196_v1 }
 0x87f   : > { %v8200_v54 = vpop.permute.xlu0 %4511 }
 0x880   : > { %8613 = vst [vmem:[#allocation39_spill] sm:$0xff] %v8200_v54  ;;  %v8204_v0 = vpop.permute.xlu1 %4368 }
 0x881   : > { %8614 = vst [vmem:[#allocation40_spill] sm:$0xff] %v8204_v0 }
 0x883   : > { %v8208_v4 = vpop.permute.xlu0 %4223 }
 0x884   : > { %8615 = vst [vmem:[#allocation41_spill] sm:$0xff] %v8208_v4  ;;  %v8212_v2 = vpop.permute.xlu1 %4513 }
 0x885   : > { %8617 = vst [vmem:[#allocation43_spill] sm:$0xff] %v8212_v2 }
 0x888   : > { %v3662_v54 = vpop.permute.xlu0 %3661  ;;  %v8222_v0 = vpop.permute.xlu1 %3951 }
 0x889   : > { %8620 = vst [vmem:[#allocation46_spill] sm:$0xff] %v8222_v0 }
 0x88f   : > { %v8228_v4 = vpop.permute.xlu0 %3806  ;;  %v3664_v10 = vpop.permute.xlu1 %3663 }
 0x896   : > { %v8244_v16 = vpop.permute.xlu1 %3953 }
 0x897   : > { %8628 = vst [vmem:[#allocation54_spill] sm:$0xff] %v8244_v16 }
 0x8c4   : > { %v8150_v48 = vpop.f32.mrf.mxu0  ;;  %v8152_v8 = vpop.f32.mrf.mxu1 }
 0x8c6   : > { %v8156_v39 = vpop.f32.mrf.mxu0  ;;  %v8158_v56 = vpop.f32.mrf.mxu1 }
 0x8cb   : > { %v8162_v40 = vpop.f32.mrf.mxu0  ;;  %v8164_v47 = vpop.f32.mrf.mxu1 }
 0x8cd   : > { %v8168_v20 = vpop.f32.mrf.mxu0  ;;  %v8170_v63 = vpop.f32.mrf.mxu1 }
 0x8d2   : > { %v8174_v61 = vpop.f32.mrf.mxu0  ;;  %v8176_v27 = vpop.f32.mrf.mxu1 }
 0x8d4   : > { %v8180_v51 = vpop.f32.mrf.mxu0  ;;  %v8182_v29 = vpop.f32.mrf.mxu1 }
 0x8d9   : > { %v8186_v45 = vpop.f32.mrf.mxu0  ;;  %v8188_v7 = vpop.f32.mrf.mxu1 }
 0x8db   : > { %v8192_v46 = vpop.f32.mrf.mxu0  ;;  %v8194_v37 = vpop.f32.mrf.mxu1 }
 0x8e0   : > { %v6062_v5 = vpop.f32.mrf.mxu0  ;;  %v8198_v21 = vpop.f32.mrf.mxu1 }
 0x8e2   : > { %v3757_v62 = vpop.f32.mrf.mxu0  ;;  %v8202_v35 = vpop.f32.mrf.mxu1 }
 0x8e7   : > { %v6065_v60 = vpop.f32.mrf.mxu0  ;;  %v8206_v33 = vpop.f32.mrf.mxu1 }
 0x8e9   : > { %v3767_v36 = vpop.f32.mrf.mxu0  ;;  %v8210_v38 = vpop.f32.mrf.mxu1 }
 0x8ea   : > { %8616 = vst [vmem:[#allocation42_spill] sm:$0xff] %v8210_v38 }
 0x8ee   : > { %v8214_v28 = vpop.f32.mrf.mxu0  ;;  %v8216_v19 = vpop.f32.mrf.mxu1 }
 0x8ef   : > { %8618 = vst [vmem:[#allocation44_spill] sm:$0xff] %v8216_v19  ;;  %v8238_v19 = vpop.permute.xlu0 %4225 }
 0x8f0   : > { %v8218_v12 = vpop.f32.mrf.mxu0  ;;  %v8220_v50 = vpop.f32.mrf.mxu1  ;;  %8625 = vst [vmem:[#allocation51_spill] sm:$0xff] %v8238_v19 }
 0x8f1   : > { %8619 = vst [vmem:[#allocation45_spill] sm:$0xff] %v8220_v50 }
 0x8f3   : > { %v8250_v41 = vpop.permute.xlu0 %4370 }
 0x8f4   : > { %8631 = vst [vmem:[#allocation57_spill] sm:$0xff] %v8250_v41  ;;  %v3523_v41 = vmul.f32 %v8150_v48, %v7539_v42  ;;  %v3678_v42 = vmul.f32 %v8164_v47, %v8148_v13  ;;  %v3680_v48 = vmul.f32 %v8176_v27, %v3662_v54  ;;  %v3823_v27 = vmul.f32 %v6065_v60, %v8166_v11 }
 0x8f5   : > { %v8224_v24 = vpop.f32.mrf.mxu0  ;;  %v8226_v30 = vpop.f32.mrf.mxu1  ;;  %v3529_v47 = vmul.f32 %v8186_v45, %v7882_v6  ;;  %v3824_v45 = vmul.f32 %v8184_v26, %v8218_v12  ;;  %v8642_v12 = vld [vmem:[#allocation4_spill] sm:$0xff] }
 0x8f6   : > { %8621 = vst [vmem:[#allocation47_spill] sm:$0xff] %v8226_v30 }
 0x8f7   : > { %v8230_v44 = vpop.f32.mrf.mxu0  ;;  %v8232_v2 = vpop.f32.mrf.mxu1 }
 0x8f8   : > { %8622 = vst [vmem:[#allocation48_spill] sm:$0xff] %v8232_v2 }
 0x8fc   : > { %v8234_v57 = vpop.f32.mrf.mxu0  ;;  %v8236_v1 = vpop.f32.mrf.mxu1 }
 0x8fd   : > { %8623 = vst [vmem:[#allocation49_spill] sm:$0xff] %v8234_v57  ;;  %8624 = vst [vmem:[#allocation50_spill] sm:$0xff] %v8236_v1  ;;  %v8256_v57 = vpop.permute.xlu1 %4227 }
 0x8fe   : > { %v8240_v50 = vpop.f32.mrf.mxu0  ;;  %v8242_v0 = vpop.f32.mrf.mxu1  ;;  %8633 = vst [vmem:[#allocation59_spill] sm:$0xff] %v8256_v57  ;;  %v3522_v57 = vmul.f32 %v8156_v39, %v7519_v15  ;;  %v3677_v15 = vmul.f32 %v8136_v32, %v8170_v63  ;;  %v8638_v32 = vsub.s32 7, %v6503_v17  ;;  %v8641_v63 = vld [vmem:[#allocation32_spill] sm:$0xff] }
 0x8ff   : > { %8626 = vst [vmem:[#allocation52_spill] sm:$0xff] %v8240_v50  ;;  %8627 = vst [vmem:[#allocation53_spill] sm:$0xff] %v8242_v0  ;;  %v8262_v50 = vpop.permute.xlu0 %4515 }
 0x900   : > { %8635 = vst [vmem:[#allocation61_spill] sm:$0xff] %v8262_v50 }
 0x903   : > { %v8246_v30 = vpop.f32.mrf.mxu0  ;;  %v8248_v49 = vpop.f32.mrf.mxu1 }
 0x904   : > { %8629 = vst [vmem:[#allocation55_spill] sm:$0xff] %v8246_v30  ;;  %8630 = vst [vmem:[#allocation56_spill] sm:$0xff] %v8248_v49  ;;  %v8268_v30 = vpop.permute.xlu1 %4372 }
 0x905   : > { %v8252_v2 = vpop.f32.mrf.mxu0  ;;  %v8254_v38 = vpop.f32.mrf.mxu1  ;;  %8637 = vst [vmem:[#allocation63_spill] sm:$0xff] %v8268_v30  ;;  %v3525_v30 = vmul.f32 %v8162_v40, %v7590_v9  ;;  %v3679_v9 = vmul.f32 %v8172_v43, %v8182_v29  ;;  %v8643_v43 = vld [vmem:[#allocation49_spill] sm:$0xff] }
 0x906   : > { %8632 = vst [vmem:[#allocation58_spill] sm:$0xff] %v8254_v38  ;;  %v3676_v38 = vmul.f32 %v8152_v8, %v8122_v18  ;;  %v3524_v18 = vmul.f32 %v8168_v20, %v7563_v34  ;;  %v3526_v8 = vmul.f32 %v8180_v51, %v7622_v22  ;;  %v3821_v34 = vmul.f32 %v6062_v5, %v8126_v25 }
 0x907   : > { %v3822_v51 = vmul.f32 %v8142_v23, %v3767_v36  ;;  %v8639_v22 = vsub.s32 6, %v6503_v17  ;;  %v3686_v5 = vadd.f32 %v3678_v42, %v3525_v30  ;;  %v3528_v17 = vmul.f32 %v8192_v46, %v7766_v14 }
 0x908   : > { %v3684_v54 = vadd.f32 %v3676_v38, %v3523_v41  ;;  %v3685_v25 = vadd.f32 %v3677_v15, %v3524_v18  ;;  %v3825_v41 = vmul.f32 %v8214_v28, %v8228_v4  ;;  %v3966_v36 = vmul.f32 %v8198_v21, %v8130_v31  ;;  %v8640_v4 = vld [vmem:[#allocation42_spill] sm:$0xff] }
 0x909   : > { %v8313_v29 = vrot.slane %v7578_v59, %v8639_v22  ;;  %v3831_v30 = vadd.f32 %v3823_v27, %v3686_v5  ;;  %v3965_v46 = vmul.f32 %v8120_v52, %v8202_v35  ;;  %v3968_v28 = vmul.f32 %v8206_v33, %v8178_v53  ;;  %v8644_v35 = vld [vmem:[#allocation11_spill] sm:$0xff]  ;;  %v8645_v52 = vld [vmem:[#allocation52_spill] sm:$0xff]  ;;  %v8646_v33 = vld [vmem:[#allocation46_spill] sm:$0xff] }
 0x90a   : > { %v8258_v1 = vpop.f32.mrf.mxu0  ;;  %v8260_v19 = vpop.f32.mrf.mxu1  ;;  %v3829_v38 = vadd.f32 %v3821_v34, %v3684_v54  ;;  %v3967_v26 = vmul.f32 %v8641_v63, %v8640_v4  ;;  %v4087_v42 = vmul.f32 %v8643_v43, %v8642_v12  ;;  %v8650_v54 = vld [vmem:[#allocation47_spill] sm:$0xff]  ;;  %v8662_v43 = vld [vmem:[#allocation53_spill] sm:$0xff] }
 0x90b   : > { %8634 = vst [vmem:[#allocation60_spill] sm:$0xff] %v8260_v19  ;;  %v3675_v19 = vmul.f32 %v8114_v3, %v8158_v56  ;;  %v3527_v3 = vmul.f32 %v8174_v61, %v7732_v55  ;;  %v3820_v56 = vmul.f32 %v8116_v58, %v3757_v62  ;;  %v8306_v61 = vrot.slane %v7578_v59, %v8638_v32  ;;  %v3666_v55 = vpop.permute.xlu1 %3665  ;;  %v8649_v32 = vld [vmem:[#allocation38_spill] sm:$0xff]  ;;  %v8661_v63 = vld [vmem:[#allocation31_spill] sm:$0xff] }
 0x90c   : > { %v8264_v0 = vpop.f32.mrf.mxu0  ;;  %v8266_v16 = vpop.f32.mrf.mxu1  ;;  %v3687_v58 = vadd.f32 %v3679_v9, %v3526_v8  ;;  %v3682_v20 = vmul.f32 %v8188_v7, %v3666_v55  ;;  %v3681_v59 = vmul.f32 %v3664_v10, %v8194_v37  ;;  %v3974_v31 = vadd.f32 %v3966_v36, %v3829_v38  ;;  %v8647_v9 = vld [vmem:[#allocation44_spill] sm:$0xff] }
 0x90d   : > { %8636 = vst [vmem:[#allocation62_spill] sm:$0xff] %v8264_v0  ;;  %v3809_v0 = vpop.permute.xlu0 %3808  ;;  %v3683_v40 = vadd.f32 %v3675_v19, %v3522_v57  ;;  %v3688_v62 = vadd.f32 %v3680_v48, %v3527_v3  ;;  %v3830_v19 = vadd.f32 %v3822_v51, %v3685_v25  ;;  %v3970_v34 = vmul.f32 %v8647_v9, %v8646_v33  ;;  %v8651_v25 = vld [vmem:[#allocation21_spill] sm:$0xff] }
 0x90e   : > { %v3826_v10 = vmul.f32 %v3809_v0, %v8230_v44  ;;  %v3690_v14 = vadd.f32 %v3682_v20, %v3529_v47  ;;  %v3689_v21 = vadd.f32 %v3681_v59, %v3528_v17  ;;  %v3976_v44 = vadd.f32 %v3968_v28, %v3831_v30  ;;  %v8652_v47 = vld [vmem:[#allocation55_spill] sm:$0xff]  ;;  %v8654_v17 = vld [vmem:[#allocation48_spill] sm:$0xff]  ;;  %v8655_v59 = vld [vmem:[#allocation54_spill] sm:$0xff] }
 0x90f   : > { %v3828_v57 = vadd.f32 %v3820_v56, %v3683_v40  ;;  %v3975_v0 = vadd.f32 %v3967_v26, %v3830_v19  ;;  %v3833_v48 = vadd.f32 %v3825_v41, %v3688_v62  ;;  %v3832_v8 = vadd.f32 %v3824_v45, %v3687_v58  ;;  %v3956_v53 = vpop.permute.xlu1 %3955  ;;  %v8648_v56 = vld [vmem:[#allocation45_spill] sm:$0xff]  ;;  %v8656_v30 = vld [vmem:[#allocation23_spill] sm:$0xff]  ;;  %v8657_v41 = vld [vmem:[#allocation22_spill] sm:$0xff] }
 0x910   : > { %v3969_v27 = vmul.f32 %v8649_v32, %v8648_v56  ;;  %v3834_v22 = vadd.f32 %v3826_v10, %v3689_v21  ;;  %v3972_v40 = vmul.f32 %v8650_v54, %v3956_v53  ;;  %v4095_v5 = vadd.f32 %v4087_v42, %v3974_v31  ;;  %v8660_v28 = vld [vmem:[#allocation50_spill] sm:$0xff]  ;;  %v8663_v42 = vld [vmem:[#allocation27_spill] sm:$0xff]  ;;  %v8664_v31 = vld [vmem:[#allocation25_spill] sm:$0xff] }
 0x911   : > { %v8278_v49 = vpop.f32.mrf.mxu0  ;;  %v8280_v50 = vpop.f32.mrf.mxu1  ;;  %v3973_v15 = vadd.f32 %v3965_v46, %v3828_v57  ;;  %v4089_v20 = vmul.f32 %v8652_v47, %v8651_v25  ;;  %v3971_v38 = vmul.f32 %v8655_v59, %v8654_v17  ;;  %v4091_v19 = vmul.f32 %v8258_v1, %v8656_v30  ;;  %v8665_v53 = vld [vmem:[#allocation28_spill] sm:$0xff]  ;;  %v8669_v54 = vld [vmem:[#allocation58_spill] sm:$0xff]  ;;  %v8675_v17 = vld [vmem:[#allocation33_spill] sm:$0xff] }
 0x912   : > { %v3811_v23 = vpop.permute.xlu0 %3810  ;;  %v3977_v10 = vadd.f32 %v3969_v27, %v3832_v8  ;;  %v4239_v21 = vmul.f32 %v8663_v42, %v8662_v43  ;;  %v8666_v56 = vld [vmem:[#allocation24_spill] sm:$0xff]  ;;  %v8667_v27 = vld [vmem:[#allocation37_spill] sm:$0xff] }
 0x913   : > { %v8297_v39 = vpop.f32.mrf.mxu0  ;;  %v8299_v13 = vpop.f32.mrf.mxu1  ;;  %v3827_v37 = vmul.f32 %v8224_v24, %v3811_v23  ;;  %v4086_v24 = vmul.f32 %v8645_v52, %v8644_v35  ;;  %v8653_v23 = vld [vmem:[#allocation20_spill] sm:$0xff]  ;;  %v3979_v12 = vadd.f32 %v3971_v38, %v3834_v22  ;;  %v4097_v52 = vadd.f32 %v4089_v20, %v3976_v44  ;;  %v8674_v20 = vld [vmem:[#allocation41_spill] sm:$0xff] }
 0x914   : > { %v4088_v62 = vmul.f32 %v8252_v2, %v8653_v23  ;;  %v8658_v45 = vld [vmem:[#allocation62_spill] sm:$0xff]  ;;  %v8673_v47 = vld [vmem:[#allocation60_spill] sm:$0xff]  ;;  %v4243_v23 = vmul.f32 %v8674_v20, %v8266_v16 }
 0x915   : > { %v3835_v51 = vadd.f32 %v3827_v37, %v3690_v14  ;;  %v4094_v57 = vadd.f32 %v4086_v24, %v3973_v15  ;;  %v4090_v36 = vmul.f32 %v8658_v45, %v8657_v41  ;;  %v3978_v37 = vadd.f32 %v3970_v34, %v3833_v48  ;;  %v8659_v14 = vld [vmem:[#allocation30_spill] sm:$0xff] }
 0x916   : > { %v4240_v4 = vmul.f32 %v8660_v28, %v8659_v14  ;;  %v4093_v15 = vmul.f32 %v8278_v49, %v8664_v31  ;;  %v4096_v24 = vadd.f32 %v4088_v62, %v3975_v0  ;;  %v8672_v0 = vld [vmem:[#allocation51_spill] sm:$0xff]  ;;  %v4230_v38 = vpop.permute.xlu0 %4229 }
 0x917   : > { %v6174_v60 = vpop.f32.mrf.mxu0  ;;  %v8318_v11 = vpop.f32.mrf.mxu1  ;;  %v3980_v2 = vadd.f32 %v3972_v40, %v3835_v51  ;;  %v4247_v33 = vadd.f32 %v4239_v21, %v4094_v57  ;;  %v4099_v9 = vadd.f32 %v4091_v19, %v3978_v37  ;;  %v4098_v34 = vadd.f32 %v4090_v36, %v3977_v10  ;;  %v8668_v51 = vld [vmem:[#allocation56_spill] sm:$0xff]  ;;  %v8670_v40 = vld [vmem:[#allocation34_spill] sm:$0xff]  ;;  %v8676_v19 = vld [vmem:[#allocation29_spill] sm:$0xff] }
 0x918   : > { %v4385_v26 = vmul.f32 %v6174_v60, %v8661_v63  ;;  %v4248_v35 = vadd.f32 %v4240_v4, %v4095_v5  ;;  %v4092_v60 = vmul.f32 %v8297_v39, %v8666_v56  ;;  %v4242_v22 = vmul.f32 %v8668_v51, %v8667_v27  ;;  %v8671_v5 = vld [vmem:[#allocation36_spill] sm:$0xff]  ;;  %v4375_v4 = vpop.permute.xlu1 %4374  ;;  %v8677_v63 = vld [vmem:[#allocation26_spill] sm:$0xff]  ;;  %v8679_v21 = vld [vmem:[#allocation59_spill] sm:$0xff] }
 0x919   : > { %v4321_v7 = vpop.f32.mrf.mxu0  ;;  %v8327_v6 = vpop.f32.mrf.mxu1  ;;  %v4241_v49 = vmul.f32 %v8670_v40, %v8669_v54  ;;  %v4101_v62 = vadd.f32 %v4093_v15, %v3980_v2  ;;  %v4530_v41 = vmul.f32 %v8318_v11, %v8676_v19  ;;  %v4246_v10 = vmul.f32 %v8280_v50, %v4230_v38  ;;  %v8678_v2 = vld [vmem:[#allocation2_spill] sm:$0xff]  ;;  %v8680_v15 = vld [vmem:[#allocation57_spill] sm:$0xff]  ;;  %v8681_v50 = vld [vmem:[#allocation39_spill] sm:$0xff] }
 0x91a   : > { %v4384_v48 = vmul.f32 %v8665_v53, %v4321_v7  ;;  %v4393_v25 = vadd.f32 %v4385_v26, %v4248_v35  ;;  %v4244_v7 = vmul.f32 %v8673_v47, %v8672_v0  ;;  %v4250_v57 = vadd.f32 %v4242_v22, %v4097_v52  ;;  %v8685_v40 = vld [vmem:[#allocation10_spill] sm:$0xff]  ;;  %v8687_v0 = vld [vmem:[#allocation63_spill] sm:$0xff] }
 0x91b   : > { %v8341_v18 = vpop.f32.mrf.mxu1  ;;  %v4249_v30 = vadd.f32 %v4241_v49, %v4096_v24  ;;  %v4100_v14 = vadd.f32 %v4092_v60, %v3979_v12  ;;  %v4254_v42 = vadd.f32 %v4246_v10, %v4101_v62  ;;  %v4245_v11 = vmul.f32 %v8679_v21, %v8299_v13  ;;  %v8684_v60 = vld [vmem:[#allocation40_spill] sm:$0xff]  ;;  %v8688_v62 = vld [vmem:[#allocation9_spill] sm:$0xff]  ;;  %v8689_v38 = vld [vmem:[#allocation43_spill] sm:$0xff] }
 0x91c   : > { %v6177_v3 = vpop.f32.mrf.mxu0  ;;  %v4392_v45 = vadd.f32 %v4384_v48, %v4247_v33  ;;  %v4252_v37 = vadd.f32 %v4244_v7, %v4099_v9  ;;  %v4538_v16 = vadd.f32 %v4530_v41, %v4393_v25  ;;  %v4532_v12 = vmul.f32 %v8341_v18, %v8681_v50  ;;  %v8682_v33 = vld [vmem:[#allocation3_spill] sm:$0xff]  ;;  %v8686_v18 = vld [vmem:[#allocation61_spill] sm:$0xff]  ;;  %v4520_v20 = vpop.permute.xlu1 %4519 }
 0x91d   : > { %v4476_v58 = vpop.f32.mrf.mxu1  ;;  %v4387_v44 = vmul.f32 %v6177_v3, %v8671_v5  ;;  %v4251_v3 = vadd.f32 %v4243_v23, %v4098_v34  ;;  %v8683_v34 = vld [vmem:[#allocation35_spill] sm:$0xff] }
 0x91e   : > { %v4331_v55 = vpop.f32.mrf.mxu0  ;;  %v4531_v56 = vmul.f32 %v8683_v34, %v4476_v58  ;;  %v8691_v21 = vld [vmem:[#allocation7_spill] sm:$0xff] }
 0x91f   : > { %v6208_v8 = vpop.f32.mrf.mxu1  ;;  %v4386_v59 = vmul.f32 %v8675_v17, %v4331_v55  ;;  %v4529_v55 = vmul.f32 %v8677_v63, %v8327_v6  ;;  %v4395_v26 = vadd.f32 %v4387_v44, %v4250_v57  ;;  %v4253_v6 = vadd.f32 %v4245_v11, %v4100_v14 }
 0x920   : > { %v6180_v46 = vpop.f32.mrf.mxu0  ;;  %v4534_v44 = vmul.f32 %v6208_v8, %v8686_v18  ;;  %v4518_v8 = vpop.permute.xlu0 %4517 }
 0x921   : > { %v4486_v36 = vpop.f32.mrf.mxu1  ;;  %v4394_v31 = vadd.f32 %v4386_v59, %v4249_v30  ;;  %v4389_v35 = vmul.f32 %v6180_v46, %v8680_v15  ;;  %v4537_v24 = vadd.f32 %v4529_v55, %v4392_v45  ;;  %v4540_v13 = vadd.f32 %v4532_v12, %v4395_v26 }
 0x922   : > { %v4341_v1 = vpop.f32.mrf.mxu0  ;;  %v4533_v57 = vmul.f32 %v8689_v38, %v4486_v36 }
 0x923   : > { %v6211_v53 = vpop.f32.mrf.mxu1  ;;  %v4388_v27 = vmul.f32 %v8684_v60, %v4341_v1  ;;  %v4539_v25 = vadd.f32 %v4531_v56, %v4394_v31  ;;  %v4397_v5 = vadd.f32 %v4389_v35, %v4252_v37 }
 0x924   : > { %v6183_v32 = vpop.f32.mrf.mxu0  ;;  %v4536_v19 = vmul.f32 %v6211_v53, %v4520_v20 }
 0x925   : > { %v4391_v51 = vmul.f32 %v6183_v32, %v4375_v4  ;;  %v4496_v23 = vpop.f32.mrf.mxu1  ;;  %v4396_v59 = vadd.f32 %v4388_v27, %v4251_v3  ;;  %v4542_v14 = vadd.f32 %v4534_v44, %v4397_v5 }
 0x926   : > { %v4351_v39 = vpop.f32.mrf.mxu0  ;;  %v4535_v4 = vmul.f32 %v4518_v8, %v4496_v23  ;;  %v8694_v8 = vld [vmem:[#allocation16_spill] sm:$0xff] }
 0x927   : > { %v4390_v47 = vmul.f32 %v8687_v0, %v4351_v39  ;;  %v4399_v30 = vadd.f32 %v4391_v51, %v4254_v42 }
 0x928   : > { %v6230_v28 = vpop.f32.mrf.mxu0 }
 0x929   : > { %v4651_v43 = vmul.f32 %v6230_v28, %v8678_v2  ;;  %v4398_v28 = vadd.f32 %v4390_v47, %v4253_v6  ;;  %v4541_v2 = vadd.f32 %v4533_v57, %v4396_v59  ;;  %v8693_v6 = vld [vmem:[#allocation5_spill] sm:$0xff] }
 0x92a   : > { %v4611_v52 = vpop.f32.mrf.mxu0 }
 0x92b   : > { %v4659_v48 = vadd.f32 %v4651_v43, %v4538_v16  ;;  %v4650_v9 = vmul.f32 %v4611_v52, %v8682_v33  ;;  %v8690_v16 = vld [vmem:[#allocation8_spill] sm:$0xff]  ;;  %v4544_v43 = vadd.f32 %v4536_v19, %v4399_v30  ;;  %v8692_v52 = vld [vmem:[#allocation6_spill] sm:$0xff]  ;;  %v4543_v50 = vadd.f32 %v4535_v4, %v4398_v28 }
 0x92c   : > { %v6233_v22 = vpop.f32.mrf.mxu0 }
 0x92d   : > { %v4671_v54 = vmul.f32 %v8313_v29, %v4659_v48  ;;  %v4658_v46 = vadd.f32 %v4650_v9, %v4537_v24  ;;  %v4653_v49 = vmul.f32 %v6233_v22, %v8685_v40 }
 0x92e   : > { %v4621_v7 = vpop.f32.mrf.mxu0 }
 0x92f   : > { %v8399_v58 = vadd.f32 %v8306_v61, %v4671_v54  ;;  %v4670_v1 = vmul.f32 %v8313_v29, %v4658_v46  ;;  %v4661_v32 = vadd.f32 %v4653_v49, %v4540_v13  ;;  %v4652_v17 = vmul.f32 %v4621_v7, %v8688_v62 }
 0x930   : > { %v6236_v41 = vpop.f32.mrf.mxu0 }
 0x931   : > { %v5195_v39 = vmul.f32 -1.442695, %v8399_v58  ;;  %v8406_v45 = vadd.f32 %v8306_v61, %v4670_v1  ;;  %v4673_v37 = vmul.f32 %v8313_v29, %v4661_v32  ;;  %v4660_v10 = vadd.f32 %v4652_v17, %v4539_v25 }
 0x932   : > { %v4655_v63 = vmul.f32 %v6236_v41, %v8690_v16  ;;  %v4631_v3 = vpop.f32.mrf.mxu0 }
 0x933   : > { %6255 = vpow2.f32 %v5195_v39  ;;  %v5194_v36 = vmul.f32 -1.442695, %v8406_v45  ;;  %v8412_v55 = vadd.f32 %v8306_v61, %v4673_v37  ;;  %v4672_v26 = vmul.f32 %v8313_v29, %v4660_v10 }
 0x934   : > { %v4663_v42 = vadd.f32 %v4655_v63, %v4542_v14  ;;  %v4654_v11 = vmul.f32 %v4631_v3, %v8691_v21  ;;  %v6239_v31 = vpop.f32.mrf.mxu0  ;;  %v8695_v14 = vld [vmem:[#allocation13_spill] sm:$0xff] }
 0x935   : > { %6257 = vpow2.f32 %v5194_v36  ;;  %v5197_v15 = vmul.f32 -1.442695, %v8412_v55  ;;  %v8418_v35 = vadd.f32 %v8306_v61, %v4672_v26  ;;  %v4657_v24 = vmul.f32 %v6239_v31, %v8692_v52  ;;  %v8696_v26 = vld [vmem:[#allocation12_spill] sm:$0xff] }
 0x936   : > { %v4675_v12 = vmul.f32 %v8313_v29, %v4663_v42  ;;  %v4662_v53 = vadd.f32 %v4654_v11, %v4541_v2  ;;  %v4641_v48 = vpop.f32.mrf.mxu0 }
 0x937   : > { %6259 = vpow2.f32 %v5197_v15  ;;  %v5196_v33 = vmul.f32 -1.442695, %v8418_v35  ;;  %v4665_v9 = vadd.f32 %v4657_v24, %v4544_v43  ;;  %v4656_v34 = vmul.f32 %v4641_v48, %v8693_v6  ;;  %v8697_v43 = vld [vmem:[#allocation14_spill] sm:$0xff] }
 0x938   : > { %v4687_v56 = vadd.f32 %v8306_v61, %v4675_v12  ;;  %v4674_v60 = vmul.f32 %v8313_v29, %v4662_v53  ;;  %v8698_v12 = vld [vmem:[#allocation15_spill] sm:$0xff]  ;;  %v8699_v48 = vld [vmem:[#allocation18_spill] sm:$0xff] }
 0x939   : > { %6261 = vpow2.f32 %v5196_v33  ;;  %v4677_v27 = vmul.f32 %v8313_v29, %v4665_v9  ;;  %v4664_v51 = vadd.f32 %v4656_v34, %v4543_v50 }
 0x93a   : > { %v5199_v22 = vmul.f32 -1.442695, %v4687_v56  ;;  %v4686_v13 = vadd.f32 %v8306_v61, %v4674_v60  ;;  %v8700_v60 = vld [vmem:[#allocation19_spill] sm:$0xff] }
 0x93b   : > { %v8429_v54 = vadd.f32 %v8306_v61, %v4677_v27  ;;  %v4676_v46 = vmul.f32 %v8313_v29, %v4664_v51 }
 0x93c   : > { %6263 = vpow2.f32 %v5199_v22  ;;  %v5198_v40 = vmul.f32 -1.442695, %v4686_v13  ;;  %v8701_v22 = vld [vmem:[#allocation17_spill] sm:$0xff] }
 0x93d   : > { %v5201_v49 = vmul.f32 -1.442695, %v8429_v54  ;;  %v8434_v25 = vadd.f32 %v8306_v61, %v4676_v46 }
 0x93e   : > { %6265 = vpow2.f32 %v5198_v40 }
 0x93f   : > { %6267 = vpow2.f32 %v5201_v49  ;;  %v5200_v5 = vmul.f32 -1.442695, %v8434_v25 }
 0x940   : > { %v6256_v18 = vpop.eup %6255 }
 0x941   : > { %v4715_v44 = vadd.f32 1.0, %v6256_v18  ;;  %6269 = vpow2.f32 %v5200_v5 }
 0x942   : > { %v6258_v0 = vpop.eup %6257 }
 0x943   : > { %6271 = vrcp.f32 %v4715_v44  ;;  %v4714_v47 = vadd.f32 1.0, %v6258_v0 }
 0x944   : > { %v6260_v7 = vpop.eup %6259 }
 0x945   : > { %6273 = vrcp.f32 %v4714_v47  ;;  %v4717_v29 = vadd.f32 1.0, %v6260_v7 }
 0x946   : > { %v6262_v20 = vpop.eup %6261 }
 0x947   : > { %6275 = vrcp.f32 %v4717_v29  ;;  %v4716_v23 = vadd.f32 1.0, %v6262_v20 }
 0x949   : > { %v6264_v1 = vpop.eup %6263  ;;  %6277 = vrcp.f32 %v4716_v23 }
 0x94a   : > { %v4719_v61 = vadd.f32 1.0, %v6264_v1 }
 0x94b   : > { %v6266_v32 = vpop.eup %6265 }
 0x94c   : > { %v6268_v62 = vpop.eup %6267  ;;  %6279 = vrcp.f32 %v4719_v61  ;;  %v4718_v17 = vadd.f32 1.0, %v6266_v32 }
 0x94d   : > { %v4721_v59 = vadd.f32 1.0, %v6268_v62 }
 0x94e   : > { %v6270_v38 = vpop.eup %6269  ;;  %6281 = vrcp.f32 %v4718_v17 }
 0x94f   : > { %6283 = vrcp.f32 %v4721_v59  ;;  %v4720_v57 = vadd.f32 1.0, %v6270_v38 }
 0x950   : > { %v6272_v30 = vpop.eup %6271 }
 0x951   : > { %v4739_v19 = vmul.f32 %v6272_v30, %v8399_v58  ;;  %6285 = vrcp.f32 %v4720_v57 }
 0x952   : > { %v6274_v41 = vpop.eup %6273 }
 0x953   : > { %4747 = vst.msk [vmem:[%s8441_s27 + $0x8] sm:$0xff] %vm558_vm0, %v4739_v19  ;;  %v4763_v39 = vadd.f32 %v4739_v19, %v8694_v8  ;;  %v4738_v37 = vmul.f32 %v6274_v41, %v8406_v45 }
 0x954   : > { %v6276_v10 = vpop.eup %6275 }
 0x955   : > { %4746 = vst.msk [vmem:[%s8441_s27] sm:$0xff] %vm558_vm0, %v4738_v37  ;;  %v4762_v28 = vadd.f32 %v4738_v37, %v8695_v14  ;;  %v4741_v4 = vmul.f32 %v6276_v10, %v8412_v55  ;;  %v4771_v58 = vsel %vm558_vm0, %v4763_v39, 0.0 }
 0x956   : > { %v6278_v16 = vpop.eup %6277 }
 0x957   : > { %v4770_v63 = vsel %vm558_vm0, %v4762_v28, 0.0  ;;  %4749 = vst.msk [vmem:[%s8441_s27 + $0x18] sm:$0xff] %vm558_vm0, %v4741_v4  ;;  %v4740_v3 = vmul.f32 %v6278_v16, %v8418_v35  ;;  %v4765_v2 = vadd.f32 %v4741_v4, %v8696_v26 }
 0x958   : > { %v4772_v36 = vadd.f32 %v4771_v58, %v4770_v63 }
 0x959   : > { %v6280_v45 = vpop.eup %6279  ;;  %4748 = vst.msk [vmem:[%s8441_s27 + $0x10] sm:$0xff] %vm558_vm0, %v4740_v3  ;;  %v4764_v55 = vadd.f32 %v4740_v3, %v8697_v43  ;;  %v4775_v52 = vsel %vm558_vm0, %v4765_v2, 0.0 }
 0x95a   : > { %v4743_v42 = vmul.f32 %v6280_v45, %v4687_v56 }
 0x95b   : > { %v6282_v21 = vpop.eup %6281  ;;  %v4773_v11 = vsel %vm558_vm0, %v4764_v55, 0.0 }
 0x95c   : > { %v6284_v31 = vpop.eup %6283  ;;  %v4774_v15 = vadd.f32 %v4773_v11, %v4772_v36  ;;  %4751 = vst.msk [vmem:[%s8441_s27 + $0x28] sm:$0xff] %vm558_vm0, %v4743_v42  ;;  %v4742_v35 = vmul.f32 %v6282_v21, %v4686_v13  ;;  %v4767_v53 = vadd.f32 %v4743_v42, %v8698_v12 }
 0x95d   : > { %v4745_v24 = vmul.f32 %v6284_v31, %v8429_v54 }
 0x95e   : > { %v6286_v50 = vpop.eup %6285  ;;  %4750 = vst.msk [vmem:[%s8441_s27 + $0x20] sm:$0xff] %vm558_vm0, %v4742_v35  ;;  %v4766_v33 = vadd.f32 %v4742_v35, %v8699_v48  ;;  %v4776_v9 = vadd.f32 %v4775_v52, %v4774_v15  ;;  %v4779_v51 = vsel %vm558_vm0, %v4767_v53, 0.0 }
 0x95f   : > { %4753 = vst.msk [vmem:[%s8441_s27 + $0x38] sm:$0xff] %vm558_vm0, %v4745_v24  ;;  %v4744_v6 = vmul.f32 %v6286_v50, %v8434_v25  ;;  %v4769_v13 = vadd.f32 %v4745_v24, %v8701_v22 }
 0x960   : > { %v4777_v34 = vsel %vm558_vm0, %v4766_v33, 0.0 }
 0x961   : > { %v4778_v56 = vadd.f32 %v4777_v34, %v4776_v9  ;;  %4752 = vst.msk [vmem:[%s8441_s27 + $0x30] sm:$0xff] %vm558_vm0, %v4744_v6  ;;  %v4768_v27 = vadd.f32 %v4744_v6, %v8700_v60  ;;  %v4783_v49 = vsel %vm558_vm0, %v4769_v13, 0.0 }
 0x963   : > { %v4780_v54 = vadd.f32 %v4779_v51, %v4778_v56  ;;  %v4781_v46 = vsel %vm558_vm0, %v4768_v27, 0.0 }
 0x965   : > { %v4782_v40 = vadd.f32 %v4781_v46, %v4780_v54 }
 0x967   : > { %v4784_v5 = vadd.f32 %v4783_v49, %v4782_v40 }
 0x969   : > { %v4785_v25 = vrot.slane %v4784_v5, 4 }
 0x96b   : > { %v4786_v18 = vadd.f32 %v4785_v25, %v4784_v5 }
 0x96d   : > { %v4787_v44 = vrot.slane %v4786_v18, 2 }
 0x96f   : > { %v4788_v0 = vadd.f32 %v4787_v44, %v4786_v18 }
 0x971   : > { %v4789_v47 = vrot.slane %v4788_v0, 1 }
 0x973   : > { %v4790_v7 = vadd.f32 %v4789_v47, %v4788_v0 }
 0x975   : > { %v4791_v29 = vmul.f32 0.015625, %v4790_v7 }
 0x977   : > { %4793 = vst.msk [vmem:[%s542_s18] sm:$0x1] %vm4792_vm7, %v4791_v29 }
 0x978 PF: > { %s27_s21 = sadd.s32 1, %s6366_s21  }
 0x979   : > { %p24_p4 = scmp.ge.s32.totalorder %s27_s21, 4  }
 0x97b   :  { %26 = sbr.rel (!%p24_p4) target bundleno = 2 (0x2), region = 138 }

</bundles_post_ra>
